<compile_context>
chip_gen: v7x
topology: tpu7x:2x2x1
jax: 0.10.0
libtpu: 0.0.40
codegen_flags: <defaults>
</compile_context>

<pallas_src>
import functools

import jax
import jax.numpy as jnp
from jax import lax
from jax.experimental import pallas as pl
from jax.experimental.pallas import tpu as pltpu


def _tap_offsets():
    """All 5x5x5 stencil offsets, row-major in (dd, dh, dw) — matches weight packing."""
    return [(dd, dh, dw)
            for dd in range(-2, 3)
            for dh in range(-2, 3)
            for dw in range(-2, 3)]                                    # 125 taps


def cpm3d_kernel(x_ref, masks_ref, w_ref, bl_ref, br_ref, wg2_ref, bg_ref,
                 c0_ref, wflr_ref, bfe_ref, o_ref, *, C, D, H, W, BT, taps, G):
    DHW = D * H * W
    N = BT * DHW                       # lane extent of this batch tile
    NG = len(taps) // G
    x = x_ref[...]                                                     # [C, N] f32

    # ---- local + region convs: register-resident rolled tap groups -> fused MXU dots
    both = jnp.zeros((2 * C, N), jnp.float32)          # rows 0:C local, C:2C region
    for g in range(NG):
        parts = []
        for j in range(G):
            t = g * G + j
            dd, dh, dw = taps[t]
            s = dd * H * W + dh * W + dw
            xs = x if s == 0 else pltpu.roll(x, shift=(-s) % N, axis=1)
            parts.append(xs * masks_ref[t])                            # aligned [C, N] vmul
        gx = jnp.concatenate(parts, axis=0)                            # [G*C, N] (vreg-aligned)
        both = both + jnp.dot(w_ref[g], gx, preferred_element_type=jnp.float32)

    local = both[:C] + bl_ref[...]                                     # [C, N]
    region = both[C:] + br_ref[...]                                    # [C, N]

    # ---- global branch (avg-pool + 1x1 conv) and its logit term, one lane-dense dot
    # wg2 = [[Wg], [Wf_g @ Wg]];  Wg @ mean(x) == mean(Wg @ x)  (per batch block)
    y = jnp.dot(wg2_ref[...], x, preferred_element_type=jnp.float32)   # [2C, N]
    gparts, lparts = [], []
    for b in range(BT):
        m = jnp.mean(y[:, b * DHW:(b + 1) * DHW], axis=1, keepdims=True)   # [2C, 1]
        gparts.append(jnp.broadcast_to(m[:C] + bg_ref[...], (C, DHW)))     # global feature
        lparts.append(jnp.broadcast_to(m[C:] + c0_ref[...], (C, DHW)))     # its logit term
    gfb = gparts[0] if BT == 1 else jnp.concatenate(gparts, axis=1)    # [C, N]
    glog = lparts[0] if BT == 1 else jnp.concatenate(lparts, axis=1)   # [C, N]

    # ---- fusion 1x1x1 conv over cat([local, region, global]) + channel softmax
    # wflr = [Wf_l, Wf_r];  bfe = bf + Wf_l@bl + Wf_r@br  (folded in the wrapper)
    logits = (jnp.dot(wflr_ref[...], both, preferred_element_type=jnp.float32)
              + glog + bfe_ref[...])                                   # [C, N]
    e = jnp.exp(logits - jnp.max(logits, axis=0, keepdims=True))
    w_soft = e * pl.reciprocal(jnp.sum(e, axis=0, keepdims=True), approx=True)

    # ---- (weights * stack([local, region, global])) summed over this batch tile
    for p, plane in enumerate((local, region, gfb)):
        prod = w_soft * plane                                          # [C, N]
        acc = prod[:, 0:DHW]
        for b in range(1, BT):
            acc = acc + prod[:, b * DHW:(b + 1) * DHW]
        o_ref[0, p] = acc                                              # partial for this tile


def cpm3d_forward(x, params, *, batch_tile=1, group=5):
    """CPM3D forward. Returns [3, C, D, H, W] (the module sums over batch)."""
    B, C, D, H, W = x.shape
    DHW = D * H * W
    assert B % batch_tile == 0, "batch_tile must divide batch"
    assert C % 8 == 0 and DHW % 128 == 0, "kernel assumes lane/sublane-aligned shapes"
    taps = _tap_offsets()
    T = len(taps)                      # 125
    assert T % group == 0
    NG = T // group
    NB = B // batch_tile
    N = batch_tile * DHW
    f32 = jnp.float32

    # --- pack local (zero-padded to 5^3) + region conv weights, tap-major, grouped ---
    wl_pad = jnp.pad(params["wl"].astype(f32), ((0, 0), (0, 0), (1, 1), (1, 1), (1, 1)))
    wcat = jnp.concatenate([wl_pad, params["wr"].astype(f32)], axis=0)      # [2C, C, 5,5,5]
    w_flat = wcat.transpose(0, 2, 3, 4, 1).reshape(2 * C, T * C)            # tap-major cols
    w_groups = w_flat.reshape(2 * C, NG, group * C).transpose(1, 0, 2)      # [NG, 2C, G*C]

    # --- per-tap zero-padding validity masks, pre-broadcast to the block shape ---
    pos = jnp.arange(DHW)
    d = pos // (H * W)
    h = (pos // W) % H
    w_ = pos % W
    offs = jnp.asarray(taps, jnp.int32)
    dd, dh, dw = offs[:, 0:1], offs[:, 1:2], offs[:, 2:3]
    ok = ((d[None] + dd >= 0) & (d[None] + dd < D)
          & (h[None] + dh >= 0) & (h[None] + dh < H)
          & (w_[None] + dw >= 0) & (w_[None] + dw < W)).astype(f32)         # [T, DHW]
    masks = jnp.broadcast_to(jnp.tile(ok, (1, batch_tile))[:, None, :], (T, C, N))

    # --- small 1x1 weights: fold whatever can be folded on the host side ---
    wf = params["wf"].astype(f32)                                           # [C, 3C]
    wf_l, wf_r, wf_g = wf[:, :C], wf[:, C:2 * C], wf[:, 2 * C:]
    wg = params["wg"].astype(f32)
    bl, br = params["bl"].astype(f32), params["br"].astype(f32)
    bg, bf = params["bg"].astype(f32), params["bf"].astype(f32)
    wg2 = jnp.concatenate([wg, wf_g @ wg], axis=0)                          # [2C, C]
    c0 = (wf_g @ bg).reshape(C, 1)                                          # global logit bias
    wflr = jnp.concatenate([wf_l, wf_r], axis=1)                            # [C, 2C]
    bfe = (bf + wf_l @ bl + wf_r @ br).reshape(C, 1)                        # folded fusion bias

    # --- [B, C, D, H, W] -> [C, B*DHW]: batch tiles live on the lane axis ---
    x_lanes = x.astype(f32).reshape(B, C, DHW).transpose(1, 0, 2).reshape(C, B * DHW)

    kernel = functools.partial(cpm3d_kernel, C=C, D=D, H=H, W=W,
                               BT=batch_tile, taps=tuple(taps), G=group)
    out = pl.pallas_call(
        kernel,
        out_shape=jax.ShapeDtypeStruct((NB, 3, C, DHW), f32),
        grid_spec=pltpu.PrefetchScalarGridSpec(
            num_scalar_prefetch=0,
            grid=(NB,),
            in_specs=[
                pl.BlockSpec((C, N), lambda i: (0, i)),                     # x (lane tile i)
                pl.BlockSpec((T, C, N), lambda i: (0, 0, 0)),               # tap masks (resident)
                pl.BlockSpec((NG, 2 * C, group * C), lambda i: (0, 0, 0)),  # grouped conv weights
                pl.BlockSpec((C, 1), lambda i: (0, 0)),                     # local bias
                pl.BlockSpec((C, 1), lambda i: (0, 0)),                     # region bias
                pl.BlockSpec((2 * C, C), lambda i: (0, 0)),                 # [Wg; Wf_g@Wg]
                pl.BlockSpec((C, 1), lambda i: (0, 0)),                     # global bias
                pl.BlockSpec((C, 1), lambda i: (0, 0)),                     # Wf_g @ bg
                pl.BlockSpec((C, 2 * C), lambda i: (0, 0)),                 # [Wf_l, Wf_r]
                pl.BlockSpec((C, 1), lambda i: (0, 0)),                     # folded fusion bias
            ],
            out_specs=pl.BlockSpec((1, 3, C, DHW), lambda i: (i, 0, 0, 0)), # per-tile partials
        ),
        # each grid step writes its own output slot -> fully parallel (2 TCs on v7x)
        compiler_params=pltpu.CompilerParams(dimension_semantics=("parallel",)),
    )(x_lanes, masks, w_groups, bl.reshape(C, 1), br.reshape(C, 1), wg2,
      bg.reshape(C, 1), c0, wflr, bfe)

    # tiny wrapper-side reduction over batch tiles = the module's .sum(1) over batch
    return out.sum(axis=0).reshape(3, C, D, H, W)


# ---------------------- pure-JAX reference (for verification) ----------------------
def cpm3d_reference(x, params):
    B, C, D, H, W = x.shape
    dn = ("NCDHW", "OIDHW", "NCDHW")
    hi = lax.Precision.HIGHEST
    local = lax.conv_general_dilated(
        x, params["wl"], (1, 1, 1), [(1, 1), (1, 1), (1, 1)],
        dimension_numbers=dn, precision=hi) + params["bl"][None, :, None, None, None]
    region = lax.conv_general_dilated(
        x, params["wr"], (1, 1, 1), [(2, 2), (2, 2), (2, 2)],
        dimension_numbers=dn, precision=hi) + params["br"][None, :, None, None, None]
    g = x.mean(axis=(2, 3, 4))                                               # [B, C]
    gf = jnp.dot(g, params["wg"].T, precision=hi) + params["bg"]             # [B, C]
    global_feat = jnp.broadcast_to(gf[:, :, None, None, None], x.shape)      # [B, C, D, H, W]
    fused = jnp.concatenate([local, region, global_feat], axis=1)            # [B, 3C, D, H, W]
    logits = (jnp.einsum("oc,bcdhw->bodhw", params["wf"], fused, precision=hi)
              + params["bf"][None, :, None, None, None])
    weights = jax.nn.softmax(logits, axis=1)
    stacked = jnp.stack([local, region, global_feat], axis=0)                # [3, B, C, D, H, W]
    return (weights[None] * stacked).sum(axis=1)                             # [3, C, D, H, W]


def init_params(key, C):
    ks = jax.random.split(key, 8)

    def u(k, shape, fan_in):
        bound = 1.0 / (fan_in ** 0.5)
        return jax.random.uniform(k, shape, jnp.float32, -bound, bound)

    return dict(
        wl=u(ks[0], (C, C, 3, 3, 3), C * 27), bl=u(ks[1], (C,), C * 27),
        wr=u(ks[2], (C, C, 5, 5, 5), C * 125), br=u(ks[3], (C,), C * 125),
        wg=u(ks[4], (C, C), C), bg=u(ks[5], (C,), C),
        wf=u(ks[6], (C, 3 * C), 3 * C), bf=u(ks[7], (C,), 3 * C),
    )


if __name__ == "__main__":
    # Module requires in_channels == internal channel count; small aligned shapes:
    # B=2, C=8, spatial (D,H,W)=(4,8,8) -> D*H*W = 256 (lane aligned).
    B, C, D, H, W = 2, 8, 4, 8, 8
    key = jax.random.PRNGKey(0)
    kx, kp = jax.random.split(key)
    x = jax.random.normal(kx, (B, C, D, H, W), jnp.float32)
    params = init_params(kp, C)

    out = cpm3d_forward(x, params)
    out = jax.block_until_ready(out)

    ref = cpm3d_reference(x, params)
    err = float(jnp.max(jnp.abs(out - ref)))
    assert out.shape == (3, C, D, H, W), out.shape
    assert err < 2e-2, f"max abs err vs reference: {err}"
    print("KERNEL_OK")
</pallas_src>

<mosaic_0001>
module attributes {stable_mosaic.version = 11 : i64} {
  func.func @cpm3d_kernel(%arg0: i32, %arg1: memref<8x256xf32, #tpu.memory_space<vmem>>, %arg2: memref<125x8x256xf32, #tpu.memory_space<vmem>>, %arg3: memref<25x16x40xf32, #tpu.memory_space<vmem>>, %arg4: memref<8x1xf32, #tpu.memory_space<vmem>>, %arg5: memref<8x1xf32, #tpu.memory_space<vmem>>, %arg6: memref<16x8xf32, #tpu.memory_space<vmem>>, %arg7: memref<8x1xf32, #tpu.memory_space<vmem>>, %arg8: memref<8x1xf32, #tpu.memory_space<vmem>>, %arg9: memref<8x16xf32, #tpu.memory_space<vmem>>, %arg10: memref<8x1xf32, #tpu.memory_space<vmem>>, %arg11: memref<1x3x8x256xf32, #tpu.memory_space<vmem>>) attributes {dimension_semantics = [#tpu.dimension_semantics<parallel>], iteration_bounds = array<i64: 2>, scalar_prefetch = 0 : i64, scratch_operands = 0 : i64, tpu.core_type = #tpu.core_type<tc>, window_params = [{transform_indices = @transform_0, window_bounds = array<i64: 8, 256>}, {pipeline_mode = #tpu.pipeline_mode<synchronous>, transform_indices = @transform_1, window_bounds = array<i64: 125, 8, 256>}, {pipeline_mode = #tpu.pipeline_mode<synchronous>, transform_indices = @transform_2, window_bounds = array<i64: 25, 16, 40>}, {pipeline_mode = #tpu.pipeline_mode<synchronous>, transform_indices = @transform_3, window_bounds = array<i64: 8, 1>}, {pipeline_mode = #tpu.pipeline_mode<synchronous>, transform_indices = @transform_4, window_bounds = array<i64: 8, 1>}, {pipeline_mode = #tpu.pipeline_mode<synchronous>, transform_indices = @transform_5, window_bounds = array<i64: 16, 8>}, {pipeline_mode = #tpu.pipeline_mode<synchronous>, transform_indices = @transform_6, window_bounds = array<i64: 8, 1>}, {pipeline_mode = #tpu.pipeline_mode<synchronous>, transform_indices = @transform_7, window_bounds = array<i64: 8, 1>}, {pipeline_mode = #tpu.pipeline_mode<synchronous>, transform_indices = @transform_8, window_bounds = array<i64: 8, 16>}, {pipeline_mode = #tpu.pipeline_mode<synchronous>, transform_indices = @transform_9, window_bounds = array<i64: 8, 1>}, {transform_indices = @transform_10, window_bounds = array<i64: 1, 3, 8, 256>}]} {
    %c0 = arith.constant 0 : index
    %c0_0 = arith.constant 0 : index
    %0 = vector.load %arg1[%c0, %c0_0] : memref<8x256xf32, #tpu.memory_space<vmem>>, vector<8x256xf32>
    %cst = arith.constant 0.000000e+00 : f32
    %1 = vector.broadcast %cst : f32 to vector<16x256xf32>
    %c146_i32 = arith.constant 146 : i32
    %2 = tpu.dynamic_rotate %0 by %c146_i32 dim 1 : vector<8x256xf32>, i32 -> vector<8x256xf32>
    %c0_1 = arith.constant 0 : index
    %c0_2 = arith.constant 0 : index
    %c0_3 = arith.constant 0 : index
    %3 = vector.load %arg2[%c0_1, %c0_2, %c0_3] : memref<125x8x256xf32, #tpu.memory_space<vmem>>, vector<1x8x256xf32>
    %4 = vector.shape_cast %3 : vector<1x8x256xf32> to vector<8x256xf32>
    %5 = arith.mulf %2, %4 : vector<8x256xf32>
    %c145_i32 = arith.constant 145 : i32
    %6 = tpu.dynamic_rotate %0 by %c145_i32 dim 1 : vector<8x256xf32>, i32 -> vector<8x256xf32>
    %c1 = arith.constant 1 : index
    %c0_4 = arith.constant 0 : index
    %c0_5 = arith.constant 0 : index
    %7 = vector.load %arg2[%c1, %c0_4, %c0_5] : memref<125x8x256xf32, #tpu.memory_space<vmem>>, vector<1x8x256xf32>
    %8 = vector.shape_cast %7 : vector<1x8x256xf32> to vector<8x256xf32>
    %9 = arith.mulf %6, %8 : vector<8x256xf32>
    %c144_i32 = arith.constant 144 : i32
    %10 = tpu.dynamic_rotate %0 by %c144_i32 dim 1 : vector<8x256xf32>, i32 -> vector<8x256xf32>
    %c2 = arith.constant 2 : index
    %c0_6 = arith.constant 0 : index
    %c0_7 = arith.constant 0 : index
    %11 = vector.load %arg2[%c2, %c0_6, %c0_7] : memref<125x8x256xf32, #tpu.memory_space<vmem>>, vector<1x8x256xf32>
    %12 = vector.shape_cast %11 : vector<1x8x256xf32> to vector<8x256xf32>
    %13 = arith.mulf %10, %12 : vector<8x256xf32>
    %c143_i32 = arith.constant 143 : i32
    %14 = tpu.dynamic_rotate %0 by %c143_i32 dim 1 : vector<8x256xf32>, i32 -> vector<8x256xf32>
    %c3 = arith.constant 3 : index
    %c0_8 = arith.constant 0 : index
    %c0_9 = arith.constant 0 : index
    %15 = vector.load %arg2[%c3, %c0_8, %c0_9] : memref<125x8x256xf32, #tpu.memory_space<vmem>>, vector<1x8x256xf32>
    %16 = vector.shape_cast %15 : vector<1x8x256xf32> to vector<8x256xf32>
    %17 = arith.mulf %14, %16 : vector<8x256xf32>
    %c142_i32 = arith.constant 142 : i32
    %18 = tpu.dynamic_rotate %0 by %c142_i32 dim 1 : vector<8x256xf32>, i32 -> vector<8x256xf32>
    %c4 = arith.constant 4 : index
    %c0_10 = arith.constant 0 : index
    %c0_11 = arith.constant 0 : index
    %19 = vector.load %arg2[%c4, %c0_10, %c0_11] : memref<125x8x256xf32, #tpu.memory_space<vmem>>, vector<1x8x256xf32>
    %20 = vector.shape_cast %19 : vector<1x8x256xf32> to vector<8x256xf32>
    %21 = arith.mulf %18, %20 : vector<8x256xf32>
    %22 = tpu.concatenate %5, %9, %13, %17, %21 in 0 : vector<8x256xf32>, vector<8x256xf32>, vector<8x256xf32>, vector<8x256xf32>, vector<8x256xf32> -> vector<40x256xf32>
    %c0_12 = arith.constant 0 : index
    %c0_13 = arith.constant 0 : index
    %c0_14 = arith.constant 0 : index
    %23 = vector.load %arg3[%c0_12, %c0_13, %c0_14] : memref<25x16x40xf32, #tpu.memory_space<vmem>>, vector<1x16x40xf32>
    %24 = vector.shape_cast %23 : vector<1x16x40xf32> to vector<16x40xf32>
    %cst_15 = arith.constant dense<0.000000e+00> : vector<16x256xf32>
    %25 = tpu.matmul %24, %22, %cst_15 {dimension_numbers = #tpu.dot_dimension_numbers<[1], [0], [0], [1], [0, 0, 1, 1], [], []>} : vector<16x40xf32>, vector<40x256xf32>, vector<16x256xf32> -> vector<16x256xf32>
    %26 = arith.addf %1, %25 : vector<16x256xf32>
    %c138_i32 = arith.constant 138 : i32
    %27 = tpu.dynamic_rotate %0 by %c138_i32 dim 1 : vector<8x256xf32>, i32 -> vector<8x256xf32>
    %c5 = arith.constant 5 : index
    %c0_16 = arith.constant 0 : index
    %c0_17 = arith.constant 0 : index
    %28 = vector.load %arg2[%c5, %c0_16, %c0_17] : memref<125x8x256xf32, #tpu.memory_space<vmem>>, vector<1x8x256xf32>
    %29 = vector.shape_cast %28 : vector<1x8x256xf32> to vector<8x256xf32>
    %30 = arith.mulf %27, %29 : vector<8x256xf32>
    %c137_i32 = arith.constant 137 : i32
    %31 = tpu.dynamic_rotate %0 by %c137_i32 dim 1 : vector<8x256xf32>, i32 -> vector<8x256xf32>
    %c6 = arith.constant 6 : index
    %c0_18 = arith.constant 0 : index
    %c0_19 = arith.constant 0 : index
    %32 = vector.load %arg2[%c6, %c0_18, %c0_19] : memref<125x8x256xf32, #tpu.memory_space<vmem>>, vector<1x8x256xf32>
    %33 = vector.shape_cast %32 : vector<1x8x256xf32> to vector<8x256xf32>
    %34 = arith.mulf %31, %33 : vector<8x256xf32>
    %c136_i32 = arith.constant 136 : i32
    %35 = tpu.dynamic_rotate %0 by %c136_i32 dim 1 : vector<8x256xf32>, i32 -> vector<8x256xf32>
    %c7 = arith.constant 7 : index
    %c0_20 = arith.constant 0 : index
    %c0_21 = arith.constant 0 : index
    %36 = vector.load %arg2[%c7, %c0_20, %c0_21] : memref<125x8x256xf32, #tpu.memory_space<vmem>>, vector<1x8x256xf32>
    %37 = vector.shape_cast %36 : vector<1x8x256xf32> to vector<8x256xf32>
    %38 = arith.mulf %35, %37 : vector<8x256xf32>
    %c135_i32 = arith.constant 135 : i32
    %39 = tpu.dynamic_rotate %0 by %c135_i32 dim 1 : vector<8x256xf32>, i32 -> vector<8x256xf32>
    %c8 = arith.constant 8 : index
    %c0_22 = arith.constant 0 : index
    %c0_23 = arith.constant 0 : index
    %40 = vector.load %arg2[%c8, %c0_22, %c0_23] : memref<125x8x256xf32, #tpu.memory_space<vmem>>, vector<1x8x256xf32>
    %41 = vector.shape_cast %40 : vector<1x8x256xf32> to vector<8x256xf32>
    %42 = arith.mulf %39, %41 : vector<8x256xf32>
    %c134_i32 = arith.constant 134 : i32
    %43 = tpu.dynamic_rotate %0 by %c134_i32 dim 1 : vector<8x256xf32>, i32 -> vector<8x256xf32>
    %c9 = arith.constant 9 : index
    %c0_24 = arith.constant 0 : index
    %c0_25 = arith.constant 0 : index
    %44 = vector.load %arg2[%c9, %c0_24, %c0_25] : memref<125x8x256xf32, #tpu.memory_space<vmem>>, vector<1x8x256xf32>
    %45 = vector.shape_cast %44 : vector<1x8x256xf32> to vector<8x256xf32>
    %46 = arith.mulf %43, %45 : vector<8x256xf32>
    %47 = tpu.concatenate %30, %34, %38, %42, %46 in 0 : vector<8x256xf32>, vector<8x256xf32>, vector<8x256xf32>, vector<8x256xf32>, vector<8x256xf32> -> vector<40x256xf32>
    %c1_26 = arith.constant 1 : index
    %c0_27 = arith.constant 0 : index
    %c0_28 = arith.constant 0 : index
    %48 = vector.load %arg3[%c1_26, %c0_27, %c0_28] : memref<25x16x40xf32, #tpu.memory_space<vmem>>, vector<1x16x40xf32>
    %49 = vector.shape_cast %48 : vector<1x16x40xf32> to vector<16x40xf32>
    %cst_29 = arith.constant dense<0.000000e+00> : vector<16x256xf32>
    %50 = tpu.matmul %49, %47, %cst_29 {dimension_numbers = #tpu.dot_dimension_numbers<[1], [0], [0], [1], [0, 0, 1, 1], [], []>} : vector<16x40xf32>, vector<40x256xf32>, vector<16x256xf32> -> vector<16x256xf32>
    %51 = arith.addf %26, %50 : vector<16x256xf32>
    %c130_i32 = arith.constant 130 : i32
    %52 = tpu.dynamic_rotate %0 by %c130_i32 dim 1 : vector<8x256xf32>, i32 -> vector<8x256xf32>
    %c10 = arith.constant 10 : index
    %c0_30 = arith.constant 0 : index
    %c0_31 = arith.constant 0 : index
    %53 = vector.load %arg2[%c10, %c0_30, %c0_31] : memref<125x8x256xf32, #tpu.memory_space<vmem>>, vector<1x8x256xf32>
    %54 = vector.shape_cast %53 : vector<1x8x256xf32> to vector<8x256xf32>
    %55 = arith.mulf %52, %54 : vector<8x256xf32>
    %c129_i32 = arith.constant 129 : i32
    %56 = tpu.dynamic_rotate %0 by %c129_i32 dim 1 : vector<8x256xf32>, i32 -> vector<8x256xf32>
    %c11 = arith.constant 11 : index
    %c0_32 = arith.constant 0 : index
    %c0_33 = arith.constant 0 : index
    %57 = vector.load %arg2[%c11, %c0_32, %c0_33] : memref<125x8x256xf32, #tpu.memory_space<vmem>>, vector<1x8x256xf32>
    %58 = vector.shape_cast %57 : vector<1x8x256xf32> to vector<8x256xf32>
    %59 = arith.mulf %56, %58 : vector<8x256xf32>
    %c128_i32 = arith.constant 128 : i32
    %60 = tpu.dynamic_rotate %0 by %c128_i32 dim 1 : vector<8x256xf32>, i32 -> vector<8x256xf32>
    %c12 = arith.constant 12 : index
    %c0_34 = arith.constant 0 : index
    %c0_35 = arith.constant 0 : index
    %61 = vector.load %arg2[%c12, %c0_34, %c0_35] : memref<125x8x256xf32, #tpu.memory_space<vmem>>, vector<1x8x256xf32>
    %62 = vector.shape_cast %61 : vector<1x8x256xf32> to vector<8x256xf32>
    %63 = arith.mulf %60, %62 : vector<8x256xf32>
    %c127_i32 = arith.constant 127 : i32
    %64 = tpu.dynamic_rotate %0 by %c127_i32 dim 1 : vector<8x256xf32>, i32 -> vector<8x256xf32>
    %c13 = arith.constant 13 : index
    %c0_36 = arith.constant 0 : index
    %c0_37 = arith.constant 0 : index
    %65 = vector.load %arg2[%c13, %c0_36, %c0_37] : memref<125x8x256xf32, #tpu.memory_space<vmem>>, vector<1x8x256xf32>
    %66 = vector.shape_cast %65 : vector<1x8x256xf32> to vector<8x256xf32>
    %67 = arith.mulf %64, %66 : vector<8x256xf32>
    %c126_i32 = arith.constant 126 : i32
    %68 = tpu.dynamic_rotate %0 by %c126_i32 dim 1 : vector<8x256xf32>, i32 -> vector<8x256xf32>
    %c14 = arith.constant 14 : index
    %c0_38 = arith.constant 0 : index
    %c0_39 = arith.constant 0 : index
    %69 = vector.load %arg2[%c14, %c0_38, %c0_39] : memref<125x8x256xf32, #tpu.memory_space<vmem>>, vector<1x8x256xf32>
    %70 = vector.shape_cast %69 : vector<1x8x256xf32> to vector<8x256xf32>
    %71 = arith.mulf %68, %70 : vector<8x256xf32>
    %72 = tpu.concatenate %55, %59, %63, %67, %71 in 0 : vector<8x256xf32>, vector<8x256xf32>, vector<8x256xf32>, vector<8x256xf32>, vector<8x256xf32> -> vector<40x256xf32>
    %c2_40 = arith.constant 2 : index
    %c0_41 = arith.constant 0 : index
    %c0_42 = arith.constant 0 : index
    %73 = vector.load %arg3[%c2_40, %c0_41, %c0_42] : memref<25x16x40xf32, #tpu.memory_space<vmem>>, vector<1x16x40xf32>
    %74 = vector.shape_cast %73 : vector<1x16x40xf32> to vector<16x40xf32>
    %cst_43 = arith.constant dense<0.000000e+00> : vector<16x256xf32>
    %75 = tpu.matmul %74, %72, %cst_43 {dimension_numbers = #tpu.dot_dimension_numbers<[1], [0], [0], [1], [0, 0, 1, 1], [], []>} : vector<16x40xf32>, vector<40x256xf32>, vector<16x256xf32> -> vector<16x256xf32>
    %76 = arith.addf %51, %75 : vector<16x256xf32>
    %c122_i32 = arith.constant 122 : i32
    %77 = tpu.dynamic_rotate %0 by %c122_i32 dim 1 : vector<8x256xf32>, i32 -> vector<8x256xf32>
    %c15 = arith.constant 15 : index
    %c0_44 = arith.constant 0 : index
    %c0_45 = arith.constant 0 : index
    %78 = vector.load %arg2[%c15, %c0_44, %c0_45] : memref<125x8x256xf32, #tpu.memory_space<vmem>>, vector<1x8x256xf32>
    %79 = vector.shape_cast %78 : vector<1x8x256xf32> to vector<8x256xf32>
    %80 = arith.mulf %77, %79 : vector<8x256xf32>
    %c121_i32 = arith.constant 121 : i32
    %81 = tpu.dynamic_rotate %0 by %c121_i32 dim 1 : vector<8x256xf32>, i32 -> vector<8x256xf32>
    %c16 = arith.constant 16 : index
    %c0_46 = arith.constant 0 : index
    %c0_47 = arith.constant 0 : index
    %82 = vector.load %arg2[%c16, %c0_46, %c0_47] : memref<125x8x256xf32, #tpu.memory_space<vmem>>, vector<1x8x256xf32>
    %83 = vector.shape_cast %82 : vector<1x8x256xf32> to vector<8x256xf32>
    %84 = arith.mulf %81, %83 : vector<8x256xf32>
    %c120_i32 = arith.constant 120 : i32
    %85 = tpu.dynamic_rotate %0 by %c120_i32 dim 1 : vector<8x256xf32>, i32 -> vector<8x256xf32>
    %c17 = arith.constant 17 : index
    %c0_48 = arith.constant 0 : index
    %c0_49 = arith.constant 0 : index
    %86 = vector.load %arg2[%c17, %c0_48, %c0_49] : memref<125x8x256xf32, #tpu.memory_space<vmem>>, vector<1x8x256xf32>
    %87 = vector.shape_cast %86 : vector<1x8x256xf32> to vector<8x256xf32>
    %88 = arith.mulf %85, %87 : vector<8x256xf32>
    %c119_i32 = arith.constant 119 : i32
    %89 = tpu.dynamic_rotate %0 by %c119_i32 dim 1 : vector<8x256xf32>, i32 -> vector<8x256xf32>
    %c18 = arith.constant 18 : index
    %c0_50 = arith.constant 0 : index
    %c0_51 = arith.constant 0 : index
    %90 = vector.load %arg2[%c18, %c0_50, %c0_51] : memref<125x8x256xf32, #tpu.memory_space<vmem>>, vector<1x8x256xf32>
    %91 = vector.shape_cast %90 : vector<1x8x256xf32> to vector<8x256xf32>
    %92 = arith.mulf %89, %91 : vector<8x256xf32>
    %c118_i32 = arith.constant 118 : i32
    %93 = tpu.dynamic_rotate %0 by %c118_i32 dim 1 : vector<8x256xf32>, i32 -> vector<8x256xf32>
    %c19 = arith.constant 19 : index
    %c0_52 = arith.constant 0 : index
    %c0_53 = arith.constant 0 : index
    %94 = vector.load %arg2[%c19, %c0_52, %c0_53] : memref<125x8x256xf32, #tpu.memory_space<vmem>>, vector<1x8x256xf32>
    %95 = vector.shape_cast %94 : vector<1x8x256xf32> to vector<8x256xf32>
    %96 = arith.mulf %93, %95 : vector<8x256xf32>
    %97 = tpu.concatenate %80, %84, %88, %92, %96 in 0 : vector<8x256xf32>, vector<8x256xf32>, vector<8x256xf32>, vector<8x256xf32>, vector<8x256xf32> -> vector<40x256xf32>
    %c3_54 = arith.constant 3 : index
    %c0_55 = arith.constant 0 : index
    %c0_56 = arith.constant 0 : index
    %98 = vector.load %arg3[%c3_54, %c0_55, %c0_56] : memref<25x16x40xf32, #tpu.memory_space<vmem>>, vector<1x16x40xf32>
    %99 = vector.shape_cast %98 : vector<1x16x40xf32> to vector<16x40xf32>
    %cst_57 = arith.constant dense<0.000000e+00> : vector<16x256xf32>
    %100 = tpu.matmul %99, %97, %cst_57 {dimension_numbers = #tpu.dot_dimension_numbers<[1], [0], [0], [1], [0, 0, 1, 1], [], []>} : vector<16x40xf32>, vector<40x256xf32>, vector<16x256xf32> -> vector<16x256xf32>
    %101 = arith.addf %76, %100 : vector<16x256xf32>
    %c114_i32 = arith.constant 114 : i32
    %102 = tpu.dynamic_rotate %0 by %c114_i32 dim 1 : vector<8x256xf32>, i32 -> vector<8x256xf32>
    %c20 = arith.constant 20 : index
    %c0_58 = arith.constant 0 : index
    %c0_59 = arith.constant 0 : index
    %103 = vector.load %arg2[%c20, %c0_58, %c0_59] : memref<125x8x256xf32, #tpu.memory_space<vmem>>, vector<1x8x256xf32>
    %104 = vector.shape_cast %103 : vector<1x8x256xf32> to vector<8x256xf32>
    %105 = arith.mulf %102, %104 : vector<8x256xf32>
    %c113_i32 = arith.constant 113 : i32
    %106 = tpu.dynamic_rotate %0 by %c113_i32 dim 1 : vector<8x256xf32>, i32 -> vector<8x256xf32>
    %c21 = arith.constant 21 : index
    %c0_60 = arith.constant 0 : index
    %c0_61 = arith.constant 0 : index
    %107 = vector.load %arg2[%c21, %c0_60, %c0_61] : memref<125x8x256xf32, #tpu.memory_space<vmem>>, vector<1x8x256xf32>
    %108 = vector.shape_cast %107 : vector<1x8x256xf32> to vector<8x256xf32>
    %109 = arith.mulf %106, %108 : vector<8x256xf32>
    %c112_i32 = arith.constant 112 : i32
    %110 = tpu.dynamic_rotate %0 by %c112_i32 dim 1 : vector<8x256xf32>, i32 -> vector<8x256xf32>
    %c22 = arith.constant 22 : index
    %c0_62 = arith.constant 0 : index
    %c0_63 = arith.constant 0 : index
    %111 = vector.load %arg2[%c22, %c0_62, %c0_63] : memref<125x8x256xf32, #tpu.memory_space<vmem>>, vector<1x8x256xf32>
    %112 = vector.shape_cast %111 : vector<1x8x256xf32> to vector<8x256xf32>
    %113 = arith.mulf %110, %112 : vector<8x256xf32>
    %c111_i32 = arith.constant 111 : i32
    %114 = tpu.dynamic_rotate %0 by %c111_i32 dim 1 : vector<8x256xf32>, i32 -> vector<8x256xf32>
    %c23 = arith.constant 23 : index
    %c0_64 = arith.constant 0 : index
    %c0_65 = arith.constant 0 : index
    %115 = vector.load %arg2[%c23, %c0_64, %c0_65] : memref<125x8x256xf32, #tpu.memory_space<vmem>>, vector<1x8x256xf32>
    %116 = vector.shape_cast %115 : vector<1x8x256xf32> to vector<8x256xf32>
    %117 = arith.mulf %114, %116 : vector<8x256xf32>
    %c110_i32 = arith.constant 110 : i32
    %118 = tpu.dynamic_rotate %0 by %c110_i32 dim 1 : vector<8x256xf32>, i32 -> vector<8x256xf32>
    %c24 = arith.constant 24 : index
    %c0_66 = arith.constant 0 : index
    %c0_67 = arith.constant 0 : index
    %119 = vector.load %arg2[%c24, %c0_66, %c0_67] : memref<125x8x256xf32, #tpu.memory_space<vmem>>, vector<1x8x256xf32>
    %120 = vector.shape_cast %119 : vector<1x8x256xf32> to vector<8x256xf32>
    %121 = arith.mulf %118, %120 : vector<8x256xf32>
    %122 = tpu.concatenate %105, %109, %113, %117, %121 in 0 : vector<8x256xf32>, vector<8x256xf32>, vector<8x256xf32>, vector<8x256xf32>, vector<8x256xf32> -> vector<40x256xf32>
    %c4_68 = arith.constant 4 : index
    %c0_69 = arith.constant 0 : index
    %c0_70 = arith.constant 0 : index
    %123 = vector.load %arg3[%c4_68, %c0_69, %c0_70] : memref<25x16x40xf32, #tpu.memory_space<vmem>>, vector<1x16x40xf32>
    %124 = vector.shape_cast %123 : vector<1x16x40xf32> to vector<16x40xf32>
    %cst_71 = arith.constant dense<0.000000e+00> : vector<16x256xf32>
    %125 = tpu.matmul %124, %122, %cst_71 {dimension_numbers = #tpu.dot_dimension_numbers<[1], [0], [0], [1], [0, 0, 1, 1], [], []>} : vector<16x40xf32>, vector<40x256xf32>, vector<16x256xf32> -> vector<16x256xf32>
    %126 = arith.addf %101, %125 : vector<16x256xf32>
    %c82_i32 = arith.constant 82 : i32
    %127 = tpu.dynamic_rotate %0 by %c82_i32 dim 1 : vector<8x256xf32>, i32 -> vector<8x256xf32>
    %c25 = arith.constant 25 : index
    %c0_72 = arith.constant 0 : index
    %c0_73 = arith.constant 0 : index
    %128 = vector.load %arg2[%c25, %c0_72, %c0_73] : memref<125x8x256xf32, #tpu.memory_space<vmem>>, vector<1x8x256xf32>
    %129 = vector.shape_cast %128 : vector<1x8x256xf32> to vector<8x256xf32>
    %130 = arith.mulf %127, %129 : vector<8x256xf32>
    %c81_i32 = arith.constant 81 : i32
    %131 = tpu.dynamic_rotate %0 by %c81_i32 dim 1 : vector<8x256xf32>, i32 -> vector<8x256xf32>
    %c26 = arith.constant 26 : index
    %c0_74 = arith.constant 0 : index
    %c0_75 = arith.constant 0 : index
    %132 = vector.load %arg2[%c26, %c0_74, %c0_75] : memref<125x8x256xf32, #tpu.memory_space<vmem>>, vector<1x8x256xf32>
    %133 = vector.shape_cast %132 : vector<1x8x256xf32> to vector<8x256xf32>
    %134 = arith.mulf %131, %133 : vector<8x256xf32>
    %c80_i32 = arith.constant 80 : i32
    %135 = tpu.dynamic_rotate %0 by %c80_i32 dim 1 : vector<8x256xf32>, i32 -> vector<8x256xf32>
    %c27 = arith.constant 27 : index
    %c0_76 = arith.constant 0 : index
    %c0_77 = arith.constant 0 : index
    %136 = vector.load %arg2[%c27, %c0_76, %c0_77] : memref<125x8x256xf32, #tpu.memory_space<vmem>>, vector<1x8x256xf32>
    %137 = vector.shape_cast %136 : vector<1x8x256xf32> to vector<8x256xf32>
    %138 = arith.mulf %135, %137 : vector<8x256xf32>
    %c79_i32 = arith.constant 79 : i32
    %139 = tpu.dynamic_rotate %0 by %c79_i32 dim 1 : vector<8x256xf32>, i32 -> vector<8x256xf32>
    %c28 = arith.constant 28 : index
    %c0_78 = arith.constant 0 : index
    %c0_79 = arith.constant 0 : index
    %140 = vector.load %arg2[%c28, %c0_78, %c0_79] : memref<125x8x256xf32, #tpu.memory_space<vmem>>, vector<1x8x256xf32>
    %141 = vector.shape_cast %140 : vector<1x8x256xf32> to vector<8x256xf32>
    %142 = arith.mulf %139, %141 : vector<8x256xf32>
    %c78_i32 = arith.constant 78 : i32
    %143 = tpu.dynamic_rotate %0 by %c78_i32 dim 1 : vector<8x256xf32>, i32 -> vector<8x256xf32>
    %c29 = arith.constant 29 : index
    %c0_80 = arith.constant 0 : index
    %c0_81 = arith.constant 0 : index
    %144 = vector.load %arg2[%c29, %c0_80, %c0_81] : memref<125x8x256xf32, #tpu.memory_space<vmem>>, vector<1x8x256xf32>
    %145 = vector.shape_cast %144 : vector<1x8x256xf32> to vector<8x256xf32>
    %146 = arith.mulf %143, %145 : vector<8x256xf32>
    %147 = tpu.concatenate %130, %134, %138, %142, %146 in 0 : vector<8x256xf32>, vector<8x256xf32>, vector<8x256xf32>, vector<8x256xf32>, vector<8x256xf32> -> vector<40x256xf32>
    %c5_82 = arith.constant 5 : index
    %c0_83 = arith.constant 0 : index
    %c0_84 = arith.constant 0 : index
    %148 = vector.load %arg3[%c5_82, %c0_83, %c0_84] : memref<25x16x40xf32, #tpu.memory_space<vmem>>, vector<1x16x40xf32>
    %149 = vector.shape_cast %148 : vector<1x16x40xf32> to vector<16x40xf32>
    %cst_85 = arith.constant dense<0.000000e+00> : vector<16x256xf32>
    %150 = tpu.matmul %149, %147, %cst_85 {dimension_numbers = #tpu.dot_dimension_numbers<[1], [0], [0], [1], [0, 0, 1, 1], [], []>} : vector<16x40xf32>, vector<40x256xf32>, vector<16x256xf32> -> vector<16x256xf32>
    %151 = arith.addf %126, %150 : vector<16x256xf32>
    %c74_i32 = arith.constant 74 : i32
    %152 = tpu.dynamic_rotate %0 by %c74_i32 dim 1 : vector<8x256xf32>, i32 -> vector<8x256xf32>
    %c30 = arith.constant 30 : index
    %c0_86 = arith.constant 0 : index
    %c0_87 = arith.constant 0 : index
    %153 = vector.load %arg2[%c30, %c0_86, %c0_87] : memref<125x8x256xf32, #tpu.memory_space<vmem>>, vector<1x8x256xf32>
    %154 = vector.shape_cast %153 : vector<1x8x256xf32> to vector<8x256xf32>
    %155 = arith.mulf %152, %154 : vector<8x256xf32>
    %c73_i32 = arith.constant 73 : i32
    %156 = tpu.dynamic_rotate %0 by %c73_i32 dim 1 : vector<8x256xf32>, i32 -> vector<8x256xf32>
    %c31 = arith.constant 31 : index
    %c0_88 = arith.constant 0 : index
    %c0_89 = arith.constant 0 : index
    %157 = vector.load %arg2[%c31, %c0_88, %c0_89] : memref<125x8x256xf32, #tpu.memory_space<vmem>>, vector<1x8x256xf32>
    %158 = vector.shape_cast %157 : vector<1x8x256xf32> to vector<8x256xf32>
    %159 = arith.mulf %156, %158 : vector<8x256xf32>
    %c72_i32 = arith.constant 72 : i32
    %160 = tpu.dynamic_rotate %0 by %c72_i32 dim 1 : vector<8x256xf32>, i32 -> vector<8x256xf32>
    %c32 = arith.constant 32 : index
    %c0_90 = arith.constant 0 : index
    %c0_91 = arith.constant 0 : index
    %161 = vector.load %arg2[%c32, %c0_90, %c0_91] : memref<125x8x256xf32, #tpu.memory_space<vmem>>, vector<1x8x256xf32>
    %162 = vector.shape_cast %161 : vector<1x8x256xf32> to vector<8x256xf32>
    %163 = arith.mulf %160, %162 : vector<8x256xf32>
    %c71_i32 = arith.constant 71 : i32
    %164 = tpu.dynamic_rotate %0 by %c71_i32 dim 1 : vector<8x256xf32>, i32 -> vector<8x256xf32>
    %c33 = arith.constant 33 : index
    %c0_92 = arith.constant 0 : index
    %c0_93 = arith.constant 0 : index
    %165 = vector.load %arg2[%c33, %c0_92, %c0_93] : memref<125x8x256xf32, #tpu.memory_space<vmem>>, vector<1x8x256xf32>
    %166 = vector.shape_cast %165 : vector<1x8x256xf32> to vector<8x256xf32>
    %167 = arith.mulf %164, %166 : vector<8x256xf32>
    %c70_i32 = arith.constant 70 : i32
    %168 = tpu.dynamic_rotate %0 by %c70_i32 dim 1 : vector<8x256xf32>, i32 -> vector<8x256xf32>
    %c34 = arith.constant 34 : index
    %c0_94 = arith.constant 0 : index
    %c0_95 = arith.constant 0 : index
    %169 = vector.load %arg2[%c34, %c0_94, %c0_95] : memref<125x8x256xf32, #tpu.memory_space<vmem>>, vector<1x8x256xf32>
    %170 = vector.shape_cast %169 : vector<1x8x256xf32> to vector<8x256xf32>
    %171 = arith.mulf %168, %170 : vector<8x256xf32>
    %172 = tpu.concatenate %155, %159, %163, %167, %171 in 0 : vector<8x256xf32>, vector<8x256xf32>, vector<8x256xf32>, vector<8x256xf32>, vector<8x256xf32> -> vector<40x256xf32>
    %c6_96 = arith.constant 6 : index
    %c0_97 = arith.constant 0 : index
    %c0_98 = arith.constant 0 : index
    %173 = vector.load %arg3[%c6_96, %c0_97, %c0_98] : memref<25x16x40xf32, #tpu.memory_space<vmem>>, vector<1x16x40xf32>
    %174 = vector.shape_cast %173 : vector<1x16x40xf32> to vector<16x40xf32>
    %cst_99 = arith.constant dense<0.000000e+00> : vector<16x256xf32>
    %175 = tpu.matmul %174, %172, %cst_99 {dimension_numbers = #tpu.dot_dimension_numbers<[1], [0], [0], [1], [0, 0, 1, 1], [], []>} : vector<16x40xf32>, vector<40x256xf32>, vector<16x256xf32> -> vector<16x256xf32>
    %176 = arith.addf %151, %175 : vector<16x256xf32>
    %c66_i32 = arith.constant 66 : i32
    %177 = tpu.dynamic_rotate %0 by %c66_i32 dim 1 : vector<8x256xf32>, i32 -> vector<8x256xf32>
    %c35 = arith.constant 35 : index
    %c0_100 = arith.constant 0 : index
    %c0_101 = arith.constant 0 : index
    %178 = vector.load %arg2[%c35, %c0_100, %c0_101] : memref<125x8x256xf32, #tpu.memory_space<vmem>>, vector<1x8x256xf32>
    %179 = vector.shape_cast %178 : vector<1x8x256xf32> to vector<8x256xf32>
    %180 = arith.mulf %177, %179 : vector<8x256xf32>
    %c65_i32 = arith.constant 65 : i32
    %181 = tpu.dynamic_rotate %0 by %c65_i32 dim 1 : vector<8x256xf32>, i32 -> vector<8x256xf32>
    %c36 = arith.constant 36 : index
    %c0_102 = arith.constant 0 : index
    %c0_103 = arith.constant 0 : index
    %182 = vector.load %arg2[%c36, %c0_102, %c0_103] : memref<125x8x256xf32, #tpu.memory_space<vmem>>, vector<1x8x256xf32>
    %183 = vector.shape_cast %182 : vector<1x8x256xf32> to vector<8x256xf32>
    %184 = arith.mulf %181, %183 : vector<8x256xf32>
    %c64_i32 = arith.constant 64 : i32
    %185 = tpu.dynamic_rotate %0 by %c64_i32 dim 1 : vector<8x256xf32>, i32 -> vector<8x256xf32>
    %c37 = arith.constant 37 : index
    %c0_104 = arith.constant 0 : index
    %c0_105 = arith.constant 0 : index
    %186 = vector.load %arg2[%c37, %c0_104, %c0_105] : memref<125x8x256xf32, #tpu.memory_space<vmem>>, vector<1x8x256xf32>
    %187 = vector.shape_cast %186 : vector<1x8x256xf32> to vector<8x256xf32>
    %188 = arith.mulf %185, %187 : vector<8x256xf32>
    %c63_i32 = arith.constant 63 : i32
    %189 = tpu.dynamic_rotate %0 by %c63_i32 dim 1 : vector<8x256xf32>, i32 -> vector<8x256xf32>
    %c38 = arith.constant 38 : index
    %c0_106 = arith.constant 0 : index
    %c0_107 = arith.constant 0 : index
    %190 = vector.load %arg2[%c38, %c0_106, %c0_107] : memref<125x8x256xf32, #tpu.memory_space<vmem>>, vector<1x8x256xf32>
    %191 = vector.shape_cast %190 : vector<1x8x256xf32> to vector<8x256xf32>
    %192 = arith.mulf %189, %191 : vector<8x256xf32>
    %c62_i32 = arith.constant 62 : i32
    %193 = tpu.dynamic_rotate %0 by %c62_i32 dim 1 : vector<8x256xf32>, i32 -> vector<8x256xf32>
    %c39 = arith.constant 39 : index
    %c0_108 = arith.constant 0 : index
    %c0_109 = arith.constant 0 : index
    %194 = vector.load %arg2[%c39, %c0_108, %c0_109] : memref<125x8x256xf32, #tpu.memory_space<vmem>>, vector<1x8x256xf32>
    %195 = vector.shape_cast %194 : vector<1x8x256xf32> to vector<8x256xf32>
    %196 = arith.mulf %193, %195 : vector<8x256xf32>
    %197 = tpu.concatenate %180, %184, %188, %192, %196 in 0 : vector<8x256xf32>, vector<8x256xf32>, vector<8x256xf32>, vector<8x256xf32>, vector<8x256xf32> -> vector<40x256xf32>
    %c7_110 = arith.constant 7 : index
    %c0_111 = arith.constant 0 : index
    %c0_112 = arith.constant 0 : index
    %198 = vector.load %arg3[%c7_110, %c0_111, %c0_112] : memref<25x16x40xf32, #tpu.memory_space<vmem>>, vector<1x16x40xf32>
    %199 = vector.shape_cast %198 : vector<1x16x40xf32> to vector<16x40xf32>
    %cst_113 = arith.constant dense<0.000000e+00> : vector<16x256xf32>
    %200 = tpu.matmul %199, %197, %cst_113 {dimension_numbers = #tpu.dot_dimension_numbers<[1], [0], [0], [1], [0, 0, 1, 1], [], []>} : vector<16x40xf32>, vector<40x256xf32>, vector<16x256xf32> -> vector<16x256xf32>
    %201 = arith.addf %176, %200 : vector<16x256xf32>
    %c58_i32 = arith.constant 58 : i32
    %202 = tpu.dynamic_rotate %0 by %c58_i32 dim 1 : vector<8x256xf32>, i32 -> vector<8x256xf32>
    %c40 = arith.constant 40 : index
    %c0_114 = arith.constant 0 : index
    %c0_115 = arith.constant 0 : index
    %203 = vector.load %arg2[%c40, %c0_114, %c0_115] : memref<125x8x256xf32, #tpu.memory_space<vmem>>, vector<1x8x256xf32>
    %204 = vector.shape_cast %203 : vector<1x8x256xf32> to vector<8x256xf32>
    %205 = arith.mulf %202, %204 : vector<8x256xf32>
    %c57_i32 = arith.constant 57 : i32
    %206 = tpu.dynamic_rotate %0 by %c57_i32 dim 1 : vector<8x256xf32>, i32 -> vector<8x256xf32>
    %c41 = arith.constant 41 : index
    %c0_116 = arith.constant 0 : index
    %c0_117 = arith.constant 0 : index
    %207 = vector.load %arg2[%c41, %c0_116, %c0_117] : memref<125x8x256xf32, #tpu.memory_space<vmem>>, vector<1x8x256xf32>
    %208 = vector.shape_cast %207 : vector<1x8x256xf32> to vector<8x256xf32>
    %209 = arith.mulf %206, %208 : vector<8x256xf32>
    %c56_i32 = arith.constant 56 : i32
    %210 = tpu.dynamic_rotate %0 by %c56_i32 dim 1 : vector<8x256xf32>, i32 -> vector<8x256xf32>
    %c42 = arith.constant 42 : index
    %c0_118 = arith.constant 0 : index
    %c0_119 = arith.constant 0 : index
    %211 = vector.load %arg2[%c42, %c0_118, %c0_119] : memref<125x8x256xf32, #tpu.memory_space<vmem>>, vector<1x8x256xf32>
    %212 = vector.shape_cast %211 : vector<1x8x256xf32> to vector<8x256xf32>
    %213 = arith.mulf %210, %212 : vector<8x256xf32>
    %c55_i32 = arith.constant 55 : i32
    %214 = tpu.dynamic_rotate %0 by %c55_i32 dim 1 : vector<8x256xf32>, i32 -> vector<8x256xf32>
    %c43 = arith.constant 43 : index
    %c0_120 = arith.constant 0 : index
    %c0_121 = arith.constant 0 : index
    %215 = vector.load %arg2[%c43, %c0_120, %c0_121] : memref<125x8x256xf32, #tpu.memory_space<vmem>>, vector<1x8x256xf32>
    %216 = vector.shape_cast %215 : vector<1x8x256xf32> to vector<8x256xf32>
    %217 = arith.mulf %214, %216 : vector<8x256xf32>
    %c54_i32 = arith.constant 54 : i32
    %218 = tpu.dynamic_rotate %0 by %c54_i32 dim 1 : vector<8x256xf32>, i32 -> vector<8x256xf32>
    %c44 = arith.constant 44 : index
    %c0_122 = arith.constant 0 : index
    %c0_123 = arith.constant 0 : index
    %219 = vector.load %arg2[%c44, %c0_122, %c0_123] : memref<125x8x256xf32, #tpu.memory_space<vmem>>, vector<1x8x256xf32>
    %220 = vector.shape_cast %219 : vector<1x8x256xf32> to vector<8x256xf32>
    %221 = arith.mulf %218, %220 : vector<8x256xf32>
    %222 = tpu.concatenate %205, %209, %213, %217, %221 in 0 : vector<8x256xf32>, vector<8x256xf32>, vector<8x256xf32>, vector<8x256xf32>, vector<8x256xf32> -> vector<40x256xf32>
    %c8_124 = arith.constant 8 : index
    %c0_125 = arith.constant 0 : index
    %c0_126 = arith.constant 0 : index
    %223 = vector.load %arg3[%c8_124, %c0_125, %c0_126] : memref<25x16x40xf32, #tpu.memory_space<vmem>>, vector<1x16x40xf32>
    %224 = vector.shape_cast %223 : vector<1x16x40xf32> to vector<16x40xf32>
    %cst_127 = arith.constant dense<0.000000e+00> : vector<16x256xf32>
    %225 = tpu.matmul %224, %222, %cst_127 {dimension_numbers = #tpu.dot_dimension_numbers<[1], [0], [0], [1], [0, 0, 1, 1], [], []>} : vector<16x40xf32>, vector<40x256xf32>, vector<16x256xf32> -> vector<16x256xf32>
    %226 = arith.addf %201, %225 : vector<16x256xf32>
    %c50_i32 = arith.constant 50 : i32
    %227 = tpu.dynamic_rotate %0 by %c50_i32 dim 1 : vector<8x256xf32>, i32 -> vector<8x256xf32>
    %c45 = arith.constant 45 : index
    %c0_128 = arith.constant 0 : index
    %c0_129 = arith.constant 0 : index
    %228 = vector.load %arg2[%c45, %c0_128, %c0_129] : memref<125x8x256xf32, #tpu.memory_space<vmem>>, vector<1x8x256xf32>
    %229 = vector.shape_cast %228 : vector<1x8x256xf32> to vector<8x256xf32>
    %230 = arith.mulf %227, %229 : vector<8x256xf32>
    %c49_i32 = arith.constant 49 : i32
    %231 = tpu.dynamic_rotate %0 by %c49_i32 dim 1 : vector<8x256xf32>, i32 -> vector<8x256xf32>
    %c46 = arith.constant 46 : index
    %c0_130 = arith.constant 0 : index
    %c0_131 = arith.constant 0 : index
    %232 = vector.load %arg2[%c46, %c0_130, %c0_131] : memref<125x8x256xf32, #tpu.memory_space<vmem>>, vector<1x8x256xf32>
    %233 = vector.shape_cast %232 : vector<1x8x256xf32> to vector<8x256xf32>
    %234 = arith.mulf %231, %233 : vector<8x256xf32>
    %c48_i32 = arith.constant 48 : i32
    %235 = tpu.dynamic_rotate %0 by %c48_i32 dim 1 : vector<8x256xf32>, i32 -> vector<8x256xf32>
    %c47 = arith.constant 47 : index
    %c0_132 = arith.constant 0 : index
    %c0_133 = arith.constant 0 : index
    %236 = vector.load %arg2[%c47, %c0_132, %c0_133] : memref<125x8x256xf32, #tpu.memory_space<vmem>>, vector<1x8x256xf32>
    %237 = vector.shape_cast %236 : vector<1x8x256xf32> to vector<8x256xf32>
    %238 = arith.mulf %235, %237 : vector<8x256xf32>
    %c47_i32 = arith.constant 47 : i32
    %239 = tpu.dynamic_rotate %0 by %c47_i32 dim 1 : vector<8x256xf32>, i32 -> vector<8x256xf32>
    %c48 = arith.constant 48 : index
    %c0_134 = arith.constant 0 : index
    %c0_135 = arith.constant 0 : index
    %240 = vector.load %arg2[%c48, %c0_134, %c0_135] : memref<125x8x256xf32, #tpu.memory_space<vmem>>, vector<1x8x256xf32>
    %241 = vector.shape_cast %240 : vector<1x8x256xf32> to vector<8x256xf32>
    %242 = arith.mulf %239, %241 : vector<8x256xf32>
    %c46_i32 = arith.constant 46 : i32
    %243 = tpu.dynamic_rotate %0 by %c46_i32 dim 1 : vector<8x256xf32>, i32 -> vector<8x256xf32>
    %c49 = arith.constant 49 : index
    %c0_136 = arith.constant 0 : index
    %c0_137 = arith.constant 0 : index
    %244 = vector.load %arg2[%c49, %c0_136, %c0_137] : memref<125x8x256xf32, #tpu.memory_space<vmem>>, vector<1x8x256xf32>
    %245 = vector.shape_cast %244 : vector<1x8x256xf32> to vector<8x256xf32>
    %246 = arith.mulf %243, %245 : vector<8x256xf32>
    %247 = tpu.concatenate %230, %234, %238, %242, %246 in 0 : vector<8x256xf32>, vector<8x256xf32>, vector<8x256xf32>, vector<8x256xf32>, vector<8x256xf32> -> vector<40x256xf32>
    %c9_138 = arith.constant 9 : index
    %c0_139 = arith.constant 0 : index
    %c0_140 = arith.constant 0 : index
    %248 = vector.load %arg3[%c9_138, %c0_139, %c0_140] : memref<25x16x40xf32, #tpu.memory_space<vmem>>, vector<1x16x40xf32>
    %249 = vector.shape_cast %248 : vector<1x16x40xf32> to vector<16x40xf32>
    %cst_141 = arith.constant dense<0.000000e+00> : vector<16x256xf32>
    %250 = tpu.matmul %249, %247, %cst_141 {dimension_numbers = #tpu.dot_dimension_numbers<[1], [0], [0], [1], [0, 0, 1, 1], [], []>} : vector<16x40xf32>, vector<40x256xf32>, vector<16x256xf32> -> vector<16x256xf32>
    %251 = arith.addf %226, %250 : vector<16x256xf32>
    %c18_i32 = arith.constant 18 : i32
    %252 = tpu.dynamic_rotate %0 by %c18_i32 dim 1 : vector<8x256xf32>, i32 -> vector<8x256xf32>
    %c50 = arith.constant 50 : index
    %c0_142 = arith.constant 0 : index
    %c0_143 = arith.constant 0 : index
    %253 = vector.load %arg2[%c50, %c0_142, %c0_143] : memref<125x8x256xf32, #tpu.memory_space<vmem>>, vector<1x8x256xf32>
    %254 = vector.shape_cast %253 : vector<1x8x256xf32> to vector<8x256xf32>
    %255 = arith.mulf %252, %254 : vector<8x256xf32>
    %c17_i32 = arith.constant 17 : i32
    %256 = tpu.dynamic_rotate %0 by %c17_i32 dim 1 : vector<8x256xf32>, i32 -> vector<8x256xf32>
    %c51 = arith.constant 51 : index
    %c0_144 = arith.constant 0 : index
    %c0_145 = arith.constant 0 : index
    %257 = vector.load %arg2[%c51, %c0_144, %c0_145] : memref<125x8x256xf32, #tpu.memory_space<vmem>>, vector<1x8x256xf32>
    %258 = vector.shape_cast %257 : vector<1x8x256xf32> to vector<8x256xf32>
    %259 = arith.mulf %256, %258 : vector<8x256xf32>
    %c16_i32 = arith.constant 16 : i32
    %260 = tpu.dynamic_rotate %0 by %c16_i32 dim 1 : vector<8x256xf32>, i32 -> vector<8x256xf32>
    %c52 = arith.constant 52 : index
    %c0_146 = arith.constant 0 : index
    %c0_147 = arith.constant 0 : index
    %261 = vector.load %arg2[%c52, %c0_146, %c0_147] : memref<125x8x256xf32, #tpu.memory_space<vmem>>, vector<1x8x256xf32>
    %262 = vector.shape_cast %261 : vector<1x8x256xf32> to vector<8x256xf32>
    %263 = arith.mulf %260, %262 : vector<8x256xf32>
    %c15_i32 = arith.constant 15 : i32
    %264 = tpu.dynamic_rotate %0 by %c15_i32 dim 1 : vector<8x256xf32>, i32 -> vector<8x256xf32>
    %c53 = arith.constant 53 : index
    %c0_148 = arith.constant 0 : index
    %c0_149 = arith.constant 0 : index
    %265 = vector.load %arg2[%c53, %c0_148, %c0_149] : memref<125x8x256xf32, #tpu.memory_space<vmem>>, vector<1x8x256xf32>
    %266 = vector.shape_cast %265 : vector<1x8x256xf32> to vector<8x256xf32>
    %267 = arith.mulf %264, %266 : vector<8x256xf32>
    %c14_i32 = arith.constant 14 : i32
    %268 = tpu.dynamic_rotate %0 by %c14_i32 dim 1 : vector<8x256xf32>, i32 -> vector<8x256xf32>
    %c54 = arith.constant 54 : index
    %c0_150 = arith.constant 0 : index
    %c0_151 = arith.constant 0 : index
    %269 = vector.load %arg2[%c54, %c0_150, %c0_151] : memref<125x8x256xf32, #tpu.memory_space<vmem>>, vector<1x8x256xf32>
    %270 = vector.shape_cast %269 : vector<1x8x256xf32> to vector<8x256xf32>
    %271 = arith.mulf %268, %270 : vector<8x256xf32>
    %272 = tpu.concatenate %255, %259, %263, %267, %271 in 0 : vector<8x256xf32>, vector<8x256xf32>, vector<8x256xf32>, vector<8x256xf32>, vector<8x256xf32> -> vector<40x256xf32>
    %c10_152 = arith.constant 10 : index
    %c0_153 = arith.constant 0 : index
    %c0_154 = arith.constant 0 : index
    %273 = vector.load %arg3[%c10_152, %c0_153, %c0_154] : memref<25x16x40xf32, #tpu.memory_space<vmem>>, vector<1x16x40xf32>
    %274 = vector.shape_cast %273 : vector<1x16x40xf32> to vector<16x40xf32>
    %cst_155 = arith.constant dense<0.000000e+00> : vector<16x256xf32>
    %275 = tpu.matmul %274, %272, %cst_155 {dimension_numbers = #tpu.dot_dimension_numbers<[1], [0], [0], [1], [0, 0, 1, 1], [], []>} : vector<16x40xf32>, vector<40x256xf32>, vector<16x256xf32> -> vector<16x256xf32>
    %276 = arith.addf %251, %275 : vector<16x256xf32>
    %c10_i32 = arith.constant 10 : i32
    %277 = tpu.dynamic_rotate %0 by %c10_i32 dim 1 : vector<8x256xf32>, i32 -> vector<8x256xf32>
    %c55 = arith.constant 55 : index
    %c0_156 = arith.constant 0 : index
    %c0_157 = arith.constant 0 : index
    %278 = vector.load %arg2[%c55, %c0_156, %c0_157] : memref<125x8x256xf32, #tpu.memory_space<vmem>>, vector<1x8x256xf32>
    %279 = vector.shape_cast %278 : vector<1x8x256xf32> to vector<8x256xf32>
    %280 = arith.mulf %277, %279 : vector<8x256xf32>
    %c9_i32 = arith.constant 9 : i32
    %281 = tpu.dynamic_rotate %0 by %c9_i32 dim 1 : vector<8x256xf32>, i32 -> vector<8x256xf32>
    %c56 = arith.constant 56 : index
    %c0_158 = arith.constant 0 : index
    %c0_159 = arith.constant 0 : index
    %282 = vector.load %arg2[%c56, %c0_158, %c0_159] : memref<125x8x256xf32, #tpu.memory_space<vmem>>, vector<1x8x256xf32>
    %283 = vector.shape_cast %282 : vector<1x8x256xf32> to vector<8x256xf32>
    %284 = arith.mulf %281, %283 : vector<8x256xf32>
    %c8_i32 = arith.constant 8 : i32
    %285 = tpu.dynamic_rotate %0 by %c8_i32 dim 1 : vector<8x256xf32>, i32 -> vector<8x256xf32>
    %c57 = arith.constant 57 : index
    %c0_160 = arith.constant 0 : index
    %c0_161 = arith.constant 0 : index
    %286 = vector.load %arg2[%c57, %c0_160, %c0_161] : memref<125x8x256xf32, #tpu.memory_space<vmem>>, vector<1x8x256xf32>
    %287 = vector.shape_cast %286 : vector<1x8x256xf32> to vector<8x256xf32>
    %288 = arith.mulf %285, %287 : vector<8x256xf32>
    %c7_i32 = arith.constant 7 : i32
    %289 = tpu.dynamic_rotate %0 by %c7_i32 dim 1 : vector<8x256xf32>, i32 -> vector<8x256xf32>
    %c58 = arith.constant 58 : index
    %c0_162 = arith.constant 0 : index
    %c0_163 = arith.constant 0 : index
    %290 = vector.load %arg2[%c58, %c0_162, %c0_163] : memref<125x8x256xf32, #tpu.memory_space<vmem>>, vector<1x8x256xf32>
    %291 = vector.shape_cast %290 : vector<1x8x256xf32> to vector<8x256xf32>
    %292 = arith.mulf %289, %291 : vector<8x256xf32>
    %c6_i32 = arith.constant 6 : i32
    %293 = tpu.dynamic_rotate %0 by %c6_i32 dim 1 : vector<8x256xf32>, i32 -> vector<8x256xf32>
    %c59 = arith.constant 59 : index
    %c0_164 = arith.constant 0 : index
    %c0_165 = arith.constant 0 : index
    %294 = vector.load %arg2[%c59, %c0_164, %c0_165] : memref<125x8x256xf32, #tpu.memory_space<vmem>>, vector<1x8x256xf32>
    %295 = vector.shape_cast %294 : vector<1x8x256xf32> to vector<8x256xf32>
    %296 = arith.mulf %293, %295 : vector<8x256xf32>
    %297 = tpu.concatenate %280, %284, %288, %292, %296 in 0 : vector<8x256xf32>, vector<8x256xf32>, vector<8x256xf32>, vector<8x256xf32>, vector<8x256xf32> -> vector<40x256xf32>
    %c11_166 = arith.constant 11 : index
    %c0_167 = arith.constant 0 : index
    %c0_168 = arith.constant 0 : index
    %298 = vector.load %arg3[%c11_166, %c0_167, %c0_168] : memref<25x16x40xf32, #tpu.memory_space<vmem>>, vector<1x16x40xf32>
    %299 = vector.shape_cast %298 : vector<1x16x40xf32> to vector<16x40xf32>
    %cst_169 = arith.constant dense<0.000000e+00> : vector<16x256xf32>
    %300 = tpu.matmul %299, %297, %cst_169 {dimension_numbers = #tpu.dot_dimension_numbers<[1], [0], [0], [1], [0, 0, 1, 1], [], []>} : vector<16x40xf32>, vector<40x256xf32>, vector<16x256xf32> -> vector<16x256xf32>
    %301 = arith.addf %276, %300 : vector<16x256xf32>
    %c2_i32 = arith.constant 2 : i32
    %302 = tpu.dynamic_rotate %0 by %c2_i32 dim 1 : vector<8x256xf32>, i32 -> vector<8x256xf32>
    %c60 = arith.constant 60 : index
    %c0_170 = arith.constant 0 : index
    %c0_171 = arith.constant 0 : index
    %303 = vector.load %arg2[%c60, %c0_170, %c0_171] : memref<125x8x256xf32, #tpu.memory_space<vmem>>, vector<1x8x256xf32>
    %304 = vector.shape_cast %303 : vector<1x8x256xf32> to vector<8x256xf32>
    %305 = arith.mulf %302, %304 : vector<8x256xf32>
    %c1_i32 = arith.constant 1 : i32
    %306 = tpu.dynamic_rotate %0 by %c1_i32 dim 1 : vector<8x256xf32>, i32 -> vector<8x256xf32>
    %c61 = arith.constant 61 : index
    %c0_172 = arith.constant 0 : index
    %c0_173 = arith.constant 0 : index
    %307 = vector.load %arg2[%c61, %c0_172, %c0_173] : memref<125x8x256xf32, #tpu.memory_space<vmem>>, vector<1x8x256xf32>
    %308 = vector.shape_cast %307 : vector<1x8x256xf32> to vector<8x256xf32>
    %309 = arith.mulf %306, %308 : vector<8x256xf32>
    %c62 = arith.constant 62 : index
    %c0_174 = arith.constant 0 : index
    %c0_175 = arith.constant 0 : index
    %310 = vector.load %arg2[%c62, %c0_174, %c0_175] : memref<125x8x256xf32, #tpu.memory_space<vmem>>, vector<1x8x256xf32>
    %311 = vector.shape_cast %310 : vector<1x8x256xf32> to vector<8x256xf32>
    %312 = arith.mulf %0, %311 : vector<8x256xf32>
    %c255_i32 = arith.constant 255 : i32
    %313 = tpu.dynamic_rotate %0 by %c255_i32 dim 1 : vector<8x256xf32>, i32 -> vector<8x256xf32>
    %c63 = arith.constant 63 : index
    %c0_176 = arith.constant 0 : index
    %c0_177 = arith.constant 0 : index
    %314 = vector.load %arg2[%c63, %c0_176, %c0_177] : memref<125x8x256xf32, #tpu.memory_space<vmem>>, vector<1x8x256xf32>
    %315 = vector.shape_cast %314 : vector<1x8x256xf32> to vector<8x256xf32>
    %316 = arith.mulf %313, %315 : vector<8x256xf32>
    %c254_i32 = arith.constant 254 : i32
    %317 = tpu.dynamic_rotate %0 by %c254_i32 dim 1 : vector<8x256xf32>, i32 -> vector<8x256xf32>
    %c64 = arith.constant 64 : index
    %c0_178 = arith.constant 0 : index
    %c0_179 = arith.constant 0 : index
    %318 = vector.load %arg2[%c64, %c0_178, %c0_179] : memref<125x8x256xf32, #tpu.memory_space<vmem>>, vector<1x8x256xf32>
    %319 = vector.shape_cast %318 : vector<1x8x256xf32> to vector<8x256xf32>
    %320 = arith.mulf %317, %319 : vector<8x256xf32>
    %321 = tpu.concatenate %305, %309, %312, %316, %320 in 0 : vector<8x256xf32>, vector<8x256xf32>, vector<8x256xf32>, vector<8x256xf32>, vector<8x256xf32> -> vector<40x256xf32>
    %c12_180 = arith.constant 12 : index
    %c0_181 = arith.constant 0 : index
    %c0_182 = arith.constant 0 : index
    %322 = vector.load %arg3[%c12_180, %c0_181, %c0_182] : memref<25x16x40xf32, #tpu.memory_space<vmem>>, vector<1x16x40xf32>
    %323 = vector.shape_cast %322 : vector<1x16x40xf32> to vector<16x40xf32>
    %cst_183 = arith.constant dense<0.000000e+00> : vector<16x256xf32>
    %324 = tpu.matmul %323, %321, %cst_183 {dimension_numbers = #tpu.dot_dimension_numbers<[1], [0], [0], [1], [0, 0, 1, 1], [], []>} : vector<16x40xf32>, vector<40x256xf32>, vector<16x256xf32> -> vector<16x256xf32>
    %325 = arith.addf %301, %324 : vector<16x256xf32>
    %c250_i32 = arith.constant 250 : i32
    %326 = tpu.dynamic_rotate %0 by %c250_i32 dim 1 : vector<8x256xf32>, i32 -> vector<8x256xf32>
    %c65 = arith.constant 65 : index
    %c0_184 = arith.constant 0 : index
    %c0_185 = arith.constant 0 : index
    %327 = vector.load %arg2[%c65, %c0_184, %c0_185] : memref<125x8x256xf32, #tpu.memory_space<vmem>>, vector<1x8x256xf32>
    %328 = vector.shape_cast %327 : vector<1x8x256xf32> to vector<8x256xf32>
    %329 = arith.mulf %326, %328 : vector<8x256xf32>
    %c249_i32 = arith.constant 249 : i32
    %330 = tpu.dynamic_rotate %0 by %c249_i32 dim 1 : vector<8x256xf32>, i32 -> vector<8x256xf32>
    %c66 = arith.constant 66 : index
    %c0_186 = arith.constant 0 : index
    %c0_187 = arith.constant 0 : index
    %331 = vector.load %arg2[%c66, %c0_186, %c0_187] : memref<125x8x256xf32, #tpu.memory_space<vmem>>, vector<1x8x256xf32>
    %332 = vector.shape_cast %331 : vector<1x8x256xf32> to vector<8x256xf32>
    %333 = arith.mulf %330, %332 : vector<8x256xf32>
    %c248_i32 = arith.constant 248 : i32
    %334 = tpu.dynamic_rotate %0 by %c248_i32 dim 1 : vector<8x256xf32>, i32 -> vector<8x256xf32>
    %c67 = arith.constant 67 : index
    %c0_188 = arith.constant 0 : index
    %c0_189 = arith.constant 0 : index
    %335 = vector.load %arg2[%c67, %c0_188, %c0_189] : memref<125x8x256xf32, #tpu.memory_space<vmem>>, vector<1x8x256xf32>
    %336 = vector.shape_cast %335 : vector<1x8x256xf32> to vector<8x256xf32>
    %337 = arith.mulf %334, %336 : vector<8x256xf32>
    %c247_i32 = arith.constant 247 : i32
    %338 = tpu.dynamic_rotate %0 by %c247_i32 dim 1 : vector<8x256xf32>, i32 -> vector<8x256xf32>
    %c68 = arith.constant 68 : index
    %c0_190 = arith.constant 0 : index
    %c0_191 = arith.constant 0 : index
    %339 = vector.load %arg2[%c68, %c0_190, %c0_191] : memref<125x8x256xf32, #tpu.memory_space<vmem>>, vector<1x8x256xf32>
    %340 = vector.shape_cast %339 : vector<1x8x256xf32> to vector<8x256xf32>
    %341 = arith.mulf %338, %340 : vector<8x256xf32>
    %c246_i32 = arith.constant 246 : i32
    %342 = tpu.dynamic_rotate %0 by %c246_i32 dim 1 : vector<8x256xf32>, i32 -> vector<8x256xf32>
    %c69 = arith.constant 69 : index
    %c0_192 = arith.constant 0 : index
    %c0_193 = arith.constant 0 : index
    %343 = vector.load %arg2[%c69, %c0_192, %c0_193] : memref<125x8x256xf32, #tpu.memory_space<vmem>>, vector<1x8x256xf32>
    %344 = vector.shape_cast %343 : vector<1x8x256xf32> to vector<8x256xf32>
    %345 = arith.mulf %342, %344 : vector<8x256xf32>
    %346 = tpu.concatenate %329, %333, %337, %341, %345 in 0 : vector<8x256xf32>, vector<8x256xf32>, vector<8x256xf32>, vector<8x256xf32>, vector<8x256xf32> -> vector<40x256xf32>
    %c13_194 = arith.constant 13 : index
    %c0_195 = arith.constant 0 : index
    %c0_196 = arith.constant 0 : index
    %347 = vector.load %arg3[%c13_194, %c0_195, %c0_196] : memref<25x16x40xf32, #tpu.memory_space<vmem>>, vector<1x16x40xf32>
    %348 = vector.shape_cast %347 : vector<1x16x40xf32> to vector<16x40xf32>
    %cst_197 = arith.constant dense<0.000000e+00> : vector<16x256xf32>
    %349 = tpu.matmul %348, %346, %cst_197 {dimension_numbers = #tpu.dot_dimension_numbers<[1], [0], [0], [1], [0, 0, 1, 1], [], []>} : vector<16x40xf32>, vector<40x256xf32>, vector<16x256xf32> -> vector<16x256xf32>
    %350 = arith.addf %325, %349 : vector<16x256xf32>
    %c242_i32 = arith.constant 242 : i32
    %351 = tpu.dynamic_rotate %0 by %c242_i32 dim 1 : vector<8x256xf32>, i32 -> vector<8x256xf32>
    %c70 = arith.constant 70 : index
    %c0_198 = arith.constant 0 : index
    %c0_199 = arith.constant 0 : index
    %352 = vector.load %arg2[%c70, %c0_198, %c0_199] : memref<125x8x256xf32, #tpu.memory_space<vmem>>, vector<1x8x256xf32>
    %353 = vector.shape_cast %352 : vector<1x8x256xf32> to vector<8x256xf32>
    %354 = arith.mulf %351, %353 : vector<8x256xf32>
    %c241_i32 = arith.constant 241 : i32
    %355 = tpu.dynamic_rotate %0 by %c241_i32 dim 1 : vector<8x256xf32>, i32 -> vector<8x256xf32>
    %c71 = arith.constant 71 : index
    %c0_200 = arith.constant 0 : index
    %c0_201 = arith.constant 0 : index
    %356 = vector.load %arg2[%c71, %c0_200, %c0_201] : memref<125x8x256xf32, #tpu.memory_space<vmem>>, vector<1x8x256xf32>
    %357 = vector.shape_cast %356 : vector<1x8x256xf32> to vector<8x256xf32>
    %358 = arith.mulf %355, %357 : vector<8x256xf32>
    %c240_i32 = arith.constant 240 : i32
    %359 = tpu.dynamic_rotate %0 by %c240_i32 dim 1 : vector<8x256xf32>, i32 -> vector<8x256xf32>
    %c72 = arith.constant 72 : index
    %c0_202 = arith.constant 0 : index
    %c0_203 = arith.constant 0 : index
    %360 = vector.load %arg2[%c72, %c0_202, %c0_203] : memref<125x8x256xf32, #tpu.memory_space<vmem>>, vector<1x8x256xf32>
    %361 = vector.shape_cast %360 : vector<1x8x256xf32> to vector<8x256xf32>
    %362 = arith.mulf %359, %361 : vector<8x256xf32>
    %c239_i32 = arith.constant 239 : i32
    %363 = tpu.dynamic_rotate %0 by %c239_i32 dim 1 : vector<8x256xf32>, i32 -> vector<8x256xf32>
    %c73 = arith.constant 73 : index
    %c0_204 = arith.constant 0 : index
    %c0_205 = arith.constant 0 : index
    %364 = vector.load %arg2[%c73, %c0_204, %c0_205] : memref<125x8x256xf32, #tpu.memory_space<vmem>>, vector<1x8x256xf32>
    %365 = vector.shape_cast %364 : vector<1x8x256xf32> to vector<8x256xf32>
    %366 = arith.mulf %363, %365 : vector<8x256xf32>
    %c238_i32 = arith.constant 238 : i32
    %367 = tpu.dynamic_rotate %0 by %c238_i32 dim 1 : vector<8x256xf32>, i32 -> vector<8x256xf32>
    %c74 = arith.constant 74 : index
    %c0_206 = arith.constant 0 : index
    %c0_207 = arith.constant 0 : index
    %368 = vector.load %arg2[%c74, %c0_206, %c0_207] : memref<125x8x256xf32, #tpu.memory_space<vmem>>, vector<1x8x256xf32>
    %369 = vector.shape_cast %368 : vector<1x8x256xf32> to vector<8x256xf32>
    %370 = arith.mulf %367, %369 : vector<8x256xf32>
    %371 = tpu.concatenate %354, %358, %362, %366, %370 in 0 : vector<8x256xf32>, vector<8x256xf32>, vector<8x256xf32>, vector<8x256xf32>, vector<8x256xf32> -> vector<40x256xf32>
    %c14_208 = arith.constant 14 : index
    %c0_209 = arith.constant 0 : index
    %c0_210 = arith.constant 0 : index
    %372 = vector.load %arg3[%c14_208, %c0_209, %c0_210] : memref<25x16x40xf32, #tpu.memory_space<vmem>>, vector<1x16x40xf32>
    %373 = vector.shape_cast %372 : vector<1x16x40xf32> to vector<16x40xf32>
    %cst_211 = arith.constant dense<0.000000e+00> : vector<16x256xf32>
    %374 = tpu.matmul %373, %371, %cst_211 {dimension_numbers = #tpu.dot_dimension_numbers<[1], [0], [0], [1], [0, 0, 1, 1], [], []>} : vector<16x40xf32>, vector<40x256xf32>, vector<16x256xf32> -> vector<16x256xf32>
    %375 = arith.addf %350, %374 : vector<16x256xf32>
    %c210_i32 = arith.constant 210 : i32
    %376 = tpu.dynamic_rotate %0 by %c210_i32 dim 1 : vector<8x256xf32>, i32 -> vector<8x256xf32>
    %c75 = arith.constant 75 : index
    %c0_212 = arith.constant 0 : index
    %c0_213 = arith.constant 0 : index
    %377 = vector.load %arg2[%c75, %c0_212, %c0_213] : memref<125x8x256xf32, #tpu.memory_space<vmem>>, vector<1x8x256xf32>
    %378 = vector.shape_cast %377 : vector<1x8x256xf32> to vector<8x256xf32>
    %379 = arith.mulf %376, %378 : vector<8x256xf32>
    %c209_i32 = arith.constant 209 : i32
    %380 = tpu.dynamic_rotate %0 by %c209_i32 dim 1 : vector<8x256xf32>, i32 -> vector<8x256xf32>
    %c76 = arith.constant 76 : index
    %c0_214 = arith.constant 0 : index
    %c0_215 = arith.constant 0 : index
    %381 = vector.load %arg2[%c76, %c0_214, %c0_215] : memref<125x8x256xf32, #tpu.memory_space<vmem>>, vector<1x8x256xf32>
    %382 = vector.shape_cast %381 : vector<1x8x256xf32> to vector<8x256xf32>
    %383 = arith.mulf %380, %382 : vector<8x256xf32>
    %c208_i32 = arith.constant 208 : i32
    %384 = tpu.dynamic_rotate %0 by %c208_i32 dim 1 : vector<8x256xf32>, i32 -> vector<8x256xf32>
    %c77 = arith.constant 77 : index
    %c0_216 = arith.constant 0 : index
    %c0_217 = arith.constant 0 : index
    %385 = vector.load %arg2[%c77, %c0_216, %c0_217] : memref<125x8x256xf32, #tpu.memory_space<vmem>>, vector<1x8x256xf32>
    %386 = vector.shape_cast %385 : vector<1x8x256xf32> to vector<8x256xf32>
    %387 = arith.mulf %384, %386 : vector<8x256xf32>
    %c207_i32 = arith.constant 207 : i32
    %388 = tpu.dynamic_rotate %0 by %c207_i32 dim 1 : vector<8x256xf32>, i32 -> vector<8x256xf32>
    %c78 = arith.constant 78 : index
    %c0_218 = arith.constant 0 : index
    %c0_219 = arith.constant 0 : index
    %389 = vector.load %arg2[%c78, %c0_218, %c0_219] : memref<125x8x256xf32, #tpu.memory_space<vmem>>, vector<1x8x256xf32>
    %390 = vector.shape_cast %389 : vector<1x8x256xf32> to vector<8x256xf32>
    %391 = arith.mulf %388, %390 : vector<8x256xf32>
    %c206_i32 = arith.constant 206 : i32
    %392 = tpu.dynamic_rotate %0 by %c206_i32 dim 1 : vector<8x256xf32>, i32 -> vector<8x256xf32>
    %c79 = arith.constant 79 : index
    %c0_220 = arith.constant 0 : index
    %c0_221 = arith.constant 0 : index
    %393 = vector.load %arg2[%c79, %c0_220, %c0_221] : memref<125x8x256xf32, #tpu.memory_space<vmem>>, vector<1x8x256xf32>
    %394 = vector.shape_cast %393 : vector<1x8x256xf32> to vector<8x256xf32>
    %395 = arith.mulf %392, %394 : vector<8x256xf32>
    %396 = tpu.concatenate %379, %383, %387, %391, %395 in 0 : vector<8x256xf32>, vector<8x256xf32>, vector<8x256xf32>, vector<8x256xf32>, vector<8x256xf32> -> vector<40x256xf32>
    %c15_222 = arith.constant 15 : index
    %c0_223 = arith.constant 0 : index
    %c0_224 = arith.constant 0 : index
    %397 = vector.load %arg3[%c15_222, %c0_223, %c0_224] : memref<25x16x40xf32, #tpu.memory_space<vmem>>, vector<1x16x40xf32>
    %398 = vector.shape_cast %397 : vector<1x16x40xf32> to vector<16x40xf32>
    %cst_225 = arith.constant dense<0.000000e+00> : vector<16x256xf32>
    %399 = tpu.matmul %398, %396, %cst_225 {dimension_numbers = #tpu.dot_dimension_numbers<[1], [0], [0], [1], [0, 0, 1, 1], [], []>} : vector<16x40xf32>, vector<40x256xf32>, vector<16x256xf32> -> vector<16x256xf32>
    %400 = arith.addf %375, %399 : vector<16x256xf32>
    %c202_i32 = arith.constant 202 : i32
    %401 = tpu.dynamic_rotate %0 by %c202_i32 dim 1 : vector<8x256xf32>, i32 -> vector<8x256xf32>
    %c80 = arith.constant 80 : index
    %c0_226 = arith.constant 0 : index
    %c0_227 = arith.constant 0 : index
    %402 = vector.load %arg2[%c80, %c0_226, %c0_227] : memref<125x8x256xf32, #tpu.memory_space<vmem>>, vector<1x8x256xf32>
    %403 = vector.shape_cast %402 : vector<1x8x256xf32> to vector<8x256xf32>
    %404 = arith.mulf %401, %403 : vector<8x256xf32>
    %c201_i32 = arith.constant 201 : i32
    %405 = tpu.dynamic_rotate %0 by %c201_i32 dim 1 : vector<8x256xf32>, i32 -> vector<8x256xf32>
    %c81 = arith.constant 81 : index
    %c0_228 = arith.constant 0 : index
    %c0_229 = arith.constant 0 : index
    %406 = vector.load %arg2[%c81, %c0_228, %c0_229] : memref<125x8x256xf32, #tpu.memory_space<vmem>>, vector<1x8x256xf32>
    %407 = vector.shape_cast %406 : vector<1x8x256xf32> to vector<8x256xf32>
    %408 = arith.mulf %405, %407 : vector<8x256xf32>
    %c200_i32 = arith.constant 200 : i32
    %409 = tpu.dynamic_rotate %0 by %c200_i32 dim 1 : vector<8x256xf32>, i32 -> vector<8x256xf32>
    %c82 = arith.constant 82 : index
    %c0_230 = arith.constant 0 : index
    %c0_231 = arith.constant 0 : index
    %410 = vector.load %arg2[%c82, %c0_230, %c0_231] : memref<125x8x256xf32, #tpu.memory_space<vmem>>, vector<1x8x256xf32>
    %411 = vector.shape_cast %410 : vector<1x8x256xf32> to vector<8x256xf32>
    %412 = arith.mulf %409, %411 : vector<8x256xf32>
    %c199_i32 = arith.constant 199 : i32
    %413 = tpu.dynamic_rotate %0 by %c199_i32 dim 1 : vector<8x256xf32>, i32 -> vector<8x256xf32>
    %c83 = arith.constant 83 : index
    %c0_232 = arith.constant 0 : index
    %c0_233 = arith.constant 0 : index
    %414 = vector.load %arg2[%c83, %c0_232, %c0_233] : memref<125x8x256xf32, #tpu.memory_space<vmem>>, vector<1x8x256xf32>
    %415 = vector.shape_cast %414 : vector<1x8x256xf32> to vector<8x256xf32>
    %416 = arith.mulf %413, %415 : vector<8x256xf32>
    %c198_i32 = arith.constant 198 : i32
    %417 = tpu.dynamic_rotate %0 by %c198_i32 dim 1 : vector<8x256xf32>, i32 -> vector<8x256xf32>
    %c84 = arith.constant 84 : index
    %c0_234 = arith.constant 0 : index
    %c0_235 = arith.constant 0 : index
    %418 = vector.load %arg2[%c84, %c0_234, %c0_235] : memref<125x8x256xf32, #tpu.memory_space<vmem>>, vector<1x8x256xf32>
    %419 = vector.shape_cast %418 : vector<1x8x256xf32> to vector<8x256xf32>
    %420 = arith.mulf %417, %419 : vector<8x256xf32>
    %421 = tpu.concatenate %404, %408, %412, %416, %420 in 0 : vector<8x256xf32>, vector<8x256xf32>, vector<8x256xf32>, vector<8x256xf32>, vector<8x256xf32> -> vector<40x256xf32>
    %c16_236 = arith.constant 16 : index
    %c0_237 = arith.constant 0 : index
    %c0_238 = arith.constant 0 : index
    %422 = vector.load %arg3[%c16_236, %c0_237, %c0_238] : memref<25x16x40xf32, #tpu.memory_space<vmem>>, vector<1x16x40xf32>
    %423 = vector.shape_cast %422 : vector<1x16x40xf32> to vector<16x40xf32>
    %cst_239 = arith.constant dense<0.000000e+00> : vector<16x256xf32>
    %424 = tpu.matmul %423, %421, %cst_239 {dimension_numbers = #tpu.dot_dimension_numbers<[1], [0], [0], [1], [0, 0, 1, 1], [], []>} : vector<16x40xf32>, vector<40x256xf32>, vector<16x256xf32> -> vector<16x256xf32>
    %425 = arith.addf %400, %424 : vector<16x256xf32>
    %c194_i32 = arith.constant 194 : i32
    %426 = tpu.dynamic_rotate %0 by %c194_i32 dim 1 : vector<8x256xf32>, i32 -> vector<8x256xf32>
    %c85 = arith.constant 85 : index
    %c0_240 = arith.constant 0 : index
    %c0_241 = arith.constant 0 : index
    %427 = vector.load %arg2[%c85, %c0_240, %c0_241] : memref<125x8x256xf32, #tpu.memory_space<vmem>>, vector<1x8x256xf32>
    %428 = vector.shape_cast %427 : vector<1x8x256xf32> to vector<8x256xf32>
    %429 = arith.mulf %426, %428 : vector<8x256xf32>
    %c193_i32 = arith.constant 193 : i32
    %430 = tpu.dynamic_rotate %0 by %c193_i32 dim 1 : vector<8x256xf32>, i32 -> vector<8x256xf32>
    %c86 = arith.constant 86 : index
    %c0_242 = arith.constant 0 : index
    %c0_243 = arith.constant 0 : index
    %431 = vector.load %arg2[%c86, %c0_242, %c0_243] : memref<125x8x256xf32, #tpu.memory_space<vmem>>, vector<1x8x256xf32>
    %432 = vector.shape_cast %431 : vector<1x8x256xf32> to vector<8x256xf32>
    %433 = arith.mulf %430, %432 : vector<8x256xf32>
    %c192_i32 = arith.constant 192 : i32
    %434 = tpu.dynamic_rotate %0 by %c192_i32 dim 1 : vector<8x256xf32>, i32 -> vector<8x256xf32>
    %c87 = arith.constant 87 : index
    %c0_244 = arith.constant 0 : index
    %c0_245 = arith.constant 0 : index
    %435 = vector.load %arg2[%c87, %c0_244, %c0_245] : memref<125x8x256xf32, #tpu.memory_space<vmem>>, vector<1x8x256xf32>
    %436 = vector.shape_cast %435 : vector<1x8x256xf32> to vector<8x256xf32>
    %437 = arith.mulf %434, %436 : vector<8x256xf32>
    %c191_i32 = arith.constant 191 : i32
    %438 = tpu.dynamic_rotate %0 by %c191_i32 dim 1 : vector<8x256xf32>, i32 -> vector<8x256xf32>
    %c88 = arith.constant 88 : index
    %c0_246 = arith.constant 0 : index
    %c0_247 = arith.constant 0 : index
    %439 = vector.load %arg2[%c88, %c0_246, %c0_247] : memref<125x8x256xf32, #tpu.memory_space<vmem>>, vector<1x8x256xf32>
    %440 = vector.shape_cast %439 : vector<1x8x256xf32> to vector<8x256xf32>
    %441 = arith.mulf %438, %440 : vector<8x256xf32>
    %c190_i32 = arith.constant 190 : i32
    %442 = tpu.dynamic_rotate %0 by %c190_i32 dim 1 : vector<8x256xf32>, i32 -> vector<8x256xf32>
    %c89 = arith.constant 89 : index
    %c0_248 = arith.constant 0 : index
    %c0_249 = arith.constant 0 : index
    %443 = vector.load %arg2[%c89, %c0_248, %c0_249] : memref<125x8x256xf32, #tpu.memory_space<vmem>>, vector<1x8x256xf32>
    %444 = vector.shape_cast %443 : vector<1x8x256xf32> to vector<8x256xf32>
    %445 = arith.mulf %442, %444 : vector<8x256xf32>
    %446 = tpu.concatenate %429, %433, %437, %441, %445 in 0 : vector<8x256xf32>, vector<8x256xf32>, vector<8x256xf32>, vector<8x256xf32>, vector<8x256xf32> -> vector<40x256xf32>
    %c17_250 = arith.constant 17 : index
    %c0_251 = arith.constant 0 : index
    %c0_252 = arith.constant 0 : index
    %447 = vector.load %arg3[%c17_250, %c0_251, %c0_252] : memref<25x16x40xf32, #tpu.memory_space<vmem>>, vector<1x16x40xf32>
    %448 = vector.shape_cast %447 : vector<1x16x40xf32> to vector<16x40xf32>
    %cst_253 = arith.constant dense<0.000000e+00> : vector<16x256xf32>
    %449 = tpu.matmul %448, %446, %cst_253 {dimension_numbers = #tpu.dot_dimension_numbers<[1], [0], [0], [1], [0, 0, 1, 1], [], []>} : vector<16x40xf32>, vector<40x256xf32>, vector<16x256xf32> -> vector<16x256xf32>
    %450 = arith.addf %425, %449 : vector<16x256xf32>
    %c186_i32 = arith.constant 186 : i32
    %451 = tpu.dynamic_rotate %0 by %c186_i32 dim 1 : vector<8x256xf32>, i32 -> vector<8x256xf32>
    %c90 = arith.constant 90 : index
    %c0_254 = arith.constant 0 : index
    %c0_255 = arith.constant 0 : index
    %452 = vector.load %arg2[%c90, %c0_254, %c0_255] : memref<125x8x256xf32, #tpu.memory_space<vmem>>, vector<1x8x256xf32>
    %453 = vector.shape_cast %452 : vector<1x8x256xf32> to vector<8x256xf32>
    %454 = arith.mulf %451, %453 : vector<8x256xf32>
    %c185_i32 = arith.constant 185 : i32
    %455 = tpu.dynamic_rotate %0 by %c185_i32 dim 1 : vector<8x256xf32>, i32 -> vector<8x256xf32>
    %c91 = arith.constant 91 : index
    %c0_256 = arith.constant 0 : index
    %c0_257 = arith.constant 0 : index
    %456 = vector.load %arg2[%c91, %c0_256, %c0_257] : memref<125x8x256xf32, #tpu.memory_space<vmem>>, vector<1x8x256xf32>
    %457 = vector.shape_cast %456 : vector<1x8x256xf32> to vector<8x256xf32>
    %458 = arith.mulf %455, %457 : vector<8x256xf32>
    %c184_i32 = arith.constant 184 : i32
    %459 = tpu.dynamic_rotate %0 by %c184_i32 dim 1 : vector<8x256xf32>, i32 -> vector<8x256xf32>
    %c92 = arith.constant 92 : index
    %c0_258 = arith.constant 0 : index
    %c0_259 = arith.constant 0 : index
    %460 = vector.load %arg2[%c92, %c0_258, %c0_259] : memref<125x8x256xf32, #tpu.memory_space<vmem>>, vector<1x8x256xf32>
    %461 = vector.shape_cast %460 : vector<1x8x256xf32> to vector<8x256xf32>
    %462 = arith.mulf %459, %461 : vector<8x256xf32>
    %c183_i32 = arith.constant 183 : i32
    %463 = tpu.dynamic_rotate %0 by %c183_i32 dim 1 : vector<8x256xf32>, i32 -> vector<8x256xf32>
    %c93 = arith.constant 93 : index
    %c0_260 = arith.constant 0 : index
    %c0_261 = arith.constant 0 : index
    %464 = vector.load %arg2[%c93, %c0_260, %c0_261] : memref<125x8x256xf32, #tpu.memory_space<vmem>>, vector<1x8x256xf32>
    %465 = vector.shape_cast %464 : vector<1x8x256xf32> to vector<8x256xf32>
    %466 = arith.mulf %463, %465 : vector<8x256xf32>
    %c182_i32 = arith.constant 182 : i32
    %467 = tpu.dynamic_rotate %0 by %c182_i32 dim 1 : vector<8x256xf32>, i32 -> vector<8x256xf32>
    %c94 = arith.constant 94 : index
    %c0_262 = arith.constant 0 : index
    %c0_263 = arith.constant 0 : index
    %468 = vector.load %arg2[%c94, %c0_262, %c0_263] : memref<125x8x256xf32, #tpu.memory_space<vmem>>, vector<1x8x256xf32>
    %469 = vector.shape_cast %468 : vector<1x8x256xf32> to vector<8x256xf32>
    %470 = arith.mulf %467, %469 : vector<8x256xf32>
    %471 = tpu.concatenate %454, %458, %462, %466, %470 in 0 : vector<8x256xf32>, vector<8x256xf32>, vector<8x256xf32>, vector<8x256xf32>, vector<8x256xf32> -> vector<40x256xf32>
    %c18_264 = arith.constant 18 : index
    %c0_265 = arith.constant 0 : index
    %c0_266 = arith.constant 0 : index
    %472 = vector.load %arg3[%c18_264, %c0_265, %c0_266] : memref<25x16x40xf32, #tpu.memory_space<vmem>>, vector<1x16x40xf32>
    %473 = vector.shape_cast %472 : vector<1x16x40xf32> to vector<16x40xf32>
    %cst_267 = arith.constant dense<0.000000e+00> : vector<16x256xf32>
    %474 = tpu.matmul %473, %471, %cst_267 {dimension_numbers = #tpu.dot_dimension_numbers<[1], [0], [0], [1], [0, 0, 1, 1], [], []>} : vector<16x40xf32>, vector<40x256xf32>, vector<16x256xf32> -> vector<16x256xf32>
    %475 = arith.addf %450, %474 : vector<16x256xf32>
    %c178_i32 = arith.constant 178 : i32
    %476 = tpu.dynamic_rotate %0 by %c178_i32 dim 1 : vector<8x256xf32>, i32 -> vector<8x256xf32>
    %c95 = arith.constant 95 : index
    %c0_268 = arith.constant 0 : index
    %c0_269 = arith.constant 0 : index
    %477 = vector.load %arg2[%c95, %c0_268, %c0_269] : memref<125x8x256xf32, #tpu.memory_space<vmem>>, vector<1x8x256xf32>
    %478 = vector.shape_cast %477 : vector<1x8x256xf32> to vector<8x256xf32>
    %479 = arith.mulf %476, %478 : vector<8x256xf32>
    %c177_i32 = arith.constant 177 : i32
    %480 = tpu.dynamic_rotate %0 by %c177_i32 dim 1 : vector<8x256xf32>, i32 -> vector<8x256xf32>
    %c96 = arith.constant 96 : index
    %c0_270 = arith.constant 0 : index
    %c0_271 = arith.constant 0 : index
    %481 = vector.load %arg2[%c96, %c0_270, %c0_271] : memref<125x8x256xf32, #tpu.memory_space<vmem>>, vector<1x8x256xf32>
    %482 = vector.shape_cast %481 : vector<1x8x256xf32> to vector<8x256xf32>
    %483 = arith.mulf %480, %482 : vector<8x256xf32>
    %c176_i32 = arith.constant 176 : i32
    %484 = tpu.dynamic_rotate %0 by %c176_i32 dim 1 : vector<8x256xf32>, i32 -> vector<8x256xf32>
    %c97 = arith.constant 97 : index
    %c0_272 = arith.constant 0 : index
    %c0_273 = arith.constant 0 : index
    %485 = vector.load %arg2[%c97, %c0_272, %c0_273] : memref<125x8x256xf32, #tpu.memory_space<vmem>>, vector<1x8x256xf32>
    %486 = vector.shape_cast %485 : vector<1x8x256xf32> to vector<8x256xf32>
    %487 = arith.mulf %484, %486 : vector<8x256xf32>
    %c175_i32 = arith.constant 175 : i32
    %488 = tpu.dynamic_rotate %0 by %c175_i32 dim 1 : vector<8x256xf32>, i32 -> vector<8x256xf32>
    %c98 = arith.constant 98 : index
    %c0_274 = arith.constant 0 : index
    %c0_275 = arith.constant 0 : index
    %489 = vector.load %arg2[%c98, %c0_274, %c0_275] : memref<125x8x256xf32, #tpu.memory_space<vmem>>, vector<1x8x256xf32>
    %490 = vector.shape_cast %489 : vector<1x8x256xf32> to vector<8x256xf32>
    %491 = arith.mulf %488, %490 : vector<8x256xf32>
    %c174_i32 = arith.constant 174 : i32
    %492 = tpu.dynamic_rotate %0 by %c174_i32 dim 1 : vector<8x256xf32>, i32 -> vector<8x256xf32>
    %c99 = arith.constant 99 : index
    %c0_276 = arith.constant 0 : index
    %c0_277 = arith.constant 0 : index
    %493 = vector.load %arg2[%c99, %c0_276, %c0_277] : memref<125x8x256xf32, #tpu.memory_space<vmem>>, vector<1x8x256xf32>
    %494 = vector.shape_cast %493 : vector<1x8x256xf32> to vector<8x256xf32>
    %495 = arith.mulf %492, %494 : vector<8x256xf32>
    %496 = tpu.concatenate %479, %483, %487, %491, %495 in 0 : vector<8x256xf32>, vector<8x256xf32>, vector<8x256xf32>, vector<8x256xf32>, vector<8x256xf32> -> vector<40x256xf32>
    %c19_278 = arith.constant 19 : index
    %c0_279 = arith.constant 0 : index
    %c0_280 = arith.constant 0 : index
    %497 = vector.load %arg3[%c19_278, %c0_279, %c0_280] : memref<25x16x40xf32, #tpu.memory_space<vmem>>, vector<1x16x40xf32>
    %498 = vector.shape_cast %497 : vector<1x16x40xf32> to vector<16x40xf32>
    %cst_281 = arith.constant dense<0.000000e+00> : vector<16x256xf32>
    %499 = tpu.matmul %498, %496, %cst_281 {dimension_numbers = #tpu.dot_dimension_numbers<[1], [0], [0], [1], [0, 0, 1, 1], [], []>} : vector<16x40xf32>, vector<40x256xf32>, vector<16x256xf32> -> vector<16x256xf32>
    %500 = arith.addf %475, %499 : vector<16x256xf32>
    %c146_i32_282 = arith.constant 146 : i32
    %501 = tpu.dynamic_rotate %0 by %c146_i32_282 dim 1 : vector<8x256xf32>, i32 -> vector<8x256xf32>
    %c100 = arith.constant 100 : index
    %c0_283 = arith.constant 0 : index
    %c0_284 = arith.constant 0 : index
    %502 = vector.load %arg2[%c100, %c0_283, %c0_284] : memref<125x8x256xf32, #tpu.memory_space<vmem>>, vector<1x8x256xf32>
    %503 = vector.shape_cast %502 : vector<1x8x256xf32> to vector<8x256xf32>
    %504 = arith.mulf %501, %503 : vector<8x256xf32>
    %c145_i32_285 = arith.constant 145 : i32
    %505 = tpu.dynamic_rotate %0 by %c145_i32_285 dim 1 : vector<8x256xf32>, i32 -> vector<8x256xf32>
    %c101 = arith.constant 101 : index
    %c0_286 = arith.constant 0 : index
    %c0_287 = arith.constant 0 : index
    %506 = vector.load %arg2[%c101, %c0_286, %c0_287] : memref<125x8x256xf32, #tpu.memory_space<vmem>>, vector<1x8x256xf32>
    %507 = vector.shape_cast %506 : vector<1x8x256xf32> to vector<8x256xf32>
    %508 = arith.mulf %505, %507 : vector<8x256xf32>
    %c144_i32_288 = arith.constant 144 : i32
    %509 = tpu.dynamic_rotate %0 by %c144_i32_288 dim 1 : vector<8x256xf32>, i32 -> vector<8x256xf32>
    %c102 = arith.constant 102 : index
    %c0_289 = arith.constant 0 : index
    %c0_290 = arith.constant 0 : index
    %510 = vector.load %arg2[%c102, %c0_289, %c0_290] : memref<125x8x256xf32, #tpu.memory_space<vmem>>, vector<1x8x256xf32>
    %511 = vector.shape_cast %510 : vector<1x8x256xf32> to vector<8x256xf32>
    %512 = arith.mulf %509, %511 : vector<8x256xf32>
    %c143_i32_291 = arith.constant 143 : i32
    %513 = tpu.dynamic_rotate %0 by %c143_i32_291 dim 1 : vector<8x256xf32>, i32 -> vector<8x256xf32>
    %c103 = arith.constant 103 : index
    %c0_292 = arith.constant 0 : index
    %c0_293 = arith.constant 0 : index
    %514 = vector.load %arg2[%c103, %c0_292, %c0_293] : memref<125x8x256xf32, #tpu.memory_space<vmem>>, vector<1x8x256xf32>
    %515 = vector.shape_cast %514 : vector<1x8x256xf32> to vector<8x256xf32>
    %516 = arith.mulf %513, %515 : vector<8x256xf32>
    %c142_i32_294 = arith.constant 142 : i32
    %517 = tpu.dynamic_rotate %0 by %c142_i32_294 dim 1 : vector<8x256xf32>, i32 -> vector<8x256xf32>
    %c104 = arith.constant 104 : index
    %c0_295 = arith.constant 0 : index
    %c0_296 = arith.constant 0 : index
    %518 = vector.load %arg2[%c104, %c0_295, %c0_296] : memref<125x8x256xf32, #tpu.memory_space<vmem>>, vector<1x8x256xf32>
    %519 = vector.shape_cast %518 : vector<1x8x256xf32> to vector<8x256xf32>
    %520 = arith.mulf %517, %519 : vector<8x256xf32>
    %521 = tpu.concatenate %504, %508, %512, %516, %520 in 0 : vector<8x256xf32>, vector<8x256xf32>, vector<8x256xf32>, vector<8x256xf32>, vector<8x256xf32> -> vector<40x256xf32>
    %c20_297 = arith.constant 20 : index
    %c0_298 = arith.constant 0 : index
    %c0_299 = arith.constant 0 : index
    %522 = vector.load %arg3[%c20_297, %c0_298, %c0_299] : memref<25x16x40xf32, #tpu.memory_space<vmem>>, vector<1x16x40xf32>
    %523 = vector.shape_cast %522 : vector<1x16x40xf32> to vector<16x40xf32>
    %cst_300 = arith.constant dense<0.000000e+00> : vector<16x256xf32>
    %524 = tpu.matmul %523, %521, %cst_300 {dimension_numbers = #tpu.dot_dimension_numbers<[1], [0], [0], [1], [0, 0, 1, 1], [], []>} : vector<16x40xf32>, vector<40x256xf32>, vector<16x256xf32> -> vector<16x256xf32>
    %525 = arith.addf %500, %524 : vector<16x256xf32>
    %c138_i32_301 = arith.constant 138 : i32
    %526 = tpu.dynamic_rotate %0 by %c138_i32_301 dim 1 : vector<8x256xf32>, i32 -> vector<8x256xf32>
    %c105 = arith.constant 105 : index
    %c0_302 = arith.constant 0 : index
    %c0_303 = arith.constant 0 : index
    %527 = vector.load %arg2[%c105, %c0_302, %c0_303] : memref<125x8x256xf32, #tpu.memory_space<vmem>>, vector<1x8x256xf32>
    %528 = vector.shape_cast %527 : vector<1x8x256xf32> to vector<8x256xf32>
    %529 = arith.mulf %526, %528 : vector<8x256xf32>
    %c137_i32_304 = arith.constant 137 : i32
    %530 = tpu.dynamic_rotate %0 by %c137_i32_304 dim 1 : vector<8x256xf32>, i32 -> vector<8x256xf32>
    %c106 = arith.constant 106 : index
    %c0_305 = arith.constant 0 : index
    %c0_306 = arith.constant 0 : index
    %531 = vector.load %arg2[%c106, %c0_305, %c0_306] : memref<125x8x256xf32, #tpu.memory_space<vmem>>, vector<1x8x256xf32>
    %532 = vector.shape_cast %531 : vector<1x8x256xf32> to vector<8x256xf32>
    %533 = arith.mulf %530, %532 : vector<8x256xf32>
    %c136_i32_307 = arith.constant 136 : i32
    %534 = tpu.dynamic_rotate %0 by %c136_i32_307 dim 1 : vector<8x256xf32>, i32 -> vector<8x256xf32>
    %c107 = arith.constant 107 : index
    %c0_308 = arith.constant 0 : index
    %c0_309 = arith.constant 0 : index
    %535 = vector.load %arg2[%c107, %c0_308, %c0_309] : memref<125x8x256xf32, #tpu.memory_space<vmem>>, vector<1x8x256xf32>
    %536 = vector.shape_cast %535 : vector<1x8x256xf32> to vector<8x256xf32>
    %537 = arith.mulf %534, %536 : vector<8x256xf32>
    %c135_i32_310 = arith.constant 135 : i32
    %538 = tpu.dynamic_rotate %0 by %c135_i32_310 dim 1 : vector<8x256xf32>, i32 -> vector<8x256xf32>
    %c108 = arith.constant 108 : index
    %c0_311 = arith.constant 0 : index
    %c0_312 = arith.constant 0 : index
    %539 = vector.load %arg2[%c108, %c0_311, %c0_312] : memref<125x8x256xf32, #tpu.memory_space<vmem>>, vector<1x8x256xf32>
    %540 = vector.shape_cast %539 : vector<1x8x256xf32> to vector<8x256xf32>
    %541 = arith.mulf %538, %540 : vector<8x256xf32>
    %c134_i32_313 = arith.constant 134 : i32
    %542 = tpu.dynamic_rotate %0 by %c134_i32_313 dim 1 : vector<8x256xf32>, i32 -> vector<8x256xf32>
    %c109 = arith.constant 109 : index
    %c0_314 = arith.constant 0 : index
    %c0_315 = arith.constant 0 : index
    %543 = vector.load %arg2[%c109, %c0_314, %c0_315] : memref<125x8x256xf32, #tpu.memory_space<vmem>>, vector<1x8x256xf32>
    %544 = vector.shape_cast %543 : vector<1x8x256xf32> to vector<8x256xf32>
    %545 = arith.mulf %542, %544 : vector<8x256xf32>
    %546 = tpu.concatenate %529, %533, %537, %541, %545 in 0 : vector<8x256xf32>, vector<8x256xf32>, vector<8x256xf32>, vector<8x256xf32>, vector<8x256xf32> -> vector<40x256xf32>
    %c21_316 = arith.constant 21 : index
    %c0_317 = arith.constant 0 : index
    %c0_318 = arith.constant 0 : index
    %547 = vector.load %arg3[%c21_316, %c0_317, %c0_318] : memref<25x16x40xf32, #tpu.memory_space<vmem>>, vector<1x16x40xf32>
    %548 = vector.shape_cast %547 : vector<1x16x40xf32> to vector<16x40xf32>
    %cst_319 = arith.constant dense<0.000000e+00> : vector<16x256xf32>
    %549 = tpu.matmul %548, %546, %cst_319 {dimension_numbers = #tpu.dot_dimension_numbers<[1], [0], [0], [1], [0, 0, 1, 1], [], []>} : vector<16x40xf32>, vector<40x256xf32>, vector<16x256xf32> -> vector<16x256xf32>
    %550 = arith.addf %525, %549 : vector<16x256xf32>
    %c130_i32_320 = arith.constant 130 : i32
    %551 = tpu.dynamic_rotate %0 by %c130_i32_320 dim 1 : vector<8x256xf32>, i32 -> vector<8x256xf32>
    %c110 = arith.constant 110 : index
    %c0_321 = arith.constant 0 : index
    %c0_322 = arith.constant 0 : index
    %552 = vector.load %arg2[%c110, %c0_321, %c0_322] : memref<125x8x256xf32, #tpu.memory_space<vmem>>, vector<1x8x256xf32>
    %553 = vector.shape_cast %552 : vector<1x8x256xf32> to vector<8x256xf32>
    %554 = arith.mulf %551, %553 : vector<8x256xf32>
    %c129_i32_323 = arith.constant 129 : i32
    %555 = tpu.dynamic_rotate %0 by %c129_i32_323 dim 1 : vector<8x256xf32>, i32 -> vector<8x256xf32>
    %c111 = arith.constant 111 : index
    %c0_324 = arith.constant 0 : index
    %c0_325 = arith.constant 0 : index
    %556 = vector.load %arg2[%c111, %c0_324, %c0_325] : memref<125x8x256xf32, #tpu.memory_space<vmem>>, vector<1x8x256xf32>
    %557 = vector.shape_cast %556 : vector<1x8x256xf32> to vector<8x256xf32>
    %558 = arith.mulf %555, %557 : vector<8x256xf32>
    %c128_i32_326 = arith.constant 128 : i32
    %559 = tpu.dynamic_rotate %0 by %c128_i32_326 dim 1 : vector<8x256xf32>, i32 -> vector<8x256xf32>
    %c112 = arith.constant 112 : index
    %c0_327 = arith.constant 0 : index
    %c0_328 = arith.constant 0 : index
    %560 = vector.load %arg2[%c112, %c0_327, %c0_328] : memref<125x8x256xf32, #tpu.memory_space<vmem>>, vector<1x8x256xf32>
    %561 = vector.shape_cast %560 : vector<1x8x256xf32> to vector<8x256xf32>
    %562 = arith.mulf %559, %561 : vector<8x256xf32>
    %c127_i32_329 = arith.constant 127 : i32
    %563 = tpu.dynamic_rotate %0 by %c127_i32_329 dim 1 : vector<8x256xf32>, i32 -> vector<8x256xf32>
    %c113 = arith.constant 113 : index
    %c0_330 = arith.constant 0 : index
    %c0_331 = arith.constant 0 : index
    %564 = vector.load %arg2[%c113, %c0_330, %c0_331] : memref<125x8x256xf32, #tpu.memory_space<vmem>>, vector<1x8x256xf32>
    %565 = vector.shape_cast %564 : vector<1x8x256xf32> to vector<8x256xf32>
    %566 = arith.mulf %563, %565 : vector<8x256xf32>
    %c126_i32_332 = arith.constant 126 : i32
    %567 = tpu.dynamic_rotate %0 by %c126_i32_332 dim 1 : vector<8x256xf32>, i32 -> vector<8x256xf32>
    %c114 = arith.constant 114 : index
    %c0_333 = arith.constant 0 : index
    %c0_334 = arith.constant 0 : index
    %568 = vector.load %arg2[%c114, %c0_333, %c0_334] : memref<125x8x256xf32, #tpu.memory_space<vmem>>, vector<1x8x256xf32>
    %569 = vector.shape_cast %568 : vector<1x8x256xf32> to vector<8x256xf32>
    %570 = arith.mulf %567, %569 : vector<8x256xf32>
    %571 = tpu.concatenate %554, %558, %562, %566, %570 in 0 : vector<8x256xf32>, vector<8x256xf32>, vector<8x256xf32>, vector<8x256xf32>, vector<8x256xf32> -> vector<40x256xf32>
    %c22_335 = arith.constant 22 : index
    %c0_336 = arith.constant 0 : index
    %c0_337 = arith.constant 0 : index
    %572 = vector.load %arg3[%c22_335, %c0_336, %c0_337] : memref<25x16x40xf32, #tpu.memory_space<vmem>>, vector<1x16x40xf32>
    %573 = vector.shape_cast %572 : vector<1x16x40xf32> to vector<16x40xf32>
    %cst_338 = arith.constant dense<0.000000e+00> : vector<16x256xf32>
    %574 = tpu.matmul %573, %571, %cst_338 {dimension_numbers = #tpu.dot_dimension_numbers<[1], [0], [0], [1], [0, 0, 1, 1], [], []>} : vector<16x40xf32>, vector<40x256xf32>, vector<16x256xf32> -> vector<16x256xf32>
    %575 = arith.addf %550, %574 : vector<16x256xf32>
    %c122_i32_339 = arith.constant 122 : i32
    %576 = tpu.dynamic_rotate %0 by %c122_i32_339 dim 1 : vector<8x256xf32>, i32 -> vector<8x256xf32>
    %c115 = arith.constant 115 : index
    %c0_340 = arith.constant 0 : index
    %c0_341 = arith.constant 0 : index
    %577 = vector.load %arg2[%c115, %c0_340, %c0_341] : memref<125x8x256xf32, #tpu.memory_space<vmem>>, vector<1x8x256xf32>
    %578 = vector.shape_cast %577 : vector<1x8x256xf32> to vector<8x256xf32>
    %579 = arith.mulf %576, %578 : vector<8x256xf32>
    %c121_i32_342 = arith.constant 121 : i32
    %580 = tpu.dynamic_rotate %0 by %c121_i32_342 dim 1 : vector<8x256xf32>, i32 -> vector<8x256xf32>
    %c116 = arith.constant 116 : index
    %c0_343 = arith.constant 0 : index
    %c0_344 = arith.constant 0 : index
    %581 = vector.load %arg2[%c116, %c0_343, %c0_344] : memref<125x8x256xf32, #tpu.memory_space<vmem>>, vector<1x8x256xf32>
    %582 = vector.shape_cast %581 : vector<1x8x256xf32> to vector<8x256xf32>
    %583 = arith.mulf %580, %582 : vector<8x256xf32>
    %c120_i32_345 = arith.constant 120 : i32
    %584 = tpu.dynamic_rotate %0 by %c120_i32_345 dim 1 : vector<8x256xf32>, i32 -> vector<8x256xf32>
    %c117 = arith.constant 117 : index
    %c0_346 = arith.constant 0 : index
    %c0_347 = arith.constant 0 : index
    %585 = vector.load %arg2[%c117, %c0_346, %c0_347] : memref<125x8x256xf32, #tpu.memory_space<vmem>>, vector<1x8x256xf32>
    %586 = vector.shape_cast %585 : vector<1x8x256xf32> to vector<8x256xf32>
    %587 = arith.mulf %584, %586 : vector<8x256xf32>
    %c119_i32_348 = arith.constant 119 : i32
    %588 = tpu.dynamic_rotate %0 by %c119_i32_348 dim 1 : vector<8x256xf32>, i32 -> vector<8x256xf32>
    %c118 = arith.constant 118 : index
    %c0_349 = arith.constant 0 : index
    %c0_350 = arith.constant 0 : index
    %589 = vector.load %arg2[%c118, %c0_349, %c0_350] : memref<125x8x256xf32, #tpu.memory_space<vmem>>, vector<1x8x256xf32>
    %590 = vector.shape_cast %589 : vector<1x8x256xf32> to vector<8x256xf32>
    %591 = arith.mulf %588, %590 : vector<8x256xf32>
    %c118_i32_351 = arith.constant 118 : i32
    %592 = tpu.dynamic_rotate %0 by %c118_i32_351 dim 1 : vector<8x256xf32>, i32 -> vector<8x256xf32>
    %c119 = arith.constant 119 : index
    %c0_352 = arith.constant 0 : index
    %c0_353 = arith.constant 0 : index
    %593 = vector.load %arg2[%c119, %c0_352, %c0_353] : memref<125x8x256xf32, #tpu.memory_space<vmem>>, vector<1x8x256xf32>
    %594 = vector.shape_cast %593 : vector<1x8x256xf32> to vector<8x256xf32>
    %595 = arith.mulf %592, %594 : vector<8x256xf32>
    %596 = tpu.concatenate %579, %583, %587, %591, %595 in 0 : vector<8x256xf32>, vector<8x256xf32>, vector<8x256xf32>, vector<8x256xf32>, vector<8x256xf32> -> vector<40x256xf32>
    %c23_354 = arith.constant 23 : index
    %c0_355 = arith.constant 0 : index
    %c0_356 = arith.constant 0 : index
    %597 = vector.load %arg3[%c23_354, %c0_355, %c0_356] : memref<25x16x40xf32, #tpu.memory_space<vmem>>, vector<1x16x40xf32>
    %598 = vector.shape_cast %597 : vector<1x16x40xf32> to vector<16x40xf32>
    %cst_357 = arith.constant dense<0.000000e+00> : vector<16x256xf32>
    %599 = tpu.matmul %598, %596, %cst_357 {dimension_numbers = #tpu.dot_dimension_numbers<[1], [0], [0], [1], [0, 0, 1, 1], [], []>} : vector<16x40xf32>, vector<40x256xf32>, vector<16x256xf32> -> vector<16x256xf32>
    %600 = arith.addf %575, %599 : vector<16x256xf32>
    %c114_i32_358 = arith.constant 114 : i32
    %601 = tpu.dynamic_rotate %0 by %c114_i32_358 dim 1 : vector<8x256xf32>, i32 -> vector<8x256xf32>
    %c120 = arith.constant 120 : index
    %c0_359 = arith.constant 0 : index
    %c0_360 = arith.constant 0 : index
    %602 = vector.load %arg2[%c120, %c0_359, %c0_360] : memref<125x8x256xf32, #tpu.memory_space<vmem>>, vector<1x8x256xf32>
    %603 = vector.shape_cast %602 : vector<1x8x256xf32> to vector<8x256xf32>
    %604 = arith.mulf %601, %603 : vector<8x256xf32>
    %c113_i32_361 = arith.constant 113 : i32
    %605 = tpu.dynamic_rotate %0 by %c113_i32_361 dim 1 : vector<8x256xf32>, i32 -> vector<8x256xf32>
    %c121 = arith.constant 121 : index
    %c0_362 = arith.constant 0 : index
    %c0_363 = arith.constant 0 : index
    %606 = vector.load %arg2[%c121, %c0_362, %c0_363] : memref<125x8x256xf32, #tpu.memory_space<vmem>>, vector<1x8x256xf32>
    %607 = vector.shape_cast %606 : vector<1x8x256xf32> to vector<8x256xf32>
    %608 = arith.mulf %605, %607 : vector<8x256xf32>
    %c112_i32_364 = arith.constant 112 : i32
    %609 = tpu.dynamic_rotate %0 by %c112_i32_364 dim 1 : vector<8x256xf32>, i32 -> vector<8x256xf32>
    %c122 = arith.constant 122 : index
    %c0_365 = arith.constant 0 : index
    %c0_366 = arith.constant 0 : index
    %610 = vector.load %arg2[%c122, %c0_365, %c0_366] : memref<125x8x256xf32, #tpu.memory_space<vmem>>, vector<1x8x256xf32>
    %611 = vector.shape_cast %610 : vector<1x8x256xf32> to vector<8x256xf32>
    %612 = arith.mulf %609, %611 : vector<8x256xf32>
    %c111_i32_367 = arith.constant 111 : i32
    %613 = tpu.dynamic_rotate %0 by %c111_i32_367 dim 1 : vector<8x256xf32>, i32 -> vector<8x256xf32>
    %c123 = arith.constant 123 : index
    %c0_368 = arith.constant 0 : index
    %c0_369 = arith.constant 0 : index
    %614 = vector.load %arg2[%c123, %c0_368, %c0_369] : memref<125x8x256xf32, #tpu.memory_space<vmem>>, vector<1x8x256xf32>
    %615 = vector.shape_cast %614 : vector<1x8x256xf32> to vector<8x256xf32>
    %616 = arith.mulf %613, %615 : vector<8x256xf32>
    %c110_i32_370 = arith.constant 110 : i32
    %617 = tpu.dynamic_rotate %0 by %c110_i32_370 dim 1 : vector<8x256xf32>, i32 -> vector<8x256xf32>
    %c124 = arith.constant 124 : index
    %c0_371 = arith.constant 0 : index
    %c0_372 = arith.constant 0 : index
    %618 = vector.load %arg2[%c124, %c0_371, %c0_372] : memref<125x8x256xf32, #tpu.memory_space<vmem>>, vector<1x8x256xf32>
    %619 = vector.shape_cast %618 : vector<1x8x256xf32> to vector<8x256xf32>
    %620 = arith.mulf %617, %619 : vector<8x256xf32>
    %621 = tpu.concatenate %604, %608, %612, %616, %620 in 0 : vector<8x256xf32>, vector<8x256xf32>, vector<8x256xf32>, vector<8x256xf32>, vector<8x256xf32> -> vector<40x256xf32>
    %c24_373 = arith.constant 24 : index
    %c0_374 = arith.constant 0 : index
    %c0_375 = arith.constant 0 : index
    %622 = vector.load %arg3[%c24_373, %c0_374, %c0_375] : memref<25x16x40xf32, #tpu.memory_space<vmem>>, vector<1x16x40xf32>
    %623 = vector.shape_cast %622 : vector<1x16x40xf32> to vector<16x40xf32>
    %cst_376 = arith.constant dense<0.000000e+00> : vector<16x256xf32>
    %624 = tpu.matmul %623, %621, %cst_376 {dimension_numbers = #tpu.dot_dimension_numbers<[1], [0], [0], [1], [0, 0, 1, 1], [], []>} : vector<16x40xf32>, vector<40x256xf32>, vector<16x256xf32> -> vector<16x256xf32>
    %625 = arith.addf %600, %624 : vector<16x256xf32>
    %626 = vector.extract_strided_slice %625 {offsets = [0, 0], sizes = [8, 256], strides = [1, 1]} : vector<16x256xf32> to vector<8x256xf32>
    %c0_377 = arith.constant 0 : index
    %c0_378 = arith.constant 0 : index
    %627 = vector.load %arg4[%c0_377, %c0_378] : memref<8x1xf32, #tpu.memory_space<vmem>>, vector<8x1xf32>
    %628 = vector.broadcast %627 : vector<8x1xf32> to vector<8x256xf32>
    %629 = arith.addf %626, %628 : vector<8x256xf32>
    %630 = vector.extract_strided_slice %625 {offsets = [8, 0], sizes = [8, 256], strides = [1, 1]} : vector<16x256xf32> to vector<8x256xf32>
    %c0_379 = arith.constant 0 : index
    %c0_380 = arith.constant 0 : index
    %631 = vector.load %arg5[%c0_379, %c0_380] : memref<8x1xf32, #tpu.memory_space<vmem>>, vector<8x1xf32>
    %632 = vector.broadcast %631 : vector<8x1xf32> to vector<8x256xf32>
    %633 = arith.addf %630, %632 : vector<8x256xf32>
    %c0_381 = arith.constant 0 : index
    %c0_382 = arith.constant 0 : index
    %634 = vector.load %arg6[%c0_381, %c0_382] : memref<16x8xf32, #tpu.memory_space<vmem>>, vector<16x8xf32>
    %cst_383 = arith.constant dense<0.000000e+00> : vector<16x256xf32>
    %635 = tpu.matmul %634, %0, %cst_383 {dimension_numbers = #tpu.dot_dimension_numbers<[1], [0], [0], [1], [0, 0, 1, 1], [], []>} : vector<16x8xf32>, vector<8x256xf32>, vector<16x256xf32> -> vector<16x256xf32>
    %cst_384 = arith.constant dense<0.000000e+00> : vector<16xf32>
    %636 = vector.multi_reduction <add>, %635, %cst_384 [1] : vector<16x256xf32> to vector<16xf32>
    %637 = vector.shape_cast %636 : vector<16xf32> to vector<16x1xf32>
    %cst_385 = arith.constant 2.560000e+02 : f32
    %638 = vector.broadcast %cst_385 : f32 to vector<16x1xf32>
    %639 = arith.divf %637, %638 : vector<16x1xf32>
    %640 = vector.extract_strided_slice %639 {offsets = [0, 0], sizes = [8, 1], strides = [1, 1]} : vector<16x1xf32> to vector<8x1xf32>
    %c0_386 = arith.constant 0 : index
    %c0_387 = arith.constant 0 : index
    %641 = vector.load %arg7[%c0_386, %c0_387] : memref<8x1xf32, #tpu.memory_space<vmem>>, vector<8x1xf32>
    %642 = arith.addf %640, %641 : vector<8x1xf32>
    %643 = vector.shape_cast %642 : vector<8x1xf32> to vector<8x1xf32>
    %644 = vector.broadcast %643 : vector<8x1xf32> to vector<8x256xf32>
    %645 = vector.extract_strided_slice %639 {offsets = [8, 0], sizes = [8, 1], strides = [1, 1]} : vector<16x1xf32> to vector<8x1xf32>
    %c0_388 = arith.constant 0 : index
    %c0_389 = arith.constant 0 : index
    %646 = vector.load %arg8[%c0_388, %c0_389] : memref<8x1xf32, #tpu.memory_space<vmem>>, vector<8x1xf32>
    %647 = arith.addf %645, %646 : vector<8x1xf32>
    %648 = vector.shape_cast %647 : vector<8x1xf32> to vector<8x1xf32>
    %649 = vector.broadcast %648 : vector<8x1xf32> to vector<8x256xf32>
    %c0_390 = arith.constant 0 : index
    %c0_391 = arith.constant 0 : index
    %650 = vector.load %arg9[%c0_390, %c0_391] : memref<8x16xf32, #tpu.memory_space<vmem>>, vector<8x16xf32>
    %cst_392 = arith.constant dense<0.000000e+00> : vector<8x256xf32>
    %651 = tpu.matmul %650, %625, %cst_392 {dimension_numbers = #tpu.dot_dimension_numbers<[1], [0], [0], [1], [0, 0, 1, 1], [], []>} : vector<8x16xf32>, vector<16x256xf32>, vector<8x256xf32> -> vector<8x256xf32>
    %652 = arith.addf %651, %649 : vector<8x256xf32>
    %c0_393 = arith.constant 0 : index
    %c0_394 = arith.constant 0 : index
    %653 = vector.load %arg10[%c0_393, %c0_394] : memref<8x1xf32, #tpu.memory_space<vmem>>, vector<8x1xf32>
    %654 = vector.broadcast %653 : vector<8x1xf32> to vector<8x256xf32>
    %655 = arith.addf %652, %654 : vector<8x256xf32>
    %cst_395 = arith.constant dense<0xFF800000> : vector<256xf32>
    %656 = vector.multi_reduction <maximumf>, %655, %cst_395 [0] : vector<8x256xf32> to vector<256xf32>
    %657 = vector.shape_cast %656 : vector<256xf32> to vector<1x256xf32>
    %658 = vector.broadcast %657 : vector<1x256xf32> to vector<8x256xf32>
    %659 = arith.subf %655, %658 : vector<8x256xf32>
    %660 = math.exp %659 : vector<8x256xf32>
    %cst_396 = arith.constant dense<0.000000e+00> : vector<256xf32>
    %661 = vector.multi_reduction <add>, %660, %cst_396 [0] : vector<8x256xf32> to vector<256xf32>
    %662 = vector.shape_cast %661 : vector<256xf32> to vector<1x256xf32>
    %663 = tpu.reciprocal %662 {approx = true} : vector<1x256xf32> -> vector<1x256xf32>
    %664 = vector.broadcast %663 : vector<1x256xf32> to vector<8x256xf32>
    %665 = arith.mulf %660, %664 : vector<8x256xf32>
    %666 = arith.mulf %665, %629 : vector<8x256xf32>
    %c0_397 = arith.constant 0 : index
    %c0_398 = arith.constant 0 : index
    %c0_399 = arith.constant 0 : index
    %c0_400 = arith.constant 0 : index
    %667 = vector.load %arg11[%c0_397, %c0_398, %c0_399, %c0_400] : memref<1x3x8x256xf32, #tpu.memory_space<vmem>>, vector<1x1x8x256xf32>
    %668 = vector.shape_cast %667 : vector<1x1x8x256xf32> to vector<8x256xf32>
    %669 = vector.shape_cast %666 : vector<8x256xf32> to vector<1x1x8x256xf32>
    tpu.vector_store %arg11[%c0_397, %c0_398, %c0_399, %c0_400], %669 {strides = array<i32>} : memref<1x3x8x256xf32, #tpu.memory_space<vmem>>, vector<1x1x8x256xf32>,
    %670 = arith.mulf %665, %633 : vector<8x256xf32>
    %c0_401 = arith.constant 0 : index
    %c1_402 = arith.constant 1 : index
    %c0_403 = arith.constant 0 : index
    %c0_404 = arith.constant 0 : index
    %671 = vector.load %arg11[%c0_401, %c1_402, %c0_403, %c0_404] : memref<1x3x8x256xf32, #tpu.memory_space<vmem>>, vector<1x1x8x256xf32>
    %672 = vector.shape_cast %671 : vector<1x1x8x256xf32> to vector<8x256xf32>
    %673 = vector.shape_cast %670 : vector<8x256xf32> to vector<1x1x8x256xf32>
    tpu.vector_store %arg11[%c0_401, %c1_402, %c0_403, %c0_404], %673 {strides = array<i32>} : memref<1x3x8x256xf32, #tpu.memory_space<vmem>>, vector<1x1x8x256xf32>,
    %674 = arith.mulf %665, %644 : vector<8x256xf32>
    %c0_405 = arith.constant 0 : index
    %c2_406 = arith.constant 2 : index
    %c0_407 = arith.constant 0 : index
    %c0_408 = arith.constant 0 : index
    %675 = vector.load %arg11[%c0_405, %c2_406, %c0_407, %c0_408] : memref<1x3x8x256xf32, #tpu.memory_space<vmem>>, vector<1x1x8x256xf32>
    %676 = vector.shape_cast %675 : vector<1x1x8x256xf32> to vector<8x256xf32>
    %677 = vector.shape_cast %674 : vector<8x256xf32> to vector<1x1x8x256xf32>
    tpu.vector_store %arg11[%c0_405, %c2_406, %c0_407, %c0_408], %677 {strides = array<i32>} : memref<1x3x8x256xf32, #tpu.memory_space<vmem>>, vector<1x1x8x256xf32>,
    return
  }
  func.func @transform_0(%arg0: i32) -> (i32, i32) {
    %c0_i32 = arith.constant 0 : i32
    %c0_i32_0 = arith.constant 0 : i32
    return %c0_i32, %arg0 : i32, i32
  }
  func.func @transform_1(%arg0: i32) -> (i32, i32, i32) {
    %c0_i32 = arith.constant 0 : i32
    %c0_i32_0 = arith.constant 0 : i32
    %c0_i32_1 = arith.constant 0 : i32
    %c0_i32_2 = arith.constant 0 : i32
    return %c0_i32, %c0_i32_0, %c0_i32_1 : i32, i32, i32
  }
  func.func @transform_2(%arg0: i32) -> (i32, i32, i32) {
    %c0_i32 = arith.constant 0 : i32
    %c0_i32_0 = arith.constant 0 : i32
    %c0_i32_1 = arith.constant 0 : i32
    %c0_i32_2 = arith.constant 0 : i32
    return %c0_i32, %c0_i32_0, %c0_i32_1 : i32, i32, i32
  }
  func.func @transform_3(%arg0: i32) -> (i32, i32) {
    %c0_i32 = arith.constant 0 : i32
    %c0_i32_0 = arith.constant 0 : i32
    %c0_i32_1 = arith.constant 0 : i32
    return %c0_i32, %c0_i32_0 : i32, i32
  }
  func.func @transform_4(%arg0: i32) -> (i32, i32) {
    %c0_i32 = arith.constant 0 : i32
    %c0_i32_0 = arith.constant 0 : i32
    %c0_i32_1 = arith.constant 0 : i32
    return %c0_i32, %c0_i32_0 : i32, i32
  }
  func.func @transform_5(%arg0: i32) -> (i32, i32) {
    %c0_i32 = arith.constant 0 : i32
    %c0_i32_0 = arith.constant 0 : i32
    %c0_i32_1 = arith.constant 0 : i32
    return %c0_i32, %c0_i32_0 : i32, i32
  }
  func.func @transform_6(%arg0: i32) -> (i32, i32) {
    %c0_i32 = arith.constant 0 : i32
    %c0_i32_0 = arith.constant 0 : i32
    %c0_i32_1 = arith.constant 0 : i32
    return %c0_i32, %c0_i32_0 : i32, i32
  }
  func.func @transform_7(%arg0: i32) -> (i32, i32) {
    %c0_i32 = arith.constant 0 : i32
    %c0_i32_0 = arith.constant 0 : i32
    %c0_i32_1 = arith.constant 0 : i32
    return %c0_i32, %c0_i32_0 : i32, i32
  }
  func.func @transform_8(%arg0: i32) -> (i32, i32) {
    %c0_i32 = arith.constant 0 : i32
    %c0_i32_0 = arith.constant 0 : i32
    %c0_i32_1 = arith.constant 0 : i32
    return %c0_i32, %c0_i32_0 : i32, i32
  }
  func.func @transform_9(%arg0: i32) -> (i32, i32) {
    %c0_i32 = arith.constant 0 : i32
    %c0_i32_0 = arith.constant 0 : i32
    %c0_i32_1 = arith.constant 0 : i32
    return %c0_i32, %c0_i32_0 : i32, i32
  }
  func.func @transform_10(%arg0: i32) -> (i32, i32, i32, i32) {
    %c0_i32 = arith.constant 0 : i32
    %c0_i32_0 = arith.constant 0 : i32
    %c0_i32_1 = arith.constant 0 : i32
    %c0_i32_2 = arith.constant 0 : i32
    return %arg0, %c0_i32, %c0_i32_0, %c0_i32_1 : i32, i32, i32, i32
  }
}

</mosaic_0001>

<bundles_post_ra>
// kernel: tpu_custom_call.1
= control target key start
LH: loop header
LB: loop body
LE: loop exit
PB: predicated region body
PF: predicated region fallthrough
CT: control target
= control target key end

     0   :  { %15 = vsyncpa [#allocation3], 0  ;;  %s5783_s0 = inlined_call_operand.vmem [shape: f32[8,512], index: 0, kind: input, shape index: {}]   ;;  %s5784_s1 = inlined_call_operand.hbm [shape: f32[125,8,256], index: 1, kind: input, shape index: {}]   ;;  %s5785_s2 = inlined_call_operand.hbm [shape: f32[25,16,40], index: 2, kind: input, shape index: {}]   ;;  %s5786_s3 = inlined_call_operand.vmem [shape: f32[8,1], index: 3, kind: input, shape index: {}]   ;;  %s5787_s4 = inlined_call_operand.vmem [shape: f32[8,1], index: 4, kind: input, shape index: {}]   ;;  %s5788_s5 = inlined_call_operand.vmem [shape: f32[16,8], index: 5, kind: input, shape index: {}]   ;;  %s5789_s6 = inlined_call_operand.vmem [shape: f32[8,1], index: 6, kind: input, shape index: {}]   ;;  %s5790_s7 = inlined_call_operand.vmem [shape: f32[8,1], index: 7, kind: input, shape index: {}]   ;;  %s5791_s8 = inlined_call_operand.vmem [shape: f32[8,16], index: 8, kind: input, shape index: {}]   ;;  %s5792_s9 = inlined_call_operand.vmem [shape: f32[8,1], index: 9, kind: input, shape index: {}]   ;;  %s5793_s10 = inlined_call_operand.hbm [shape: f32[2,3,8,256], index: 10, kind: output, shape index: {}]  }
   0x1   :  { %16 = vsyncpa [#allocation6], 0 }
   0x2   :  { %17 = vsyncpa [#allocation4], 0 }
   0x3   :  { %19 = vsyncpa [#allocation4 + $0x1], 0  ;;  %s4702_s13 = smov 0   ;;  %s4704_s14 = smov 0  }
   0x4   :  { %s4706_s15 = smov 0   ;;  %s4708_s16 = smov 0  }
   0x5 LB: > { %5846 = sst [smem:[#allocation11_spill]] %s4582_s15  ;;  %s4723_s17 = sadd.s32 4294967295, %s4586_s16   ;;  %s4586_s16 = sphi %s4708_s16, %s5975_s16   ;;  %s4582_s15 = sphi %s4706_s15, %s5977_s15   ;;  %s4578_s14 = sphi %s4704_s14, %s5979_s14   ;;  %s4574_s13 = sphi %s4702_s13, %s5978_s13  }
   0x6   : > { %s3958_s18 = sadd.s32 4294967294, %s4586_s16   ;;  %s4727_s19 = sadd.s32 1, %s4586_s16  }
   0x7   : > { %5847 = sst [smem:[#allocation12_spill]] %s4727_s19  ;;  %s247_s20 = sadd.s32 1, %s4582_s15 }
   0x8   : > { %s244_s21 = ssub.s32 %s4586_s16, %s4727_s19  ;;  %p257_p0 = scmp.ne.s32.totalorder %s4582_s15, %s4578_s14 }
   0x9   : > { %p245_p1 = scmp.eq.s32.totalorder %s244_s21, 0  ;;  %p258_p2 = scmp.eq.s32.totalorder %s4723_s17, 1 }
   0xa   : > { %p263_p3 = scmp.ne.s32.totalorder %s4578_s14, %s4574_s13  ;;  %p264_p4 = scmp.eq.s32.totalorder %s3958_s18, 1 }
   0xb   : > { %s4738_s22 = scalar_select %p245_p1, %s4582_s15, %s247_s20  }
   0xc   : > { %p4740_p5 = por %p258_p2, %p257_p0  ;;  %p4744_p6 = por %p264_p4, %p263_p3 }
   0xd   : > { %5848 = sst [smem:[#allocation13_spill]] %s4738_s22  ;;  %p3959_p7 = scmp.ge.s32.totalorder %s4586_s16, 1 }
   0xe   : > { %s5849_s23 = scalar_select %p4740_p5, 1, 0 }
   0xf   : > { %s5850_s24 = scalar_select %p4744_p6, 1, 0 }
  0x10   : > { %p271_p8 = scmp.lt.s32.totalorder %s4586_s16, 3  ;;  %p5794_p9 = scmp.eq.s32.totalorder %s4723_s17, 0 }
  0x11   : > { %5851 = sst [smem:[#allocation14_spill]] %s5850_s24  ;;  %s4588_s26 = smov [#allocation2]  }
  0x12   : > { %p4751_p10 = pnand %p3959_p7, %p271_p8  ;;  %s283_s27 = sshll.u32 %s4588_s26, 4  ;;  %s284_s27 = int_to_ptr.vmem [resolvable:$true] %s283_s27 }
  0x13   : > { %s4589_s29 = smov [#allocation5]   ;;  %s4460_s18 = scalar_lea.hbm %s5784_s1, 32000 }
  0x14   : > { %s5852_s25 = scalar_select %p4751_p10, 1, 0 }
  0x15   : > { %p4340_p11 = pneg %p4751_p10  ;;  %s296_s30 = sshll.u32 %s4589_s29, 4  ;;  %s4763_s30 = int_to_ptr.vmem [resolvable:$true] %s296_s30 }
  0x16   : > { %p4461_p13 = scmp.ne.s32.totalorder %s5784_s1, %s4460_s18  ;;  %p4467_p3 = scmp.lt.u32.totalorder %s4460_s18, %s5784_s1 }
  0x17   : > { %p4759_p12 = pnand %p5794_p9, %p4340_p11 }
  0x19   : > { %p4462_p0 = pneg %p4759_p12 }
  0x1b   : > { %p4463_p1 = pnand %p4462_p0, %p4461_p13 }
  0x1d   : > { %p4464_p2 = pneg %p4463_p1 }
  0x1f   : > { %p4469_p4 = pnand %p4467_p3, %p4464_p2 }
  0x21   : > { %4472 = shalt.err (!%p4469_p4)
}
  0x22   : > { %s4473_s29 = scalar_lea.vmem %s284_s27, 32000  ;;  %p4481_p9 = scmp.lt.s32.totalorder %s284_s27, %s284_s27 }
  0x23   : > { %p4474_p7 = scmp.ne.s32.totalorder %s284_s27, %s4473_s29  ;;  %p4482_p6 = scmp.lt.s32.totalorder %s4473_s29, %s4473_s29 }
  0x25   : > { %p4476_p8 = pnand %p4474_p7, %p4462_p0  ;;  %p4483_p5 = por %p4482_p6, %p4481_p9 }
  0x27   : > { %p4477_p11 = pneg %p4476_p8 }
  0x29   : > { %p4484_p10 = pnand %p4483_p5, %p4477_p11 }
  0x2b   : > { %4487 = shalt.err (!%p4484_p10)
}
  0x2c   : > { %s4590_s11 = smov 256   ;;  %s4591_s12 = smov 16  }
  0x2d   : > { %4343 = dma.hbm_to_vmem [thread:$0]  (!%p4759_p12), %s5784_s1, 32000, %s284_s27, [#allocation3], %s4590_s11, %s4590_s11, %s4591_s12  }
  0x2e   : > { %s4488_s26 = scalar_lea.hbm %s5785_s2, 6400 }
  0x2f   : > { %p4489_p13 = scmp.ne.s32.totalorder %s5785_s2, %s4488_s26  ;;  %p4495_p9 = scmp.lt.u32.totalorder %s4488_s26, %s5785_s2 }
  0x31   : > { %p4491_p5 = pnand %p4489_p13, %p4462_p0 }
  0x33   : > { %p4492_p6 = pneg %p4491_p5 }
  0x35   : > { %p4497_p10 = pnand %p4495_p9, %p4492_p6 }
  0x37   : > { %4500 = shalt.err (!%p4497_p10)
}
  0x38   : > { %s4501_s27 = scalar_lea.vmem %s4763_s30, 6400  ;;  %p4509_p4 = scmp.lt.s32.totalorder %s4763_s30, %s4763_s30 }
  0x39   : > { %p4502_p1 = scmp.ne.s32.totalorder %s4763_s30, %s4501_s27  ;;  %p4510_p7 = scmp.lt.s32.totalorder %s4501_s27, %s4501_s27 }
  0x3b   : > { %p4504_p2 = pnand %p4502_p1, %p4462_p0  ;;  %p4511_p8 = por %p4510_p7, %p4509_p4 }
  0x3d   : > { %p4505_p3 = pneg %p4504_p2 }
  0x3f   : > { %p4512_p11 = pnand %p4511_p8, %p4505_p3 }
  0x41   : > { %4515 = shalt.err (!%p4512_p11)
}
  0x42   : > { %s4592_s15 = smov 128   ;;  %s4593_s19 = smov 8  }
  0x43   : > { %4346 = dma.hbm_to_vmem [thread:$0]  (!%p4759_p12), %s5785_s2, 6400, %s4763_s30, [#allocation6], %s4592_s15, %s4592_s15, %s4593_s19  }
  0x44   : > { %p5854_p13 = scmp.ne.s32.totalorder %s5852_s25, 0 }
  0x46   : > { %342 = sbr.rel (%p5854_p13) target bundleno = 1003 (0x3eb), region = 60 }
  0x4d   : > { %p5855_p0 = scmp.eq.s32.totalorder %s4723_s17, 0 }
  0x4f   : > { %4561 = dma.done.wait (%p5855_p0), [#allocation3], 32000   ;;  %p5856_p5 = pmov %p5855_p0 }
  0x50   : > { %p5857_p6 = pmov %p5855_p0 }
  0x51   : > { %4563 = vsyncadd (%p5856_p5), [#allocation3], 4294935296 }
  0x52   : > { %4565 = dma.done.wait (%p5857_p6), [#allocation6], 6400   ;;  %p5858_p9 = pmov %p5855_p0 }
  0x53   : > { %s3966_s28 = sshll.u32 %s4723_s17, 1  ;;  %s4594_s18 = smov 1   ;;  %v5801_v2 = vmov 0.0   ;;  %v396_v3 = vlaneseq  ;;  %v705_v7 = vld [vmem:[#allocation2 + $0xb0] sm:$0xff]  ;;  %v706_v8 = vld [vmem:[#allocation2 + $0xb8] sm:$0xff]  ;;  %v693_v9 = vld [vmem:[#allocation2 + $0xa0] sm:$0xff] }
  0x54   : > { %4567 = vsyncadd (%p5858_p9), [#allocation6], 4294960896  ;;  %p385_p10 = scmp.lt.s32.totalorder %s3966_s28, 3  ;;  %s4595_s20 = smov 2   ;;  %2206 = vmatprep.mubr.f32.mxu0 %v5801_v2  ;;  %589 = vmatprep.mubr.f32.mxu1 %v5801_v2  ;;  %v694_v11 = vld [vmem:[#allocation2 + $0xa8] sm:$0xff]  ;;  %v2115_v19 = vld [vmem:[#allocation2 + $0x3d8] sm:$0xff] }
  0x55   : > { %s4596_s21 = smov 127   ;;  %s4597_s26 = smov 10   ;;  %v4896_v4 = vand.u32 127, %v396_v3  ;;  %v2110_v13 = vld [vmem:[#allocation2 + $0x3c8] sm:$0xff]  ;;  %v2109_v20 = vld [vmem:[#allocation2 + $0x3c0] sm:$0xff]  ;;  %v2114_v21 = vld [vmem:[#allocation2 + $0x3d0] sm:$0xff] }
  0x56   : > { %s5981_s28 = smov (!%p385_p10, %s3966_s28), 3  ;;  %s4598_s29 = smov 9   ;;  %v2120_v14 = vld [vmem:[#allocation2 + $0x3e8] sm:$0xff]  ;;  %v2124_v26 = vld [vmem:[#allocation2 + $0x3f0] sm:$0xff]  ;;  %v2125_v27 = vld [vmem:[#allocation2 + $0x3f8] sm:$0xff]  ;;  %vm518_vm7 = vcmask 326656  }
  0x57   : > { %s3967_s30 = sshll.u32 %s5981_s28, 3  ;;  %s4599_s27 = smov 126   ;;  %vm701_vm0 = vcmp.lt.s32.totalorder %v4896_v4, 1  ;;  %vm689_vm1 = vcmp.lt.s32.totalorder %v4896_v4, 2  ;;  %vm718_vm2 = vcmp.lt.s32.totalorder %v4896_v4, 127  ;;  %v2119_v29 = vld [vmem:[#allocation2 + $0x3e0] sm:$0xff] }
  0x58   : > { %s4826_s22 = scalar_lea.vmem %s5783_s0, %s3967_s30  ;;  %s4601_s15 = smov 122   ;;  %v3264_v30 = vld [vmem:[#allocation2 + $0x6f0] sm:$0xff]  ;;  %v3265_v37 = vld [vmem:[#allocation2 + $0x6f8] sm:$0xff]  ;;  %v3259_v38 = vld [vmem:[#allocation2 + $0x6e0] sm:$0xff]  ;;  %vm459_vm3 = vcmp.lt.s32.totalorder %v4896_v4, 10  ;;  %vm471_vm4 = vcmp.lt.s32.totalorder %v4896_v4, 9 }
  0x59   : > { %v4829_v0 = vld [vmem:[%s4826_s22] sm:$0xff]  ;;  %v4834_v1 = vld [vmem:[%s4826_s22 + $0x8] sm:$0xff]  ;;  %s4602_s19 = smov 121   ;;  %s4603_s24 = smov 8   ;;  %v1994_v54 = vld [vmem:[#allocation2 + $0x370] sm:$0xff]  ;;  %vm730_vm5 = vcmp.lt.s32.totalorder %v4896_v4, 126 }
  0x5a   : > { %697 = vrot.lane.b32.xlu1 %v4829_v0, %s4594_s18  ;;  %685 = vrot.lane.b32.xlu0 %v4829_v0, %s4595_s20  ;;  %s4604_s11 = smov 7   ;;  %s4605_s28 = smov 120   ;;  %v2122_v28 = vmul.f32 %v2120_v14, %v4834_v1  ;;  %v3260_v39 = vld [vmem:[#allocation2 + $0x6e8] sm:$0xff]  ;;  %v2121_v46 = vmul.f32 %v2119_v29, %v4829_v0  ;;  %v1995_v57 = vld [vmem:[#allocation2 + $0x378] sm:$0xff]  ;;  %v3144_v58 = vld [vmem:[#allocation2 + $0x690] sm:$0xff]  ;;  %vm832_vm6 = vcmp.lt.s32.totalorder %v4896_v4, 122 }
  0x5b   : > { %s4606_s30 = smov 119   ;;  %s4607_s12 = smov 18   ;;  %v3145_v61 = vld [vmem:[#allocation2 + $0x698] sm:$0xff]  ;;  %v1999_v63 = vld [vmem:[#allocation2 + $0x380] sm:$0xff]  ;;  %v463_v14 = vld [vmem:[#allocation2 + $0x50] sm:$0xff]  ;;  %vm844_vm8 = vcmp.lt.s32.totalorder %v4896_v4, 121 }
  0x5c   : > { %s4608_s25 = smov 17   ;;  %v464_v3 = vld [vmem:[#allocation2 + $0x58] sm:$0xff]  ;;  %vm483_vm9 = vcmp.lt.s32.totalorder %v4896_v4, 8  ;;  %vm495_vm10 = vcmp.lt.s32.totalorder %v4896_v4, 7  ;;  %vm856_vm11 = vcmp.lt.s32.totalorder %v4896_v4, 120  ;;  %vm868_vm12 = vcmp.lt.s32.totalorder %v4896_v4, 119 }
  0x5d   : > { %vm398_vm13 = vcmp.lt.s32.totalorder %v4896_v4, 18  ;;  %vm409_vm14 = vcmp.lt.s32.totalorder %v4896_v4, 17  ;;  %v414_v42 = vld [vmem:[#allocation2 + $0x18] sm:$0xff]  ;;  %vm507_vm15 = vcmp.lt.s32.totalorder %v4896_v4, 6  ;;  %p5972_p1 = scmp.ne.s32.totalorder %s5849_s23, 0 }
  0x5e   : > { %699 = vrot.lane.b32.xlu1 %v4834_v1, %s4594_s18  ;;  %687 = vrot.lane.b32.xlu0 %v4834_v1, %s4595_s20  ;;  %s4609_s18 = smov 6   ;;  %s4610_s20 = smov 118  }
  0x62   : > { %716 = vrot.lane.b32.xlu1 %v4834_v1, %s4596_s21  ;;  %714 = vrot.lane.b32.xlu0 %v4829_v0, %s4596_s21  ;;  %s4611_s21 = smov 114  }
  0x66   : > { %457 = vrot.lane.b32.xlu1 %v4834_v1, %s4597_s26  ;;  %455 = vrot.lane.b32.xlu0 %v4829_v0, %s4597_s26  ;;  %s4612_s26 = smov 113  }
  0x6a   : > { %469 = vrot.lane.b32.xlu1 %v4834_v1, %s4598_s29  ;;  %467 = vrot.lane.b32.xlu0 %v4829_v0, %s4598_s29  ;;  %s4613_s29 = smov 16  }
  0x6e   : > { %728 = vrot.lane.b32.xlu1 %v4834_v1, %s4599_s27  ;;  %726 = vrot.lane.b32.xlu0 %v4829_v0, %s4599_s27  ;;  %s4614_s27 = smov 15  }
  0x72   : > { %830 = vrot.lane.b32.xlu1 %v4834_v1, %s4601_s15  ;;  %828 = vrot.lane.b32.xlu0 %v4829_v0, %s4601_s15  ;;  %s4615_s15 = smov 112  }
  0x76   : > { %842 = vrot.lane.b32.xlu1 %v4834_v1, %s4602_s19  ;;  %840 = vrot.lane.b32.xlu0 %v4829_v0, %s4602_s19  ;;  %s4616_s19 = smov 111  }
  0x7a   : > { %481 = vrot.lane.b32.xlu1 %v4834_v1, %s4603_s24  ;;  %479 = vrot.lane.b32.xlu0 %v4829_v0, %s4603_s24  ;;  %s4617_s24 = smov 14  }
  0x7e   : > { %493 = vrot.lane.b32.xlu1 %v4834_v1, %s4604_s11  ;;  %491 = vrot.lane.b32.xlu0 %v4829_v0, %s4604_s11  ;;  %s4618_s11 = smov 110  }
  0x82   : > { %854 = vrot.lane.b32.xlu1 %v4834_v1, %s4605_s28  ;;  %852 = vrot.lane.b32.xlu0 %v4829_v0, %s4605_s28  ;;  %s4619_s28 = smov 82  }
  0x86   : > { %866 = vrot.lane.b32.xlu1 %v4834_v1, %s4606_s30  ;;  %864 = vrot.lane.b32.xlu0 %v4829_v0, %s4606_s30  ;;  %s4620_s30 = smov 81  }
  0x8a   : > { %394 = vrot.lane.b32.xlu1 %v4834_v1, %s4607_s12  ;;  %392 = vrot.lane.b32.xlu0 %v4829_v0, %s4607_s12  ;;  %s4621_s12 = smov 80  }
  0x8e   : > { %407 = vrot.lane.b32.xlu1 %v4834_v1, %s4608_s25  ;;  %405 = vrot.lane.b32.xlu0 %v4829_v0, %s4608_s25  ;;  %s4622_s25 = smov 79  }
  0x92   : > { %505 = vrot.lane.b32.xlu1 %v4834_v1, %s4609_s18  ;;  %503 = vrot.lane.b32.xlu0 %v4829_v0, %s4609_s18  ;;  %s4623_s18 = smov 78  }
  0x96   : > { %878 = vrot.lane.b32.xlu1 %v4834_v1, %s4610_s20  ;;  %876 = vrot.lane.b32.xlu0 %v4829_v0, %s4610_s20  ;;  %s4624_s20 = smov 74  }
  0x9a   : > { %980 = vrot.lane.b32.xlu1 %v4834_v1, %s4611_s21  ;;  %978 = vrot.lane.b32.xlu0 %v4829_v0, %s4611_s21  ;;  %s4625_s21 = smov 73  }
  0x9e   : > { %992 = vrot.lane.b32.xlu1 %v4834_v1, %s4612_s26  ;;  %990 = vrot.lane.b32.xlu0 %v4829_v0, %s4612_s26  ;;  %s4626_s26 = smov 72  }
  0xa2   : > { %419 = vrot.lane.b32.xlu1 %v4834_v1, %s4613_s29  ;;  %417 = vrot.lane.b32.xlu0 %v4829_v0, %s4613_s29 }
  0xa6   : > { %431 = vrot.lane.b32.xlu1 %v4834_v1, %s4614_s27  ;;  %429 = vrot.lane.b32.xlu0 %v4829_v0, %s4614_s27  ;;  %s4627_s27 = smov 71  }
  0xaa   : > { %1004 = vrot.lane.b32.xlu1 %v4834_v1, %s4615_s15  ;;  %1002 = vrot.lane.b32.xlu0 %v4829_v0, %s4615_s15  ;;  %s4628_s15 = smov 70  }
  0xae   : > { %1016 = vrot.lane.b32.xlu1 %v4834_v1, %s4616_s19  ;;  %1014 = vrot.lane.b32.xlu0 %v4829_v0, %s4616_s19  ;;  %s4629_s19 = smov 66  }
  0xb2   : > { %443 = vrot.lane.b32.xlu1 %v4834_v1, %s4617_s24  ;;  %441 = vrot.lane.b32.xlu0 %v4829_v0, %s4617_s24  ;;  %s4630_s24 = smov 65  }
  0xb6   : > { %1028 = vrot.lane.b32.xlu1 %v4834_v1, %s4618_s11  ;;  %1026 = vrot.lane.b32.xlu0 %v4829_v0, %s4618_s11  ;;  %s4631_s11 = smov 64  }
  0xba   : > { %1130 = vrot.lane.b32.xlu1 %v4834_v1, %s4619_s28  ;;  %1128 = vrot.lane.b32.xlu0 %v4829_v0, %s4619_s28  ;;  %s4632_s28 = smov 63  }
  0xbe   : > { %1142 = vrot.lane.b32.xlu1 %v4834_v1, %s4620_s30  ;;  %1140 = vrot.lane.b32.xlu0 %v4829_v0, %s4620_s30  ;;  %s4633_s30 = smov 62  }
  0xc2   : > { %1154 = vrot.lane.b32.xlu1 %v4834_v1, %s4621_s12  ;;  %1152 = vrot.lane.b32.xlu0 %v4829_v0, %s4621_s12  ;;  %s4634_s12 = smov 58  }
  0xc6   : > { %1166 = vrot.lane.b32.xlu1 %v4834_v1, %s4622_s25  ;;  %1164 = vrot.lane.b32.xlu0 %v4829_v0, %s4622_s25  ;;  %s4635_s25 = smov 57  }
  0xca   : > { %1178 = vrot.lane.b32.xlu1 %v4834_v1, %s4623_s18  ;;  %1176 = vrot.lane.b32.xlu0 %v4829_v0, %s4623_s18  ;;  %s4636_s18 = smov 56  }
  0xcc   : > { %v698_v5 = vpop.permute.xlu1 %697  ;;  %v686_v6 = vpop.permute.xlu0 %685 }
  0xce   : > { %1280 = vrot.lane.b32.xlu1 %v4834_v1, %s4624_s20  ;;  %1278 = vrot.lane.b32.xlu0 %v4829_v0, %s4624_s20  ;;  %s4637_s20 = smov 55  }
  0xd0   : > { %v700_v10 = vpop.permute.xlu1 %699  ;;  %v688_v12 = vpop.permute.xlu0 %687 }
  0xd1   : > { %v702_v15 = vsel %vm701_vm0, %v698_v5, %v700_v10  ;;  %v703_v16 = vsel %vm701_vm0, %v700_v10, %v698_v5  ;;  %v690_v17 = vsel %vm689_vm1, %v686_v6, %v688_v12  ;;  %v691_v18 = vsel %vm689_vm1, %v688_v12, %v686_v6  ;;  %v2000_v6 = vld [vmem:[#allocation2 + $0x388] sm:$0xff] }
  0xd2   : > { %v4902_v22 = vmul.f32 %v705_v7, %v702_v15  ;;  %v4904_v23 = vmul.f32 %v706_v8, %v703_v16  ;;  %1292 = vrot.lane.b32.xlu1 %v4834_v1, %s4625_s21  ;;  %v4908_v24 = vmul.f32 %v693_v9, %v690_v17  ;;  %v4910_v25 = vmul.f32 %v694_v11, %v691_v18  ;;  %v3149_v7 = vld [vmem:[#allocation2 + $0x6a0] sm:$0xff]  ;;  %v3150_v8 = vld [vmem:[#allocation2 + $0x6a8] sm:$0xff] }
  0xd3   : > { %1290 = vrot.lane.b32.xlu0 %v4829_v0, %s4625_s21  ;;  %v2112_v33 = vmul.f32 %v2110_v13, %v690_v17  ;;  %v2117_v34 = vmul.f32 %v2115_v19, %v702_v15  ;;  %v2111_v35 = vmul.f32 %v2109_v20, %v691_v18  ;;  %v2116_v36 = vmul.f32 %v2114_v21, %v703_v16  ;;  %v476_v13 = vld [vmem:[#allocation2 + $0x68] sm:$0xff]  ;;  %s4638_s21 = smov 54  }
  0xd4   : > { %v717_v31 = vpop.permute.xlu1 %716  ;;  %v715_v32 = vpop.permute.xlu0 %714  ;;  %v4931_v47 = vmul.f32 %v3264_v30, %v702_v15  ;;  %v4934_v50 = vmul.f32 %v3265_v37, %v703_v16  ;;  %v4936_v51 = vmul.f32 %v3259_v38, %v690_v17  ;;  %v4938_v52 = vmul.f32 %v3260_v39, %v691_v18  ;;  %v475_v15 = vld [vmem:[#allocation2 + $0x60] sm:$0xff]  ;;  %v3155_v16 = vld [vmem:[#allocation2 + $0x6b8] sm:$0xff] }
  0xd5   : > { %v4916_v40 = vsel %vm718_vm2, %v715_v32, %v717_v31  ;;  %v4920_v41 = vsel %vm718_vm2, %v717_v31, %v715_v32  ;;  %v4124_v48 = vpack.c.bf16 %v2117_v34, %v2112_v33  ;;  %v4126_v49 = vpack.c.bf16 %v2116_v36, %v2111_v35  ;;  %v2130_v33 = vld [vmem:[#allocation2 + $0x408] sm:$0xff]  ;;  %v2129_v34 = vld [vmem:[#allocation2 + $0x400] sm:$0xff] }
  0xd6   : > { %v2126_v44 = vmul.f32 %v2124_v26, %v4916_v40  ;;  %v2127_v45 = vmul.f32 %v2125_v27, %v4920_v41  ;;  %1304 = vrot.lane.b32.xlu1 %v4834_v1, %s4626_s26  ;;  %5859 = vst [vmem:[#allocation15_spill] sm:$0xff] %v4931_v47  ;;  %5860 = vst [vmem:[#allocation16_spill] sm:$0xff] %v4934_v50  ;;  %vm880_vm0 = vcmp.lt.s32.totalorder %v4896_v4, 118  ;;  %vm982_vm1 = vcmp.lt.s32.totalorder %v4896_v4, 114 }
  0xd7   : > { %1302 = vrot.lane.b32.xlu0 %v4829_v0, %s4626_s26  ;;  %5861 = vst [vmem:[#allocation17_spill] sm:$0xff] %v4936_v51  ;;  %5862 = vst [vmem:[#allocation18_spill] sm:$0xff] %v4938_v52  ;;  %4125 = vmatprep.subr.bf16.mxu0 %v4124_v48  ;;  %s4639_s26 = smov 50   ;;  %vm994_vm2 = vcmp.lt.s32.totalorder %v4896_v4, 113 }
  0xd8   : > { %v458_v53 = vpop.permute.xlu1 %457  ;;  %v456_v55 = vpop.permute.xlu0 %455  ;;  %v4128_v56 = vpack.c.bf16 %v2127_v45, %v2122_v28  ;;  %4127 = vmatpush1.bf16.msra.mxu0 %v4126_v49  ;;  %v4130_v62 = vpack.c.bf16 %v2126_v44, %v2121_v46 }
  0xd9   : > { %v460_v59 = vsel %vm459_vm3, %v456_v55, %v458_v53  ;;  %v461_v60 = vsel %vm459_vm3, %v458_v53, %v456_v55  ;;  %v2134_v55 = vld [vmem:[#allocation5 + $0xc0] sm:$0xff]  ;;  %vm421_vm3 = vcmp.lt.s32.totalorder %v4896_v4, 16 }
  0xda   : > { %v4945_v5 = vmul.f32 %v1994_v54, %v461_v60  ;;  %1316 = vrot.lane.b32.xlu1 %v4834_v1, %s4627_s27  ;;  %v4950_v9 = vmul.f32 %v1995_v57, %v460_v59  ;;  %v4952_v10 = vmul.f32 %v3144_v58, %v460_v59  ;;  %4129 = vmatprep.subr.bf16.mxu0 %v4128_v56  ;;  %v836_v58 = vld [vmem:[#allocation2 + $0xf0] sm:$0xff] }
  0xdb   : > { %1314 = vrot.lane.b32.xlu0 %v4829_v0, %s4627_s27  ;;  %v4958_v18 = vmul.f32 %v3145_v61, %v461_v60  ;;  %v466_v21 = vmul.f32 %v464_v3, %v461_v60  ;;  %v465_v31 = vmul.f32 %v463_v14, %v460_v59  ;;  %v837_v59 = vld [vmem:[#allocation2 + $0xf8] sm:$0xff]  ;;  %v2224_v60 = vld [vmem:[#allocation2 + $0x410] sm:$0xff]  ;;  %v848_v3 = vld [vmem:[#allocation2 + $0x100] sm:$0xff]  ;;  %s4640_s27 = smov 49  }
  0xdc   : > { %5863 = vst [vmem:[#allocation19_spill] sm:$0xff] %v4945_v5  ;;  %5864 = vst [vmem:[#allocation20_spill] sm:$0xff] %v4950_v9  ;;  %v470_v11 = vpop.permute.xlu1 %469  ;;  %v468_v12 = vpop.permute.xlu0 %467  ;;  %4131 = vmatpush1.bf16.msra.mxu0 %v4130_v62 }
  0xdd   : > { %5865 = vst [vmem:[#allocation21_spill] sm:$0xff] %v4952_v10  ;;  %5866 = vst [vmem:[#allocation22_spill] sm:$0xff] %v4958_v18  ;;  %v472_v19 = vsel %vm471_vm4, %v468_v12, %v470_v11  ;;  %v473_v20 = vsel %vm471_vm4, %v470_v11, %v468_v12  ;;  %v2135_v11 = vld [vmem:[#allocation5 + $0xc8] sm:$0xff]  ;;  %v3374_v12 = vld [vmem:[#allocation2 + $0x730] sm:$0xff]  ;;  %vm433_vm4 = vcmp.lt.s32.totalorder %v4896_v4, 15 }
  0xde   : > { %v4964_v26 = vmul.f32 %v1999_v63, %v473_v20  ;;  %v4966_v27 = vmul.f32 %v2000_v6, %v472_v19  ;;  %v4968_v28 = vmul.f32 %v3149_v7, %v472_v19  ;;  %v4970_v29 = vmul.f32 %v3150_v8, %v473_v20  ;;  %1328 = vrot.lane.b32.xlu1 %v4834_v1, %s4628_s15  ;;  %v2225_v63 = vld [vmem:[#allocation2 + $0x418] sm:$0xff]  ;;  %v849_v6 = vld [vmem:[#allocation2 + $0x108] sm:$0xff]  ;;  %v2229_v7 = vld [vmem:[#allocation2 + $0x420] sm:$0xff] }
  0xdf   : > { %1326 = vrot.lane.b32.xlu0 %v4829_v0, %s4628_s15  ;;  %v478_v30 = vmul.f32 %v476_v13, %v473_v20  ;;  %v477_v32 = vmul.f32 %v475_v15, %v472_v19  ;;  %v2230_v8 = vld [vmem:[#allocation2 + $0x428] sm:$0xff]  ;;  %v3379_v19 = vld [vmem:[#allocation2 + $0x740] sm:$0xff]  ;;  %s4641_s15 = smov 48  }
  0xe0   : > { %5867 = vst [vmem:[#allocation23_spill] sm:$0xff] %v4964_v26  ;;  %5868 = vst [vmem:[#allocation24_spill] sm:$0xff] %v4966_v27  ;;  %v729_v37 = vpop.permute.xlu1 %728  ;;  %v727_v38 = vpop.permute.xlu0 %726  ;;  %v3380_v20 = vld [vmem:[#allocation2 + $0x748] sm:$0xff] }
  0xe1   : > { %5869 = vst [vmem:[#allocation25_spill] sm:$0xff] %v4968_v28  ;;  %5870 = vst [vmem:[#allocation26_spill] sm:$0xff] %v4970_v29  ;;  %v4984_v45 = vsel %vm730_vm5, %v727_v38, %v729_v37  ;;  %v4988_v46 = vsel %vm730_vm5, %v729_v37, %v727_v38  ;;  %v4028_v48 = vpack.c.bf16 %v478_v30, %v466_v21  ;;  %vm1006_vm5 = vcmp.lt.s32.totalorder %v4896_v4, 112  ;;  %v723_v29 = vld [vmem:[#allocation2 + $0xd8] sm:$0xff] }
  0xe2   : > { %v4030_v49 = vpack.c.bf16 %v477_v32, %v465_v31  ;;  %v2132_v53 = vmul.f32 %v2130_v33, %v4988_v46  ;;  %v2131_v54 = vmul.f32 %v2129_v34, %v4984_v45  ;;  %1430 = vrot.lane.b32.xlu1 %v4834_v1, %s4629_s19  ;;  %v3375_v34 = vld [vmem:[#allocation2 + $0x738] sm:$0xff] }
  0xe3   : > { %1428 = vrot.lane.b32.xlu0 %v4829_v0, %s4629_s19  ;;  %4029 = vmatprep.subr.bf16.mxu1 %v4028_v48  ;;  %s4642_s19 = smov 47  }
  0xe4   : > { %v831_v56 = vpop.permute.xlu1 %830  ;;  %v829_v57 = vpop.permute.xlu0 %828  ;;  %2150 = vmatprep.subr.mxu0 %v2132_v53  ;;  %4031 = vmatpush1.bf16.msra.mxu1 %v4030_v49 }
  0xe5   : > { %v833_v61 = vsel %vm832_vm6, %v829_v57, %v831_v56  ;;  %v834_v62 = vsel %vm832_vm6, %v831_v56, %v829_v57  ;;  %2151 = vmatpush1.msra.mxu0 %v2131_v54  ;;  %vm1018_vm6 = vcmp.lt.s32.totalorder %v4896_v4, 111 }
  0xe6   : > { %3992 = vmatmul.mubr.msk.f32.vlgmr.msra.gmra.mrb[0].mxu0 %vm518_vm7, %v2134_v55  ;;  %1442 = vrot.lane.b32.xlu1 %v4834_v1, %s4630_s24  ;;  %v5003_v13 = vmul.f32 %v836_v58, %v834_v62  ;;  %v5005_v14 = vmul.f32 %v837_v59, %v833_v61  ;;  %v2226_v30 = vmul.f32 %v2224_v60, %v833_v61 }
  0xe7   : > { %1440 = vrot.lane.b32.xlu0 %v4829_v0, %s4630_s24  ;;  %2212 = vmatprep.mubr.f32.mxu0 %v5801_v2  ;;  %v2227_v31 = vmul.f32 %v2225_v63, %v834_v62  ;;  %v5018_v53 = vmul.f32 %v3374_v12, %v834_v62  ;;  %v5031_v63 = vmul.f32 %v3375_v34, %v833_v61  ;;  %v2004_v12 = vld [vmem:[#allocation2 + $0x390] sm:$0xff]  ;;  %v500_v61 = vld [vmem:[#allocation2 + $0x88] sm:$0xff]  ;;  %s4643_s24 = smov 46  }
  0xe8   : > { %v843_v15 = vpop.permute.xlu1 %842  ;;  %v841_v21 = vpop.permute.xlu0 %840 }
  0xe9   : > { %v845_v32 = vsel %vm844_vm8, %v841_v21, %v843_v15  ;;  %v846_v33 = vsel %vm844_vm8, %v843_v15, %v841_v21  ;;  %5871 = vst [vmem:[#allocation27_spill] sm:$0xff] %v5018_v53  ;;  %5874 = vst [vmem:[#allocation30_spill] sm:$0xff] %v5031_v63  ;;  %v2005_v15 = vld [vmem:[#allocation2 + $0x398] sm:$0xff]  ;;  %v2010_v21 = vld [vmem:[#allocation2 + $0x3a8] sm:$0xff]  ;;  %vm445_vm8 = vcmp.lt.s32.totalorder %v4896_v4, 14 }
  0xea   : > { %v5013_v37 = vmul.f32 %v848_v3, %v846_v33  ;;  %v5015_v38 = vmul.f32 %v849_v6, %v845_v32  ;;  %v2231_v48 = vmul.f32 %v2229_v7, %v845_v32  ;;  %v2232_v49 = vmul.f32 %v2230_v8, %v846_v33  ;;  %3993 = vmatmul.mubr.msk.f32.gmra.mrb[2].mxu0 %vm518_vm7, %v2135_v11  ;;  %v487_v6 = vld [vmem:[#allocation2 + $0x70] sm:$0xff]  ;;  %v488_v7 = vld [vmem:[#allocation2 + $0x78] sm:$0xff] }
  0xeb   : > { %v5020_v54 = vmul.f32 %v3379_v19, %v846_v33  ;;  %v5022_v55 = vmul.f32 %v3380_v20, %v845_v32  ;;  %1454 = vrot.lane.b32.xlu1 %v4834_v1, %s4631_s11  ;;  %1452 = vrot.lane.b32.xlu0 %v4829_v0, %s4631_s11  ;;  %v499_v19 = vld [vmem:[#allocation2 + $0x80] sm:$0xff]  ;;  %v413_v53 = vld [vmem:[#allocation2 + $0x10] sm:$0xff] }
  0xec   : > { %v4134_v57 = vpack.c.bf16 %v2231_v48, %v2226_v30  ;;  %v482_v58 = vpop.permute.xlu1 %481  ;;  %v480_v59 = vpop.permute.xlu0 %479  ;;  %v4132_v60 = vpack.c.bf16 %v2232_v49, %v2227_v31  ;;  %2321 = vmatprep.mubr.f32.mxu0 %v5801_v2  ;;  %v2009_v20 = vld [vmem:[#allocation2 + $0x3a0] sm:$0xff]  ;;  %v3154_v31 = vld [vmem:[#allocation2 + $0x6b0] sm:$0xff]  ;;  %v3160_v49 = vld [vmem:[#allocation2 + $0x6c8] sm:$0xff] }
  0xed   : > { %5872 = vst [vmem:[#allocation28_spill] sm:$0xff] %v5020_v54  ;;  %5873 = vst [vmem:[#allocation29_spill] sm:$0xff] %v5022_v55  ;;  %v484_v8 = vsel %vm483_vm9, %v480_v59, %v482_v58  ;;  %v485_v11 = vsel %vm483_vm9, %v482_v58, %v480_v59  ;;  %v3159_v48 = vld [vmem:[#allocation2 + $0x6c0] sm:$0xff]  ;;  %v402_v2 = vld [vmem:[#allocation2 + $0x8] sm:$0xff]  ;;  %vm1030_vm9 = vcmp.lt.s32.totalorder %v4896_v4, 110 }
  0xee   : > { %4133 = vmatprep.subr.bf16.mxu0 %v4132_v60  ;;  %v489_v32 = vmul.f32 %v487_v6, %v484_v8  ;;  %v490_v33 = vmul.f32 %v488_v7, %v485_v11  ;;  %v5044_v59 = vmul.f32 %v2004_v12, %v485_v11  ;;  %v5046_v60 = vmul.f32 %v2005_v15, %v484_v8  ;;  %v516_v55 = vld [vmem:[#allocation5 + $0x10] sm:$0xff] }
  0xef   : > { %1466 = vrot.lane.b32.xlu1 %v4834_v1, %s4632_s28  ;;  %1464 = vrot.lane.b32.xlu0 %v4829_v0, %s4632_s28  ;;  %v5056_v7 = vmul.f32 %v3154_v31, %v484_v8  ;;  %v5069_v8 = vmul.f32 %v3155_v16, %v485_v11  ;;  %v2234_v31 = vld [vmem:[#allocation2 + $0x430] sm:$0xff]  ;;  %v2240_v16 = vld [vmem:[#allocation2 + $0x448] sm:$0xff]  ;;  %s381_s28 = sand.u32 1, %s4578_s14  }
  0xf0   : > { %4135 = vmatpush1.bf16.msra.mxu0 %v4134_v57  ;;  %v494_v34 = vpop.permute.xlu1 %493  ;;  %v492_v58 = vpop.permute.xlu0 %491  ;;  %5875 = vst [vmem:[#allocation31_spill] sm:$0xff] %v5044_v59  ;;  %5876 = vst [vmem:[#allocation32_spill] sm:$0xff] %v5046_v60 }
  0xf1   : > { %v496_v3 = vsel %vm495_vm10, %v492_v58, %v494_v34  ;;  %v497_v17 = vsel %vm495_vm10, %v494_v34, %v492_v58  ;;  %5879 = vst [vmem:[#allocation35_spill] sm:$0xff] %v5056_v7  ;;  %5882 = vst [vmem:[#allocation38_spill] sm:$0xff] %v5069_v8  ;;  %v2235_v34 = vld [vmem:[#allocation2 + $0x438] sm:$0xff]  ;;  %v3390_v58 = vld [vmem:[#allocation2 + $0x768] sm:$0xff]  ;;  %vm1132_vm10 = vcmp.lt.s32.totalorder %v4896_v4, 82 }
  0xf2   : > { %v501_v30 = vmul.f32 %v499_v19, %v496_v3  ;;  %v502_v36 = vmul.f32 %v500_v61, %v497_v17  ;;  %v5052_v6 = vmul.f32 %v2009_v20, %v497_v17  ;;  %v5054_v57 = vmul.f32 %v2010_v21, %v496_v3 }
  0xf3   : > { %v5058_v35 = vmul.f32 %v3159_v48, %v496_v3  ;;  %v5060_v12 = vmul.f32 %v3160_v49, %v497_v17  ;;  %1478 = vrot.lane.b32.xlu1 %v4834_v1, %s4633_s30  ;;  %1476 = vrot.lane.b32.xlu0 %v4829_v0, %s4633_s30  ;;  %v3385_v17 = vld [vmem:[#allocation2 + $0x758] sm:$0xff]  ;;  %s4328_s30 = smul.u32 48, %s381_s28 }
  0xf4   : > { %5877 = vst [vmem:[#allocation33_spill] sm:$0xff] %v5052_v6  ;;  %5878 = vst [vmem:[#allocation34_spill] sm:$0xff] %v5054_v57  ;;  %v855_v19 = vpop.permute.xlu1 %854  ;;  %v853_v61 = vpop.permute.xlu0 %852  ;;  %v4032_v20 = vpack.c.bf16 %v502_v36, %v490_v33  ;;  %v4034_v21 = vpack.c.bf16 %v501_v30, %v489_v32  ;;  %v2239_v36 = vld [vmem:[#allocation2 + $0x440] sm:$0xff]  ;;  %v3384_v30 = vld [vmem:[#allocation2 + $0x750] sm:$0xff] }
  0xf5   : > { %5880 = vst [vmem:[#allocation36_spill] sm:$0xff] %v5058_v35  ;;  %5881 = vst [vmem:[#allocation37_spill] sm:$0xff] %v5060_v12  ;;  %v5074_v48 = vsel %vm856_vm11, %v853_v61, %v855_v19  ;;  %v5076_v49 = vsel %vm856_vm11, %v855_v19, %v853_v61  ;;  %v3389_v33 = vld [vmem:[#allocation2 + $0x760] sm:$0xff]  ;;  %v2250_v35 = vld [vmem:[#allocation5 + $0xd8] sm:$0xff]  ;;  %vm1144_vm11 = vcmp.lt.s32.totalorder %v4896_v4, 81 }
  0xf6   : > { %4033 = vmatprep.subr.bf16.mxu1 %v4032_v20  ;;  %v2236_v15 = vmul.f32 %v2234_v31, %v5074_v48  ;;  %v2237_v3 = vmul.f32 %v2235_v34, %v5076_v49  ;;  %v5095_v44 = vmul.f32 %v3384_v30, %v5076_v49  ;;  %v5107_v30 = vmul.f32 %v3385_v17, %v5074_v48 }
  0xf7   : > { %1580 = vrot.lane.b32.xlu1 %v4834_v1, %s4634_s12  ;;  %1578 = vrot.lane.b32.xlu0 %v4829_v0, %s4634_s12  ;;  %s4329_s12 = smul.u32 768, %s4723_s17 }
  0xf8   : > { %4035 = vmatpush1.bf16.msra.mxu1 %v4034_v21  ;;  %v867_v32 = vpop.permute.xlu1 %866  ;;  %v865_v20 = vpop.permute.xlu0 %864  ;;  %5883 = vst [vmem:[#allocation39_spill] sm:$0xff] %v5095_v44  ;;  %5886 = vst [vmem:[#allocation42_spill] sm:$0xff] %v5107_v30  ;;  %v3030_v44 = vld [vmem:[#allocation2 + $0x648] sm:$0xff] }
  0xf9   : > { %v5084_v19 = vsel %vm868_vm12, %v865_v20, %v867_v32  ;;  %v5088_v61 = vsel %vm868_vm12, %v867_v32, %v865_v20  ;;  %v3034_v32 = vld [vmem:[#allocation2 + $0x650] sm:$0xff]  ;;  %vm1156_vm12 = vcmp.lt.s32.totalorder %v4896_v4, 80 }
  0xfa   : > { %v2241_v11 = vmul.f32 %v2239_v36, %v5084_v19  ;;  %v2242_v21 = vmul.f32 %v2240_v16, %v5088_v61  ;;  %v5098_v39 = vmul.f32 %v3389_v33, %v5088_v61  ;;  %v5101_v56 = vmul.f32 %v3390_v58, %v5084_v19  ;;  %v1879_v33 = vld [vmem:[#allocation2 + $0x320] sm:$0xff]  ;;  %v1880_v58 = vld [vmem:[#allocation2 + $0x328] sm:$0xff] }
  0xfb   : > { %1592 = vrot.lane.b32.xlu1 %v4834_v1, %s4635_s25  ;;  %1590 = vrot.lane.b32.xlu0 %v4829_v0, %s4635_s25  ;;  %s383_s25 = scalar_lea.vmem [#allocation7], %s4328_s30 }
  0xfc   : > { %5884 = vst [vmem:[#allocation40_spill] sm:$0xff] %v5098_v39  ;;  %5885 = vst [vmem:[#allocation41_spill] sm:$0xff] %v5101_v56  ;;  %v4138_v31 = vpack.c.bf16 %v2241_v11, %v2236_v15  ;;  %v395_v34 = vpop.permute.xlu1 %394  ;;  %v393_v36 = vpop.permute.xlu0 %392  ;;  %v4136_v16 = vpack.c.bf16 %v2242_v21, %v2237_v3  ;;  %v1884_v15 = vld [vmem:[#allocation2 + $0x330] sm:$0xff]  ;;  %v1885_v3 = vld [vmem:[#allocation2 + $0x338] sm:$0xff] }
  0xfd   : > { %v399_v20 = vsel %vm398_vm13, %v393_v36, %v395_v34  ;;  %v400_v62 = vsel %vm398_vm13, %v395_v34, %v393_v36  ;;  %v3029_v11 = vld [vmem:[#allocation2 + $0x640] sm:$0xff]  ;;  %vm1168_vm13 = vcmp.lt.s32.totalorder %v4896_v4, 79 }
  0xfe   : > { %4137 = vmatprep.subr.bf16.mxu0 %v4136_v16  ;;  %v3035_v16 = vld [vmem:[#allocation2 + $0x658] sm:$0xff]  ;;  %v5121_v39 = vmul.f32 %v1879_v33, %v400_v62  ;;  %v5123_v17 = vmul.f32 %v1880_v58, %v399_v20  ;;  %v5129_v56 = vmul.f32 %v3029_v11, %v399_v20  ;;  %v511_v33 = vld [vmem:[#allocation2 + $0x90] sm:$0xff]  ;;  %v401_v11 = vld [vmem:[#allocation2] sm:$0xff] }
  0xff   : > { %1604 = vrot.lane.b32.xlu1 %v4834_v1, %s4636_s18  ;;  %1602 = vrot.lane.b32.xlu0 %v4829_v0, %s4636_s18  ;;  %v403_v50 = vmul.f32 %v401_v11, %v399_v20  ;;  %v3489_v11 = vld [vmem:[#allocation2 + $0x780] sm:$0xff]  ;;  %s3874_s18 = sshll.u32 %s383_s25, 4  ;;  %s5737_s18 = int_to_ptr.vmem [resolvable:$true] %s3874_s18 }
 0x100   : > { %4139 = vmatpush1.bf16.msra.mxu0 %v4138_v31  ;;  %v408_v21 = vpop.permute.xlu1 %407  ;;  %v406_v43 = vpop.permute.xlu0 %405 }
 0x101   : > { %v410_v34 = vsel %vm409_vm14, %v406_v43, %v408_v21  ;;  %v411_v36 = vsel %vm409_vm14, %v408_v21, %v406_v43  ;;  %v512_v43 = vld [vmem:[#allocation2 + $0x98] sm:$0xff]  ;;  %vm1180_vm14 = vcmp.lt.s32.totalorder %v4896_v4, 78 }
 0x102   : > { %v5125_v31 = vmul.f32 %v1884_v15, %v411_v36  ;;  %v5127_v30 = vmul.f32 %v1885_v3, %v410_v34  ;;  %v5131_v54 = vmul.f32 %v3034_v32, %v410_v34  ;;  %v5133_v63 = vmul.f32 %v3035_v16, %v411_v36 }
 0x103   : > { %1616 = vrot.lane.b32.xlu1 %v4834_v1, %s4637_s20  ;;  %1614 = vrot.lane.b32.xlu0 %v4829_v0, %s4637_s20  ;;  %v416_v58 = vmul.f32 %v414_v42, %v411_v36  ;;  %v5142_v16 = vmul.f32 %v3030_v44, %v400_v62  ;;  %v404_v36 = vmul.f32 %v402_v2, %v400_v62  ;;  %v2244_v44 = vld [vmem:[#allocation2 + $0x450] sm:$0xff] }
 0x104   : > { %v506_v3 = vpop.permute.xlu1 %505  ;;  %v504_v21 = vpop.permute.xlu0 %503  ;;  %v415_v15 = vmul.f32 %v413_v53, %v410_v34  ;;  %v2245_v53 = vld [vmem:[#allocation2 + $0x458] sm:$0xff] }
 0x105   : > { %v5148_v51 = vsel %vm507_vm15, %v504_v21, %v506_v3  ;;  %v5152_v42 = vsel %vm507_vm15, %v506_v3, %v504_v21  ;;  %v4036_v2 = vpack.c.bf16 %v416_v58, %v404_v36  ;;  %v5889_v58 = vmov 0.0   ;;  %v2339_v21 = vld [vmem:[#allocation2 + $0x460] sm:$0xff] }
 0x106   : > { %5887 = vst [vmem:[#allocation43_spill] sm:$0xff] %v5148_v51  ;;  %5888 = vst [vmem:[#allocation44_spill] sm:$0xff] %v5152_v42  ;;  %v514_v47 = vmul.f32 %v512_v43, %v5152_v42  ;;  %v513_v32 = vmul.f32 %v511_v33, %v5148_v51  ;;  %v4038_v43 = vpack.c.bf16 %v415_v15, %v403_v50  ;;  %v2249_v50 = vld [vmem:[#allocation5 + $0xd0] sm:$0xff]  ;;  %v517_v15 = vld [vmem:[#allocation5 + $0x18] sm:$0xff]  ;;  %vm1282_vm15 = vcmp.lt.s32.totalorder %v4896_v4, 74 }
 0x107   : > { %1628 = vrot.lane.b32.xlu1 %v4834_v1, %s4638_s21  ;;  %1626 = vrot.lane.b32.xlu0 %v4829_v0, %s4638_s21  ;;  %v1889_v51 = vld [vmem:[#allocation2 + $0x340] sm:$0xff]  ;;  %s5735_s21 = scalar_lea.hbm %s5793_s10, %s4329_s12 }
 0x108   : > { %v879_v7 = vpop.permute.xlu1 %878  ;;  %533 = vmatprep.subr.mxu1 %v514_v47  ;;  %v877_v3 = vpop.permute.xlu0 %876 }
 0x109   : > { %v5162_v62 = vsel %vm880_vm0, %v877_v3, %v879_v7  ;;  %v5166_v34 = vsel %vm880_vm0, %v879_v7, %v877_v3  ;;  %534 = vmatpush1.msra.mxu1 %v513_v32  ;;  %v2340_v32 = vld [vmem:[#allocation2 + $0x468] sm:$0xff]  ;;  %v2345_v3 = vld [vmem:[#allocation2 + $0x478] sm:$0xff]  ;;  %vm1294_vm0 = vcmp.lt.s32.totalorder %v4896_v4, 73 }
 0x10a   : > { %v2246_v33 = vmul.f32 %v2244_v44, %v5162_v62  ;;  %4037 = vmatprep.subr.bf16.mxu1 %v4036_v2  ;;  %3968 = vmatmul.mubr.msk.f32.vlgmr.msra.gmra.mrb[0].mxu1 %vm518_vm7, %v516_v55  ;;  %v2247_v47 = vmul.f32 %v2245_v53, %v5166_v34  ;;  %v2344_v44 = vld [vmem:[#allocation2 + $0x470] sm:$0xff]  ;;  %v3490_v2 = vld [vmem:[#allocation2 + $0x788] sm:$0xff] }
 0x10b   : > { %1730 = vrot.lane.b32.xlu1 %v4834_v1, %s4639_s26  ;;  %1728 = vrot.lane.b32.xlu0 %v4829_v0, %s4639_s26  ;;  %s5741_s26 = scalar_lea.sflag [#allocation4], %s381_s28 }
 0x10c   : > { %4039 = vmatpush1.bf16.msra.mxu1 %v4038_v43  ;;  %v981_v20 = vpop.permute.xlu1 %980  ;;  %v979_v7 = vpop.permute.xlu0 %978  ;;  %595 = vmatprep.mubr.f32.mxu1 %v5889_v58  ;;  %v3494_v43 = vld [vmem:[#allocation2 + $0x790] sm:$0xff] }
 0x10d   : > { %2265 = vmatprep.subr.mxu0 %v2247_v47  ;;  %v5175_v55 = vsel %vm982_vm1, %v979_v7, %v981_v20  ;;  %v5178_v36 = vsel %vm982_vm1, %v981_v20, %v979_v7  ;;  %v3495_v47 = vld [vmem:[#allocation2 + $0x798] sm:$0xff]  ;;  %vm1306_vm1 = vcmp.lt.s32.totalorder %v4896_v4, 72 }
 0x10e   : > { %2266 = vmatpush1.msra.mxu0 %v2246_v33  ;;  %3969 = vmatmul.mubr.msk.f32.gmra.mrb[2].mxu1 %vm518_vm7, %v517_v15  ;;  %v2341_v33 = vmul.f32 %v2339_v21, %v5175_v55  ;;  %v5198_v15 = vmul.f32 %v3489_v11, %v5178_v36  ;;  %v5203_v59 = vmul.f32 %v3490_v2, %v5175_v55  ;;  %v425_v2 = vld [vmem:[#allocation2 + $0x20] sm:$0xff] }
 0x10f   : > { %1742 = vrot.lane.b32.xlu1 %v4834_v1, %s4640_s27  ;;  %1740 = vrot.lane.b32.xlu0 %v4829_v0, %s4640_s27  ;;  %s4516_s27 = scalar_lea.vmem %s5737_s18, 768 }
 0x110   : > { %v993_v53 = vpop.permute.xlu1 %992  ;;  %v991_v52 = vpop.permute.xlu0 %990  ;;  %3994 = vmatmul.mubr.msk.f32.vlgmr.msra.gmra.mrb[0].mxu0 %vm518_vm7, %v2249_v50  ;;  %672 = vmatprep.mubr.f32.mxu1 %v5889_v58  ;;  %v2342_v50 = vmul.f32 %v2340_v32, %v5178_v36  ;;  %5890 = vst [vmem:[#allocation45_spill] sm:$0xff] %v5198_v15  ;;  %5891 = vst [vmem:[#allocation46_spill] sm:$0xff] %v5203_v59  ;;  %v1895_v15 = vld [vmem:[#allocation2 + $0x358] sm:$0xff]  ;;  %p4517_p12 = scmp.ne.s32.totalorder %s5737_s18, %s4516_s27 }
 0x111   : > { %v5187_v20 = vsel %vm994_vm2, %v991_v52, %v993_v53  ;;  %v5191_v7 = vsel %vm994_vm2, %v993_v53, %v991_v52  ;;  %2327 = vmatprep.mubr.f32.mxu0 %v5889_v58  ;;  %v3045_v59 = vld [vmem:[#allocation2 + $0x678] sm:$0xff]  ;;  %vm1318_vm2 = vcmp.lt.s32.totalorder %v4896_v4, 71 }
 0x112   : > { %v2346_v21 = vmul.f32 %v2344_v44, %v5187_v20  ;;  %v2347_v42 = vmul.f32 %v2345_v3, %v5191_v7  ;;  %v5206_v52 = vmul.f32 %v3494_v43, %v5191_v7  ;;  %v5209_v53 = vmul.f32 %v3495_v47, %v5187_v20  ;;  %v426_v43 = vld [vmem:[#allocation2 + $0x28] sm:$0xff]  ;;  %v1894_v3 = vld [vmem:[#allocation2 + $0x350] sm:$0xff]  ;;  %p4518_p2 = pnand %p4517_p12, %p5972_p1 }
 0x113   : > { %1754 = vrot.lane.b32.xlu1 %v4834_v1, %s4641_s15  ;;  %1752 = vrot.lane.b32.xlu0 %v4829_v0, %s4641_s15  ;;  %s4645_s15 = smov [#allocation7]  }
 0x114   : > { %5892 = vst [vmem:[#allocation47_spill] sm:$0xff] %v5206_v52  ;;  %5893 = vst [vmem:[#allocation48_spill] sm:$0xff] %v5209_v53  ;;  %v4142_v32 = vpack.c.bf16 %v2346_v21, %v2341_v33  ;;  %v420_v11 = vpop.permute.xlu1 %419  ;;  %v418_v6 = vpop.permute.xlu0 %417  ;;  %v4140_v44 = vpack.c.bf16 %v2347_v42, %v2342_v50  ;;  %3995 = vmatmul.mubr.msk.f32.gmra.mrb[2].mxu0 %vm518_vm7, %v2250_v35  ;;  %v1890_v42 = vld [vmem:[#allocation2 + $0x348] sm:$0xff]  ;;  %v3039_v50 = vld [vmem:[#allocation2 + $0x660] sm:$0xff]  ;;  %p4519_p3 = pneg %p4518_p2 }
 0x115   : > { %v422_v47 = vsel %vm421_vm3, %v418_v6, %v420_v11  ;;  %v423_v8 = vsel %vm421_vm3, %v420_v11, %v418_v6  ;;  %2436 = vmatprep.mubr.f32.mxu0 %v5889_v58  ;;  %v437_v35 = vld [vmem:[#allocation2 + $0x30] sm:$0xff]  ;;  %v438_v21 = vld [vmem:[#allocation2 + $0x38] sm:$0xff]  ;;  %v3040_v6 = vld [vmem:[#allocation2 + $0x668] sm:$0xff]  ;;  %vm1330_vm3 = vcmp.lt.s32.totalorder %v4896_v4, 70 }
 0x116   : > { %4141 = vmatprep.subr.bf16.mxu0 %v4140_v44  ;;  %v427_v11 = vmul.f32 %v425_v2, %v422_v47  ;;  %v428_v52 = vmul.f32 %v426_v43, %v423_v8  ;;  %v5226_v12 = vmul.f32 %v1889_v51, %v423_v8  ;;  %v3044_v44 = vld [vmem:[#allocation2 + $0x670] sm:$0xff]  ;;  %v5228_v60 = vmul.f32 %v1890_v42, %v422_v47 }
 0x117   : > { %1766 = vrot.lane.b32.xlu1 %v4834_v1, %s4642_s19  ;;  %1764 = vrot.lane.b32.xlu0 %v4829_v0, %s4642_s19  ;;  %v5230_v1 = vmul.f32 %v3039_v50, %v422_v47  ;;  %v5240_v10 = vmul.f32 %v3040_v6, %v423_v8  ;;  %v5247_v47 = vld [vmem:[%s4826_s22 + $0x8] sm:$0xff]  ;;  %v4457_v50 = vld [vmem:[%s4826_s22] sm:$0xff]  ;;  %s4520_s19 = sshll.u32 %s4645_s15, 4  ;;  %s4521_s19 = int_to_ptr.vmem [resolvable:$false] %s4520_s19 }
 0x118   : > { %5894 = vst [vmem:[#allocation49_spill] sm:$0xff] %v5226_v12  ;;  %4143 = vmatpush1.bf16.msra.mxu0 %v4142_v32  ;;  %v432_v33 = vpop.permute.xlu1 %431  ;;  %v430_v53 = vpop.permute.xlu0 %429  ;;  %v2349_v6 = vld [vmem:[#allocation2 + $0x480] sm:$0xff]  ;;  %p4523_p4 = scmp.lt.s32.totalorder %s5737_s18, %s4521_s19 }
 0x119   : > { %5895 = vst [vmem:[#allocation50_spill] sm:$0xff] %v5230_v1  ;;  %v434_v0 = vsel %vm433_vm4, %v430_v53, %v432_v33  ;;  %v435_v2 = vsel %vm433_vm4, %v432_v33, %v430_v53  ;;  %v450_v1 = vld [vmem:[#allocation2 + $0x48] sm:$0xff]  ;;  %vm1432_vm4 = vcmp.lt.s32.totalorder %v4896_v4, 66 }
 0x11a   : > { %v439_v43 = vmul.f32 %v437_v35, %v434_v0  ;;  %v440_v51 = vmul.f32 %v438_v21, %v435_v2  ;;  %v5236_v57 = vmul.f32 %v1894_v3, %v435_v2  ;;  %v5238_v32 = vmul.f32 %v1895_v15, %v434_v0  ;;  %v3505_v35 = vld [vmem:[#allocation2 + $0x7b8] sm:$0xff] }
 0x11b   : > { %v5242_v28 = vmul.f32 %v3044_v44, %v434_v0  ;;  %v5244_v42 = vmul.f32 %v3045_v59, %v435_v2  ;;  %1778 = vrot.lane.b32.xlu1 %v5247_v47, %s4643_s24  ;;  %1776 = vrot.lane.b32.xlu0 %v4457_v50, %s4643_s24  ;;  %v2350_v44 = vld [vmem:[#allocation2 + $0x488] sm:$0xff]  ;;  %v3504_v59 = vld [vmem:[#allocation2 + $0x7b0] sm:$0xff]  ;;  %s4522_s24 = scalar_lea.vmem %s4521_s19, 1536 }
 0x11c   : > { %5896 = vst [vmem:[#allocation51_spill] sm:$0xff] %v5236_v57  ;;  %v4042_v53 = vpack.c.bf16 %v439_v43, %v427_v11  ;;  %v1005_v3 = vpop.permute.xlu1 %1004  ;;  %v1003_v8 = vpop.permute.xlu0 %1002  ;;  %v4040_v33 = vpack.c.bf16 %v440_v51, %v428_v52  ;;  %v3499_v11 = vld [vmem:[#allocation2 + $0x7a0] sm:$0xff]  ;;  %v2354_v52 = vld [vmem:[#allocation2 + $0x490] sm:$0xff]  ;;  %v2355_v43 = vld [vmem:[#allocation2 + $0x498] sm:$0xff]  ;;  %p4524_p7 = scmp.lt.s32.totalorder %s4522_s24, %s4516_s27 }
 0x11d   : > { %5897 = vst [vmem:[#allocation52_spill] sm:$0xff] %v5242_v28  ;;  %v5261_v0 = vsel %vm1006_vm5, %v1003_v8, %v1005_v3  ;;  %v5263_v2 = vsel %vm1006_vm5, %v1005_v3, %v1003_v8  ;;  %v3500_v51 = vld [vmem:[#allocation2 + $0x7a8] sm:$0xff]  ;;  %v710_v57 = vld [vmem:[#allocation2 + $0xc0] sm:$0xff]  ;;  %vm1444_vm5 = vcmp.lt.s32.totalorder %v4896_v4, 65 }
 0x11e   : > { %4041 = vmatprep.subr.bf16.mxu1 %v4040_v33  ;;  %v711_v33 = vld [vmem:[#allocation2 + $0xc8] sm:$0xff]  ;;  %v2351_v18 = vmul.f32 %v2349_v6, %v5261_v0  ;;  %v2352_v3 = vmul.f32 %v2350_v44, %v5263_v2  ;;  %v5275_v9 = vmul.f32 %v3499_v11, %v5263_v2  ;;  %v5278_v27 = vmul.f32 %v3500_v51, %v5261_v0  ;;  %v449_v6 = vld [vmem:[#allocation2 + $0x40] sm:$0xff]  ;;  %p4525_p8 = por %p4524_p7, %p4523_p4 }
 0x11f   : > { %4043 = vmatpush1.bf16.msra.mxu1 %v4042_v53 }
 0x120   : > { %v1017_v15 = vpop.permute.xlu1 %1016  ;;  %v1015_v5 = vpop.permute.xlu0 %1014  ;;  %5898 = vst [vmem:[#allocation53_spill] sm:$0xff] %v5275_v9  ;;  %5899 = vst [vmem:[#allocation54_spill] sm:$0xff] %v5278_v27  ;;  %v889_v27 = vld [vmem:[#allocation5 + $0x30] sm:$0xff]  ;;  %p4526_p11 = pnand %p4525_p8, %p4519_p3 }
 0x121   : > { %v5265_v26 = vsel %vm1018_vm6, %v1015_v5, %v1017_v15  ;;  %v5267_v21 = vsel %vm1018_vm6, %v1017_v15, %v1015_v5  ;;  %vm1456_vm6 = vcmp.lt.s32.totalorder %v4896_v4, 64 }
 0x122   : > { %v2356_v53 = vmul.f32 %v2354_v52, %v5265_v26  ;;  %v2357_v8 = vmul.f32 %v2355_v43, %v5267_v21  ;;  %v5281_v5 = vmul.f32 %v3504_v59, %v5267_v21  ;;  %v5284_v15 = vmul.f32 %v3505_v35, %v5265_v26 }
 0x123   : > { %v713_v43 = vmul.f32 %v4457_v50, %v711_v33  ;;  %v712_v35 = vmul.f32 %v5247_v47, %v710_v57  ;;  %v735_v47 = vld [vmem:[#allocation2 + $0xe8] sm:$0xff] }
 0x124   : > { %5900 = vst [vmem:[#allocation55_spill] sm:$0xff] %v5281_v5  ;;  %v4146_v44 = vpack.c.bf16 %v2356_v53, %v2351_v18  ;;  %v444_v28 = vpop.permute.xlu1 %443  ;;  %v442_v52 = vpop.permute.xlu0 %441  ;;  %v4144_v12 = vpack.c.bf16 %v2357_v8, %v2352_v3  ;;  %v722_v18 = vld [vmem:[#allocation2 + $0xd0] sm:$0xff]  ;;  %v725_v53 = vmul.f32 %v723_v29, %v4916_v40  ;;  %v2359_v3 = vld [vmem:[#allocation2 + $0x4a0] sm:$0xff] }
 0x125   : > { %v5290_v51 = vsel %vm445_vm8, %v442_v52, %v444_v28  ;;  %v5294_v59 = vsel %vm445_vm8, %v444_v28, %v442_v52  ;;  %v453_v8 = vld [vmem:[#allocation5] sm:$0xff]  ;;  %v2360_v52 = vld [vmem:[#allocation2 + $0x4a8] sm:$0xff]  ;;  %v724_v9 = vmul.f32 %v722_v18, %v4920_v41  ;;  %vm1468_vm8 = vcmp.lt.s32.totalorder %v4896_v4, 63 }
 0x126   : > { %v451_v50 = vmul.f32 %v449_v6, %v5290_v51  ;;  %4145 = vmatprep.subr.bf16.mxu0 %v4144_v12  ;;  %v452_v33 = vmul.f32 %v450_v1, %v5294_v59  ;;  %v5901_v1 = vpack.c.bf16 %v4904_v23, %v4910_v25  ;;  %v4048_v6 = vpack.c.bf16 %v725_v53, %v713_v43  ;;  %v734_v25 = vld [vmem:[#allocation2 + $0xe0] sm:$0xff]  ;;  %v454_v43 = vld [vmem:[#allocation5 + $0x8] sm:$0xff] }
 0x127   : > { %4147 = vmatpush1.bf16.msra.mxu0 %v4146_v44  ;;  %v5902_v44 = vpack.c.bf16 %v4902_v22, %v4908_v24  ;;  %v4050_v23 = vpack.c.bf16 %v724_v9, %v712_v35  ;;  %v861_v53 = vld [vmem:[#allocation2 + $0x118] sm:$0xff]  ;;  %v737_v22 = vmul.f32 %v735_v47, %v4984_v45  ;;  %v2459_v9 = vld [vmem:[#allocation2 + $0x4c0] sm:$0xff]  ;;  %v2460_v35 = vld [vmem:[#allocation2 + $0x4c8] sm:$0xff] }
 0x128   : > { %v1029_v11 = vpop.permute.xlu1 %1028  ;;  %616 = vmatprep.subr.mxu1 %v452_v33  ;;  %v1027_v28 = vpop.permute.xlu0 %1026  ;;  %v873_v33 = vld [vmem:[#allocation2 + $0x128] sm:$0xff]  ;;  %v2455_v24 = vld [vmem:[#allocation2 + $0x4b8] sm:$0xff]  ;;  %v863_v47 = vmul.f32 %v861_v53, %v5074_v48 }
 0x129   : > { %v5304_v5 = vsel %vm1030_vm9, %v1027_v28, %v1029_v11  ;;  %v5306_v29 = vsel %vm1030_vm9, %v1029_v11, %v1027_v28  ;;  %617 = vmatpush1.msra.mxu1 %v451_v50  ;;  %v2364_v50 = vld [vmem:[#allocation5 + $0xe0] sm:$0xff]  ;;  %v987_v53 = vld [vmem:[#allocation2 + $0x148] sm:$0xff]  ;;  %vm1480_vm9 = vcmp.lt.s32.totalorder %v4896_v4, 62 }
 0x12a   : > { %v2361_v12 = vmul.f32 %v2359_v3, %v5304_v5  ;;  %4045 = vmatprep.subr.bf16.mxu1 %v5901_v1  ;;  %3970 = vmatmul.mubr.msk.f32.vlgmr.msra.gmra.mrb[0].mxu1 %vm518_vm7, %v453_v8  ;;  %v2362_v57 = vmul.f32 %v2360_v52, %v5306_v29  ;;  %v2454_v3 = vld [vmem:[#allocation2 + $0x4b0] sm:$0xff]  ;;  %v736_v52 = vmul.f32 %v734_v25, %v4988_v46 }
 0x12b   : > { %4047 = vmatpush1.bf16.msra.mxu1 %v5902_v44  ;;  %678 = vmatprep.mubr.f32.mxu1 %v5889_v58  ;;  %v875_v1 = vmul.f32 %v873_v33, %v5084_v19  ;;  %v860_v19 = vld [vmem:[#allocation2 + $0x110] sm:$0xff] }
 0x12c   : > { %v1131_v11 = vpop.permute.xlu1 %1130  ;;  %v1129_v18 = vpop.permute.xlu0 %1128  ;;  %4049 = vmatprep.subr.bf16.mxu1 %v4048_v6  ;;  %2380 = vmatprep.subr.mxu0 %v2362_v57  ;;  %v2365_v57 = vld [vmem:[#allocation5 + $0xe8] sm:$0xff] }
 0x12d   : > { %2381 = vmatpush1.msra.mxu0 %v2361_v12  ;;  %v5323_v8 = vsel %vm1132_vm10, %v1129_v18, %v1131_v11  ;;  %v5327_v28 = vsel %vm1132_vm10, %v1131_v11, %v1129_v18  ;;  %v872_v12 = vld [vmem:[#allocation2 + $0x120] sm:$0xff]  ;;  %vm1582_vm10 = vcmp.lt.s32.totalorder %v4896_v4, 58 }
 0x12e   : > { %3996 = vmatmul.mubr.msk.f32.vlgmr.msra.gmra.mrb[0].mxu0 %vm518_vm7, %v2364_v50  ;;  %3971 = vmatmul.mubr.msk.f32.gmra.mrb[2].mxu1 %vm518_vm7, %v454_v43  ;;  %v739_v50 = vld [vmem:[#allocation5 + $0x20] sm:$0xff]  ;;  %v2457_v25 = vmul.f32 %v2455_v24, %v5327_v28  ;;  %v874_v43 = vmul.f32 %v872_v12, %v5088_v61  ;;  %v4056_v24 = vpack.c.bf16 %v875_v1, %v863_v47  ;;  %v999_v61 = vld [vmem:[#allocation2 + $0x158] sm:$0xff] }
 0x12f   : > { %4051 = vmatpush1.bf16.msra.mxu1 %v4050_v23  ;;  %811 = vmatprep.mubr.f32.mxu1 %v5889_v58  ;;  %v2456_v23 = vmul.f32 %v2454_v3, %v5323_v8  ;;  %v5903_v3 = vpack.c.bf16 %v5015_v38, %v5005_v14  ;;  %v885_v12 = vld [vmem:[#allocation2 + $0x138] sm:$0xff]  ;;  %v884_v47 = vld [vmem:[#allocation2 + $0x130] sm:$0xff] }
 0x130   : > { %v1143_v6 = vpop.permute.xlu1 %1142  ;;  %v1141_v44 = vpop.permute.xlu0 %1140  ;;  %755 = vmatprep.subr.mxu1 %v737_v22  ;;  %2442 = vmatprep.mubr.f32.mxu0 %v5889_v58  ;;  %v2465_v38 = vld [vmem:[#allocation2 + $0x4d8] sm:$0xff] }
 0x131   : > { %v5336_v11 = vsel %vm1144_vm11, %v1141_v44, %v1143_v6  ;;  %v5340_v18 = vsel %vm1144_vm11, %v1143_v6, %v1141_v44  ;;  %vm1594_vm11 = vcmp.lt.s32.totalorder %v4896_v4, 57 }
 0x132   : > { %v2461_v48 = vmul.f32 %v2459_v9, %v5336_v11  ;;  %v2462_v33 = vmul.f32 %v2460_v35, %v5340_v18  ;;  %3997 = vmatmul.mubr.msk.f32.gmra.mrb[2].mxu0 %vm518_vm7, %v2365_v57  ;;  %v862_v35 = vmul.f32 %v860_v19, %v5076_v49  ;;  %v740_v57 = vld [vmem:[#allocation5 + $0x28] sm:$0xff]  ;;  %v1001_v19 = vmul.f32 %v999_v61, %v5187_v20  ;;  %v1011_v20 = vld [vmem:[#allocation2 + $0x168] sm:$0xff]  ;;  %v1022_v61 = vld [vmem:[#allocation2 + $0x170] sm:$0xff] }
 0x133   : > { %756 = vmatpush1.msra.mxu1 %v736_v52  ;;  %v5904_v52 = vpack.c.bf16 %v5013_v37, %v5003_v13  ;;  %v2469_v13 = vld [vmem:[#allocation2 + $0x4e0] sm:$0xff]  ;;  %v2470_v37 = vld [vmem:[#allocation2 + $0x4e8] sm:$0xff]  ;;  %2551 = vmatprep.mubr.f32.mxu0 %v5889_v58 }
 0x134   : > { %v4150_v22 = vpack.c.bf16 %v2461_v48, %v2456_v23  ;;  %v1155_v6 = vpop.permute.xlu1 %1154  ;;  %v1153_v44 = vpop.permute.xlu0 %1152  ;;  %4053 = vmatprep.subr.bf16.mxu1 %v5903_v3  ;;  %3972 = vmatmul.mubr.msk.f32.vlgmr.msra.gmra.mrb[0].mxu1 %vm518_vm7, %v739_v50  ;;  %v4148_v9 = vpack.c.bf16 %v2462_v33, %v2457_v25  ;;  %v998_v23 = vld [vmem:[#allocation2 + $0x150] sm:$0xff]  ;;  %v4058_v14 = vpack.c.bf16 %v874_v43, %v862_v35  ;;  %v1023_v25 = vld [vmem:[#allocation2 + $0x178] sm:$0xff] }
 0x135   : > { %4055 = vmatpush1.bf16.msra.mxu1 %v5904_v52  ;;  %817 = vmatprep.mubr.f32.mxu1 %v5889_v58  ;;  %v2464_v48 = vld [vmem:[#allocation2 + $0x4d0] sm:$0xff]  ;;  %v5363_v1 = vsel %vm1156_vm12, %v1153_v44, %v1155_v6  ;;  %v5367_v49 = vsel %vm1156_vm12, %v1155_v6, %v1153_v44  ;;  %v989_v50 = vmul.f32 %v987_v53, %v5175_v55  ;;  %v986_v6 = vld [vmem:[#allocation2 + $0x140] sm:$0xff]  ;;  %vm1606_vm12 = vcmp.lt.s32.totalorder %v4896_v4, 56 }
 0x136   : > { %4057 = vmatprep.subr.bf16.mxu1 %v4056_v24  ;;  %4149 = vmatprep.subr.bf16.mxu0 %v4148_v9  ;;  %v887_v3 = vmul.f32 %v885_v12, %v5162_v62  ;;  %v1000_v44 = vmul.f32 %v998_v23, %v5191_v7  ;;  %v2466_v53 = vmul.f32 %v2464_v48, %v5363_v1  ;;  %v2475_v12 = vld [vmem:[#allocation2 + $0x4f8] sm:$0xff] }
 0x137   : > { %4151 = vmatpush1.bf16.msra.mxu0 %v4150_v22  ;;  %v2467_v22 = vmul.f32 %v2465_v38, %v5367_v49  ;;  %v886_v35 = vmul.f32 %v884_v47, %v5166_v34  ;;  %v1025_v52 = vmul.f32 %v1023_v25, %v5265_v26  ;;  %v1010_v38 = vld [vmem:[#allocation2 + $0x160] sm:$0xff]  ;;  %v1024_v26 = vmul.f32 %v1022_v61, %v5267_v21  ;;  %v1173_v61 = vld [vmem:[#allocation2 + $0x1c8] sm:$0xff] }
 0x138   : > { %v1167_v33 = vpop.permute.xlu1 %1166  ;;  %v1165_v43 = vpop.permute.xlu0 %1164  ;;  %3973 = vmatmul.mubr.msk.f32.gmra.mrb[2].mxu1 %vm518_vm7, %v740_v57  ;;  %v988_v57 = vmul.f32 %v986_v6, %v5178_v36  ;;  %v1149_v36 = vld [vmem:[#allocation2 + $0x1a8] sm:$0xff]  ;;  %v1137_v6 = vld [vmem:[#allocation2 + $0x198] sm:$0xff] }
 0x139   : > { %v5377_v24 = vsel %vm1168_vm13, %v1165_v43, %v1167_v33  ;;  %v5381_v55 = vsel %vm1168_vm13, %v1167_v33, %v1165_v43  ;;  %4059 = vmatpush1.bf16.msra.mxu1 %v4058_v14  ;;  %961 = vmatprep.mubr.f32.mxu1 %v5889_v58  ;;  %v4060_v43 = vpack.c.bf16 %v1001_v19, %v989_v50  ;;  %vm1618_vm13 = vcmp.lt.s32.totalorder %v4896_v4, 55 }
 0x13a   : > { %v2471_v7 = vmul.f32 %v2469_v13, %v5377_v24  ;;  %v2472_v9 = vmul.f32 %v2470_v37, %v5381_v55  ;;  %905 = vmatprep.subr.mxu1 %v887_v3  ;;  %v1013_v13 = vmul.f32 %v1011_v20, %v5261_v0  ;;  %v4062_v47 = vpack.c.bf16 %v1000_v44, %v988_v57  ;;  %v2474_v3 = vld [vmem:[#allocation2 + $0x4f0] sm:$0xff]  ;;  %v1035_v20 = vld [vmem:[#allocation2 + $0x188] sm:$0xff]  ;;  %v2569_v57 = vld [vmem:[#allocation2 + $0x500] sm:$0xff] }
 0x13b   : > { %v1012_v19 = vmul.f32 %v1010_v38, %v5263_v2  ;;  %v2574_v38 = vld [vmem:[#allocation2 + $0x510] sm:$0xff] }
 0x13c   : > { %v4154_v23 = vpack.c.bf16 %v2471_v7, %v2466_v53  ;;  %v1179_v14 = vpop.permute.xlu1 %1178  ;;  %v1177_v33 = vpop.permute.xlu0 %1176  ;;  %v4152_v48 = vpack.c.bf16 %v2472_v9, %v2467_v22  ;;  %v4064_v0 = vpack.c.bf16 %v1025_v52, %v1013_v13  ;;  %v890_v53 = vld [vmem:[#allocation5 + $0x38] sm:$0xff]  ;;  %v1148_v22 = vld [vmem:[#allocation2 + $0x1a0] sm:$0xff]  ;;  %v1139_v52 = vmul.f32 %v1137_v6, %v5323_v8  ;;  %v2575_v13 = vld [vmem:[#allocation2 + $0x518] sm:$0xff] }
 0x13d   : > { %v5395_v37 = vsel %vm1180_vm14, %v1179_v14, %v1177_v33  ;;  %906 = vmatpush1.msra.mxu1 %v886_v35  ;;  %v5401_v50 = vsel %vm1180_vm14, %v1177_v33, %v1179_v14  ;;  %v4066_v7 = vpack.c.bf16 %v1024_v26, %v1012_v19  ;;  %v1034_v9 = vld [vmem:[#allocation2 + $0x180] sm:$0xff]  ;;  %v1136_v35 = vld [vmem:[#allocation2 + $0x190] sm:$0xff]  ;;  %v1150_v33 = vmul.f32 %v1148_v22, %v5340_v18 }
 0x13e   : > { %v2477_v25 = vmul.f32 %v2475_v12, %v5395_v37  ;;  %4061 = vmatprep.subr.bf16.mxu1 %v4060_v43  ;;  %4153 = vmatprep.subr.bf16.mxu0 %v4152_v48  ;;  %v2476_v2 = vmul.f32 %v2474_v3, %v5401_v50  ;;  %v1161_v12 = vld [vmem:[#allocation2 + $0x1b8] sm:$0xff]  ;;  %v2479_v14 = vld [vmem:[#allocation5 + $0xf0] sm:$0xff]  ;;  %v2570_v43 = vld [vmem:[#allocation2 + $0x508] sm:$0xff]  ;;  %v1138_v26 = vmul.f32 %v1136_v35, %v5327_v28  ;;  %vm1630_vm14 = vcmp.lt.s32.totalorder %v4896_v4, 54 }
 0x13f   : > { %3974 = vmatmul.mubr.msk.f32.vlgmr.msra.gmra.mrb[0].mxu1 %vm518_vm7, %v889_v27  ;;  %4155 = vmatpush1.bf16.msra.mxu0 %v4154_v23  ;;  %v1151_v27 = vmul.f32 %v1149_v36, %v5336_v11  ;;  %v1037_v23 = vmul.f32 %v1035_v20, %v5304_v5  ;;  %v1175_v18 = vmul.f32 %v1173_v61, %v5377_v24  ;;  %v1160_v28 = vld [vmem:[#allocation2 + $0x1b0] sm:$0xff] }
 0x140   : > { %4063 = vmatpush1.bf16.msra.mxu1 %v4062_v47  ;;  %v1281_v44 = vpop.permute.xlu1 %1280  ;;  %v1279_v21 = vpop.permute.xlu0 %1278  ;;  %2495 = vmatprep.subr.mxu0 %v2477_v25  ;;  %v1036_v47 = vmul.f32 %v1034_v9, %v5306_v29  ;;  %v1172_v25 = vld [vmem:[#allocation2 + $0x1c0] sm:$0xff]  ;;  %v1163_v3 = vmul.f32 %v1161_v12, %v5363_v1  ;;  %v4070_v22 = vpack.c.bf16 %v1150_v33, %v1138_v26  ;;  %v1185_v9 = vld [vmem:[#allocation2 + $0x1d8] sm:$0xff]  ;;  %v1184_v26 = vld [vmem:[#allocation2 + $0x1d0] sm:$0xff] }
 0x141   : > { %4065 = vmatprep.subr.bf16.mxu1 %v4064_v0  ;;  %967 = vmatprep.mubr.f32.mxu1 %v5889_v58  ;;  %v1283_v11 = vsel %vm1282_vm15, %v1279_v21, %v1281_v44  ;;  %v5418_v48 = vsel %vm1282_vm15, %v1281_v44, %v1279_v21  ;;  %v4068_v6 = vpack.c.bf16 %v1151_v27, %v1139_v52  ;;  %v1039_v44 = vld [vmem:[#allocation5 + $0x40] sm:$0xff]  ;;  %v2480_v52 = vld [vmem:[#allocation5 + $0xf8] sm:$0xff]  ;;  %v2579_v33 = vld [vmem:[#allocation2 + $0x520] sm:$0xff]  ;;  %vm1732_vm15 = vcmp.lt.s32.totalorder %v4896_v4, 50 }
 0x142   : > { %v2571_v21 = vmul.f32 %v2569_v57, %v1283_v11  ;;  %v2572_v24 = vmul.f32 %v2570_v43, %v5418_v48  ;;  %v1174_v1 = vmul.f32 %v1172_v25, %v5381_v55  ;;  %v4072_v61 = vpack.c.bf16 %v1175_v18, %v1163_v3  ;;  %v1287_v57 = vld [vmem:[#allocation2 + $0x1e8] sm:$0xff]  ;;  %v1040_v55 = vld [vmem:[#allocation5 + $0x48] sm:$0xff] }
 0x143   : > { %3975 = vmatmul.mubr.msk.f32.gmra.mrb[2].mxu1 %vm518_vm7, %v890_v53  ;;  %2496 = vmatpush1.msra.mxu0 %v2476_v2  ;;  %v1162_v12 = vmul.f32 %v1160_v28, %v5367_v49  ;;  %v2584_v49 = vld [vmem:[#allocation2 + $0x530] sm:$0xff]  ;;  %v1187_v25 = vmul.f32 %v1185_v9, %v5401_v50  ;;  %v1289_v18 = vmul.f32 %v1287_v57, %v1283_v11  ;;  %v1286_v28 = vld [vmem:[#allocation2 + $0x1e0] sm:$0xff]  ;;  %v1311_v50 = vld [vmem:[#allocation2 + $0x208] sm:$0xff] }
 0x144   : > { %4067 = vmatpush1.bf16.msra.mxu1 %v4066_v7  ;;  %v1293_v8 = vpop.permute.xlu1 %1292  ;;  %1111 = vmatprep.mubr.f32.mxu1 %v5889_v58  ;;  %v2590_v9 = vld [vmem:[#allocation2 + $0x548] sm:$0xff]  ;;  %v1189_v57 = vld [vmem:[#allocation5 + $0x50] sm:$0xff] }
 0x145   : > { %v1291_v36 = vpop.permute.xlu0 %1290  ;;  %1055 = vmatprep.subr.mxu1 %v1037_v23  ;;  %3998 = vmatmul.mubr.msk.f32.vlgmr.msra.gmra.mrb[0].mxu0 %vm518_vm7, %v2479_v14  ;;  %v1299_v23 = vld [vmem:[#allocation2 + $0x1f8] sm:$0xff]  ;;  %v1298_v14 = vld [vmem:[#allocation2 + $0x1f0] sm:$0xff]  ;;  %v4074_v43 = vpack.c.bf16 %v1174_v1, %v1162_v12  ;;  %v1186_v1 = vmul.f32 %v1184_v26, %v5395_v37  ;;  %v1335_v26 = vld [vmem:[#allocation2 + $0x228] sm:$0xff] }
 0x146   : > { %v1295_v0 = vsel %vm1294_vm0, %v1291_v36, %v1293_v8  ;;  %v1296_v19 = vsel %vm1294_vm0, %v1293_v8, %v1291_v36  ;;  %2557 = vmatprep.mubr.f32.mxu0 %v5889_v58  ;;  %v2580_v8 = vld [vmem:[#allocation2 + $0x528] sm:$0xff]  ;;  %vm1744_vm0 = vcmp.lt.s32.totalorder %v4896_v4, 49 }
 0x147   : > { %v2576_v20 = vmul.f32 %v2574_v38, %v1295_v0  ;;  %v2577_v53 = vmul.f32 %v2575_v13, %v1296_v19  ;;  %v1301_v36 = vmul.f32 %v1299_v23, %v1295_v0  ;;  %v1310_v23 = vld [vmem:[#allocation2 + $0x200] sm:$0xff] }
 0x148   : > { %1056 = vmatpush1.msra.mxu1 %v1036_v47  ;;  %v1305_v7 = vpop.permute.xlu1 %1304  ;;  %v2585_v47 = vld [vmem:[#allocation2 + $0x538] sm:$0xff] }
 0x149   : > { %v4158_v35 = vpack.c.bf16 %v2576_v20, %v2571_v21  ;;  %v1303_v27 = vpop.permute.xlu0 %1302  ;;  %4069 = vmatprep.subr.bf16.mxu1 %v4068_v6  ;;  %3976 = vmatmul.mubr.msk.f32.vlgmr.msra.gmra.mrb[0].mxu1 %vm518_vm7, %v1039_v44  ;;  %v4156_v2 = vpack.c.bf16 %v2577_v53, %v2572_v24  ;;  %v1323_v6 = vld [vmem:[#allocation2 + $0x218] sm:$0xff]  ;;  %v1300_v21 = vmul.f32 %v1298_v14, %v1296_v19  ;;  %v1322_v19 = vld [vmem:[#allocation2 + $0x210] sm:$0xff] }
 0x14a   : > { %4071 = vmatpush1.bf16.msra.mxu1 %v4070_v22  ;;  %1117 = vmatprep.mubr.f32.mxu1 %v5889_v58  ;;  %v1307_v38 = vsel %vm1306_vm1, %v1303_v27, %v1305_v7  ;;  %v1308_v13 = vsel %vm1306_vm1, %v1305_v7, %v1303_v27  ;;  %vm1756_vm1 = vcmp.lt.s32.totalorder %v4896_v4, 48 }
 0x14b   : > { %4073 = vmatprep.subr.bf16.mxu1 %v4072_v61  ;;  %4157 = vmatprep.subr.bf16.mxu0 %v4156_v2  ;;  %v2581_v11 = vmul.f32 %v2579_v33, %v1307_v38  ;;  %v2582_v0 = vmul.f32 %v2580_v8, %v1308_v13  ;;  %v2589_v8 = vld [vmem:[#allocation2 + $0x540] sm:$0xff] }
 0x14c   : > { %3999 = vmatmul.mubr.msk.f32.gmra.mrb[2].mxu0 %vm518_vm7, %v2480_v52  ;;  %v1317_v3 = vpop.permute.xlu1 %1316  ;;  %v4076_v52 = vpack.c.bf16 %v1301_v36, %v1289_v18  ;;  %v1190_v36 = vld [vmem:[#allocation5 + $0x58] sm:$0xff] }
 0x14d   : > { %4159 = vmatpush1.bf16.msra.mxu0 %v4158_v35  ;;  %v1315_v44 = vpop.permute.xlu0 %1314  ;;  %3977 = vmatmul.mubr.msk.f32.gmra.mrb[2].mxu1 %vm518_vm7, %v1040_v55  ;;  %v1288_v35 = vmul.f32 %v1286_v28, %v5418_v48  ;;  %v1313_v55 = vmul.f32 %v1311_v50, %v1307_v38  ;;  %v1334_v38 = vld [vmem:[#allocation2 + $0x220] sm:$0xff] }
 0x14e   : > { %v1319_v24 = vsel %vm1318_vm2, %v1315_v44, %v1317_v3  ;;  %v1320_v20 = vsel %vm1318_vm2, %v1317_v3, %v1315_v44  ;;  %4075 = vmatpush1.bf16.msra.mxu1 %v4074_v43  ;;  %1261 = vmatprep.mubr.f32.mxu1 %v5889_v58  ;;  %v1436_v3 = vld [vmem:[#allocation2 + $0x230] sm:$0xff]  ;;  %v1448_v50 = vld [vmem:[#allocation2 + $0x240] sm:$0xff]  ;;  %vm1768_vm2 = vcmp.lt.s32.totalorder %v4896_v4, 47 }
 0x14f   : > { %v2586_v53 = vmul.f32 %v2584_v49, %v1319_v24  ;;  %v2587_v22 = vmul.f32 %v2585_v47, %v1320_v20  ;;  %1205 = vmatprep.subr.mxu1 %v1187_v25  ;;  %v1325_v7 = vmul.f32 %v1323_v6, %v1319_v24  ;;  %2666 = vmatprep.mubr.f32.mxu0 %v5889_v58  ;;  %v1437_v6 = vld [vmem:[#allocation2 + $0x238] sm:$0xff]  ;;  %v2684_v44 = vld [vmem:[#allocation2 + $0x550] sm:$0xff] }
 0x150   : > { %v1329_v61 = vpop.permute.xlu1 %1328  ;;  %v4078_v37 = vpack.c.bf16 %v1300_v21, %v1288_v35  ;;  %v1324_v33 = vmul.f32 %v1322_v19, %v1320_v20  ;;  %v1312_v47 = vmul.f32 %v1310_v23, %v1308_v13  ;;  %v2685_v20 = vld [vmem:[#allocation2 + $0x558] sm:$0xff]  ;;  %v2594_v19 = vld [vmem:[#allocation5 + $0x100] sm:$0xff] }
 0x151   : > { %v4162_v27 = vpack.c.bf16 %v2586_v53, %v2581_v11  ;;  %v1327_v2 = vpop.permute.xlu0 %1326  ;;  %v4160_v12 = vpack.c.bf16 %v2587_v22, %v2582_v0  ;;  %v4080_v49 = vpack.c.bf16 %v1325_v7, %v1313_v55  ;;  %v1449_v11 = vld [vmem:[#allocation2 + $0x248] sm:$0xff]  ;;  %v2689_v22 = vld [vmem:[#allocation2 + $0x560] sm:$0xff] }
 0x152   : > { %v1332_v14 = vsel %vm1330_vm3, %v1329_v61, %v1327_v2  ;;  %1206 = vmatpush1.msra.mxu1 %v1186_v1  ;;  %v1331_v48 = vsel %vm1330_vm3, %v1327_v2, %v1329_v61  ;;  %v4082_v24 = vpack.c.bf16 %v1324_v33, %v1312_v47  ;;  %v2690_v1 = vld [vmem:[#allocation2 + $0x568] sm:$0xff]  ;;  %vm1780_vm3 = vcmp.lt.s32.totalorder %v4896_v4, 46 }
 0x153   : > { %v2592_v43 = vmul.f32 %v2590_v9, %v1332_v14  ;;  %4077 = vmatprep.subr.bf16.mxu1 %v4076_v52  ;;  %4161 = vmatprep.subr.bf16.mxu0 %v4160_v12  ;;  %v2591_v13 = vmul.f32 %v2589_v8, %v1331_v48  ;;  %v1336_v0 = vmul.f32 %v1334_v38, %v1332_v14 }
 0x154   : > { %3978 = vmatmul.mubr.msk.f32.vlgmr.msra.gmra.mrb[0].mxu1 %vm518_vm7, %v1189_v57  ;;  %4163 = vmatpush1.bf16.msra.mxu0 %v4162_v27  ;;  %v1431_v25 = vpop.permute.xlu1 %1430  ;;  %v1337_v53 = vmul.f32 %v1335_v26, %v1331_v48  ;;  %v1460_v48 = vld [vmem:[#allocation2 + $0x250] sm:$0xff]  ;;  %v1461_v26 = vld [vmem:[#allocation2 + $0x258] sm:$0xff]  ;;  %v5906_v4 = vpack.c.bf16 %v5133_v63, %v5142_v16  ;;  %v3050_v63 = vld [vmem:[#allocation2 + $0x688] sm:$0xff]  ;;  %v5910_v16 = vpack.c.bf16 %v5244_v42, %v5240_v10 }
 0x155   : > { %4079 = vmatpush1.bf16.msra.mxu1 %v4078_v37  ;;  %v1429_v18 = vpop.permute.xlu0 %1428  ;;  %2610 = vmatprep.subr.mxu0 %v2592_v43  ;;  %v1339_v37 = vld [vmem:[#allocation5 + $0x60] sm:$0xff]  ;;  %v5914_v10 = vld [vmem:[#allocation52_spill] sm:$0xff]  ;;  %v5915_v42 = vld [vmem:[#allocation50_spill] sm:$0xff] }
 0x156   : > { %v1433_v28 = vsel %vm1432_vm4, %v1429_v18, %v1431_v25  ;;  %v1434_v21 = vsel %vm1432_vm4, %v1431_v25, %v1429_v18  ;;  %4081 = vmatprep.subr.bf16.mxu1 %v4080_v49  ;;  %1267 = vmatprep.mubr.f32.mxu1 %v5889_v58  ;;  %v2694_v25 = vld [vmem:[#allocation2 + $0x570] sm:$0xff]  ;;  %v2695_v18 = vld [vmem:[#allocation2 + $0x578] sm:$0xff]  ;;  %vm3621_vm4 = vcmask 64512  }
 0x157   : > { %v1438_v7 = vmul.f32 %v1436_v3, %v1434_v21  ;;  %v1439_v9 = vmul.f32 %v1437_v6, %v1433_v28  ;;  %v2686_v35 = vmul.f32 %v2684_v44, %v1433_v28  ;;  %v2687_v2 = vmul.f32 %v2685_v20, %v1434_v21  ;;  %v1472_v6 = vld [vmem:[#allocation2 + $0x260] sm:$0xff]  ;;  %v1340_v44 = vld [vmem:[#allocation5 + $0x68] sm:$0xff]  ;;  %v1473_v21 = vld [vmem:[#allocation2 + $0x268] sm:$0xff] }
 0x158   : > { %3979 = vmatmul.mubr.msk.f32.gmra.mrb[2].mxu1 %vm518_vm7, %v1190_v36  ;;  %2611 = vmatpush1.msra.mxu0 %v2591_v13  ;;  %v1443_v27 = vpop.permute.xlu1 %1442  ;;  %v2595_v28 = vld [vmem:[#allocation5 + $0x108] sm:$0xff]  ;;  %v2700_v13 = vld [vmem:[#allocation2 + $0x588] sm:$0xff] }
 0x159   : > { %4083 = vmatpush1.bf16.msra.mxu1 %v4082_v24  ;;  %v1441_v61 = vpop.permute.xlu0 %1440  ;;  %1411 = vmatprep.mubr.f32.mxu1 %v5889_v58  ;;  %v2699_v24 = vld [vmem:[#allocation2 + $0x580] sm:$0xff] }
 0x15a   : > { %v1445_v52 = vsel %vm1444_vm5, %v1441_v61, %v1443_v27  ;;  %v1446_v12 = vsel %vm1444_vm5, %v1443_v27, %v1441_v61  ;;  %1355 = vmatprep.subr.mxu1 %v1337_v53  ;;  %4000 = vmatmul.mubr.msk.f32.vlgmr.msra.gmra.mrb[0].mxu0 %vm518_vm7, %v2594_v19  ;;  %v1485_v61 = vld [vmem:[#allocation2 + $0x278] sm:$0xff] }
 0x15b   : > { %v1450_v57 = vmul.f32 %v1448_v50, %v1446_v12  ;;  %v1451_v23 = vmul.f32 %v1449_v11, %v1445_v52  ;;  %v2691_v55 = vmul.f32 %v2689_v22, %v1445_v52  ;;  %v2692_v14 = vmul.f32 %v2690_v1, %v1446_v12  ;;  %2672 = vmatprep.mubr.f32.mxu0 %v5889_v58 }
 0x15d   : > { %v4086_v33 = vpack.c.bf16 %v1450_v57, %v1438_v7  ;;  %v4166_v43 = vpack.c.bf16 %v2691_v55, %v2686_v35  ;;  %1356 = vmatpush1.msra.mxu1 %v1336_v0  ;;  %v1455_v8 = vpop.permute.xlu1 %1454  ;;  %v1453_v49 = vpop.permute.xlu0 %1452  ;;  %v4084_v47 = vpack.c.bf16 %v1451_v23, %v1439_v9  ;;  %v4164_v38 = vpack.c.bf16 %v2692_v14, %v2687_v2  ;;  %v2705_v2 = vld [vmem:[#allocation2 + $0x598] sm:$0xff] }
 0x15e   : > { %v1457_v36 = vsel %vm1456_vm6, %v1453_v49, %v1455_v8  ;;  %v1458_v3 = vsel %vm1456_vm6, %v1455_v8, %v1453_v49  ;;  %3980 = vmatmul.mubr.msk.f32.vlgmr.msra.gmra.mrb[0].mxu1 %vm518_vm7, %v1339_v37  ;;  %4001 = vmatmul.mubr.msk.f32.gmra.mrb[2].mxu0 %vm518_vm7, %v2595_v28  ;;  %v2704_v49 = vld [vmem:[#allocation2 + $0x590] sm:$0xff] }
 0x15f   : > { %4085 = vmatprep.subr.bf16.mxu1 %v4084_v47  ;;  %4165 = vmatprep.subr.bf16.mxu0 %v4164_v38  ;;  %v1462_v20 = vmul.f32 %v1460_v48, %v1458_v3  ;;  %v1463_v50 = vmul.f32 %v1461_v26, %v1457_v36  ;;  %v2696_v11 = vmul.f32 %v2694_v25, %v1457_v36  ;;  %v1586_v38 = vld [vmem:[#allocation2 + $0x280] sm:$0xff] }
 0x160   : > { %4087 = vmatpush1.bf16.msra.mxu1 %v4086_v33  ;;  %4167 = vmatpush1.bf16.msra.mxu0 %v4166_v43  ;;  %v2697_v22 = vmul.f32 %v2695_v18, %v1458_v3  ;;  %v1484_v43 = vld [vmem:[#allocation2 + $0x270] sm:$0xff]  ;;  %v1587_v18 = vld [vmem:[#allocation2 + $0x288] sm:$0xff]  ;;  %v2799_v36 = vld [vmem:[#allocation2 + $0x5a0] sm:$0xff] }
 0x161   : > { %v1467_v0 = vpop.permute.xlu1 %1466  ;;  %v1465_v53 = vpop.permute.xlu0 %1464  ;;  %1417 = vmatprep.mubr.f32.mxu1 %v5889_v58  ;;  %2781 = vmatprep.mubr.f32.mxu0 %v5889_v58 }
 0x162   : > { %v1469_v1 = vsel %vm1468_vm8, %v1465_v53, %v1467_v0  ;;  %v1470_v19 = vsel %vm1468_vm8, %v1467_v0, %v1465_v53  ;;  %3981 = vmatmul.mubr.msk.f32.gmra.mrb[2].mxu1 %vm518_vm7, %v1340_v44  ;;  %v1489_v44 = vld [vmem:[#allocation5 + $0x70] sm:$0xff] }
 0x163   : > { %v1474_v7 = vmul.f32 %v1472_v6, %v1470_v19  ;;  %v1475_v9 = vmul.f32 %v1473_v21, %v1469_v1  ;;  %v2701_v35 = vmul.f32 %v2699_v24, %v1469_v1  ;;  %v2702_v27 = vmul.f32 %v2700_v13, %v1470_v19  ;;  %1561 = vmatprep.mubr.f32.mxu1 %v5889_v58  ;;  %v2800_v21 = vld [vmem:[#allocation2 + $0x5a8] sm:$0xff]  ;;  %v1598_v24 = vld [vmem:[#allocation2 + $0x290] sm:$0xff]  ;;  %v2709_v13 = vld [vmem:[#allocation5 + $0x110] sm:$0xff] }
 0x165   : > { %v4090_v52 = vpack.c.bf16 %v1474_v7, %v1462_v20  ;;  %v4170_v12 = vpack.c.bf16 %v2701_v35, %v2696_v11  ;;  %v1479_v57 = vpop.permute.xlu1 %1478  ;;  %v1477_v23 = vpop.permute.xlu0 %1476  ;;  %v4088_v55 = vpack.c.bf16 %v1475_v9, %v1463_v50  ;;  %v4168_v14 = vpack.c.bf16 %v2702_v27, %v2697_v22  ;;  %v1599_v20 = vld [vmem:[#allocation2 + $0x298] sm:$0xff]  ;;  %v2804_v50 = vld [vmem:[#allocation2 + $0x5b0] sm:$0xff]  ;;  %v1490_v27 = vld [vmem:[#allocation5 + $0x78] sm:$0xff] }
 0x166   : > { %v1481_v37 = vsel %vm1480_vm9, %v1477_v23, %v1479_v57  ;;  %v1482_v33 = vsel %vm1480_vm9, %v1479_v57, %v1477_v23  ;;  %v2805_v11 = vld [vmem:[#allocation2 + $0x5b8] sm:$0xff]  ;;  %v2710_v57 = vld [vmem:[#allocation5 + $0x118] sm:$0xff] }
 0x167   : > { %v1487_v8 = vmul.f32 %v1485_v61, %v1481_v37  ;;  %v2707_v48 = vmul.f32 %v2705_v2, %v1482_v33  ;;  %4089 = vmatprep.subr.bf16.mxu1 %v4088_v55  ;;  %4169 = vmatprep.subr.bf16.mxu0 %v4168_v14  ;;  %v1486_v25 = vmul.f32 %v1484_v43, %v1482_v33 }
 0x168   : > { %4091 = vmatpush1.bf16.msra.mxu1 %v4090_v52  ;;  %4171 = vmatpush1.bf16.msra.mxu0 %v4170_v12  ;;  %v2706_v28 = vmul.f32 %v2704_v49, %v1481_v37 }
 0x169   : > { %v1581_v47 = vpop.permute.xlu1 %1580  ;;  %v1579_v26 = vpop.permute.xlu0 %1578  ;;  %1505 = vmatprep.subr.mxu1 %v1487_v8  ;;  %2725 = vmatprep.subr.mxu0 %v2707_v48  ;;  %v1610_v8 = vld [vmem:[#allocation2 + $0x2a0] sm:$0xff]  ;;  %v1611_v48 = vld [vmem:[#allocation2 + $0x2a8] sm:$0xff] }
 0x16a   : > { %v1583_v3 = vsel %vm1582_vm10, %v1579_v26, %v1581_v47  ;;  %v1584_v6 = vsel %vm1582_vm10, %v1581_v47, %v1579_v26  ;;  %v2810_v26 = vld [vmem:[#allocation2 + $0x5c8] sm:$0xff] }
 0x16b   : > { %v1588_v0 = vmul.f32 %v1586_v38, %v1584_v6  ;;  %v1589_v53 = vmul.f32 %v1587_v18, %v1583_v3  ;;  %v2801_v22 = vmul.f32 %v2799_v36, %v1583_v3  ;;  %v2802_v7 = vmul.f32 %v2800_v21, %v1584_v6  ;;  %v2809_v38 = vld [vmem:[#allocation2 + $0x5c0] sm:$0xff]  ;;  %v1623_v18 = vld [vmem:[#allocation2 + $0x2b8] sm:$0xff]  ;;  %v2814_v36 = vld [vmem:[#allocation2 + $0x5d0] sm:$0xff] }
 0x16c   : > { %1506 = vmatpush1.msra.mxu1 %v1486_v25  ;;  %2726 = vmatpush1.msra.mxu0 %v2706_v28  ;;  %v1622_v25 = vld [vmem:[#allocation2 + $0x2b0] sm:$0xff]  ;;  %v2815_v3 = vld [vmem:[#allocation2 + $0x5d8] sm:$0xff] }
 0x16d   : > { %v1593_v1 = vpop.permute.xlu1 %1592  ;;  %v1591_v19 = vpop.permute.xlu0 %1590  ;;  %3982 = vmatmul.mubr.msk.f32.vlgmr.msra.gmra.mrb[0].mxu1 %vm518_vm7, %v1489_v44  ;;  %4002 = vmatmul.mubr.msk.f32.vlgmr.msra.gmra.mrb[0].mxu0 %vm518_vm7, %v2709_v13 }
 0x16e   : > { %v1595_v9 = vsel %vm1594_vm11, %v1591_v19, %v1593_v1  ;;  %v1596_v35 = vsel %vm1594_vm11, %v1593_v1, %v1591_v19  ;;  %1567 = vmatprep.mubr.f32.mxu1 %v5889_v58  ;;  %2787 = vmatprep.mubr.f32.mxu0 %v5889_v58  ;;  %v1635_v1 = vld [vmem:[#allocation2 + $0x2c8] sm:$0xff] }
 0x16f   : > { %v1600_v61 = vmul.f32 %v1598_v24, %v1596_v35  ;;  %v1601_v2 = vmul.f32 %v1599_v20, %v1595_v9  ;;  %v2806_v52 = vmul.f32 %v2804_v50, %v1595_v9  ;;  %v2807_v12 = vmul.f32 %v2805_v11, %v1596_v35  ;;  %v2820_v19 = vld [vmem:[#allocation2 + $0x5e8] sm:$0xff] }
 0x171   : > { %v4094_v23 = vpack.c.bf16 %v1600_v61, %v1588_v0  ;;  %v4174_v55 = vpack.c.bf16 %v2806_v52, %v2801_v22  ;;  %v1605_v14 = vpop.permute.xlu1 %1604  ;;  %v1603_v37 = vpop.permute.xlu0 %1602  ;;  %v4092_v33 = vpack.c.bf16 %v1601_v2, %v1589_v53  ;;  %v4172_v43 = vpack.c.bf16 %v2807_v12, %v2802_v7  ;;  %3983 = vmatmul.mubr.msk.f32.gmra.mrb[2].mxu1 %vm518_vm7, %v1490_v27 }
 0x172   : > { %v1607_v49 = vsel %vm1606_vm12, %v1603_v37, %v1605_v14  ;;  %v1608_v47 = vsel %vm1606_vm12, %v1605_v14, %v1603_v37  ;;  %4003 = vmatmul.mubr.msk.f32.gmra.mrb[2].mxu0 %vm518_vm7, %v2710_v57  ;;  %1711 = vmatprep.mubr.f32.mxu1 %v5889_v58  ;;  %v1634_v57 = vld [vmem:[#allocation2 + $0x2c0] sm:$0xff] }
 0x173   : > { %4093 = vmatprep.subr.bf16.mxu1 %v4092_v33  ;;  %4173 = vmatprep.subr.bf16.mxu0 %v4172_v43  ;;  %v1612_v6 = vmul.f32 %v1610_v8, %v1608_v47  ;;  %v1613_v44 = vmul.f32 %v1611_v48, %v1607_v49  ;;  %v2811_v24 = vmul.f32 %v2809_v38, %v1607_v49  ;;  %v2819_v14 = vld [vmem:[#allocation2 + $0x5e0] sm:$0xff]  ;;  %v1736_v33 = vld [vmem:[#allocation2 + $0x2d0] sm:$0xff]  ;;  %v1737_v48 = vld [vmem:[#allocation2 + $0x2d8] sm:$0xff] }
 0x174   : > { %4095 = vmatpush1.bf16.msra.mxu1 %v4094_v23  ;;  %4175 = vmatpush1.bf16.msra.mxu0 %v4174_v55  ;;  %v2812_v13 = vmul.f32 %v2810_v26, %v1608_v47  ;;  %v2914_v49 = vld [vmem:[#allocation2 + $0x5f0] sm:$0xff] }
 0x175   : > { %v1617_v28 = vpop.permute.xlu1 %1616  ;;  %v1615_v21 = vpop.permute.xlu0 %1614  ;;  %2896 = vmatprep.mubr.f32.mxu0 %v5889_v58  ;;  %v1639_v26 = vld [vmem:[#allocation5 + $0x80] sm:$0xff] }
 0x176   : > { %v1619_v20 = vsel %vm1618_vm13, %v1615_v21, %v1617_v28  ;;  %v1620_v50 = vsel %vm1618_vm13, %v1617_v28, %v1615_v21  ;;  %v2920_v28 = vld [vmem:[#allocation2 + $0x608] sm:$0xff] }
 0x177   : > { %v1624_v11 = vmul.f32 %v1622_v25, %v1620_v50  ;;  %v1625_v0 = vmul.f32 %v1623_v18, %v1619_v20  ;;  %v2816_v53 = vmul.f32 %v2814_v36, %v1619_v20  ;;  %v2817_v22 = vmul.f32 %v2815_v3, %v1620_v50  ;;  %v2915_v18 = vld [vmem:[#allocation2 + $0x5f8] sm:$0xff]  ;;  %v1748_v36 = vld [vmem:[#allocation2 + $0x2e0] sm:$0xff]  ;;  %v2824_v3 = vld [vmem:[#allocation5 + $0x120] sm:$0xff] }
 0x179   : > { %v4098_v7 = vpack.c.bf16 %v1624_v11, %v1612_v6  ;;  %v4178_v9 = vpack.c.bf16 %v2816_v53, %v2811_v24  ;;  %v1629_v35 = vpop.permute.xlu1 %1628  ;;  %v1627_v27 = vpop.permute.xlu0 %1626  ;;  %v4096_v61 = vpack.c.bf16 %v1625_v0, %v1613_v44  ;;  %v4176_v2 = vpack.c.bf16 %v2817_v22, %v2812_v13  ;;  %v1749_v6 = vld [vmem:[#allocation2 + $0x2e8] sm:$0xff]  ;;  %v2919_v44 = vld [vmem:[#allocation2 + $0x600] sm:$0xff]  ;;  %v1640_v22 = vld [vmem:[#allocation5 + $0x88] sm:$0xff] }
 0x17a   : > { %v1631_v52 = vsel %vm1630_vm14, %v1627_v27, %v1629_v35  ;;  %v1632_v12 = vsel %vm1630_vm14, %v1629_v35, %v1627_v27  ;;  %v2825_v35 = vld [vmem:[#allocation5 + $0x128] sm:$0xff] }
 0x17b   : > { %v1637_v23 = vmul.f32 %v1635_v1, %v1631_v52  ;;  %v2822_v55 = vmul.f32 %v2820_v19, %v1632_v12  ;;  %4097 = vmatprep.subr.bf16.mxu1 %v4096_v61  ;;  %4177 = vmatprep.subr.bf16.mxu0 %v4176_v2  ;;  %v1636_v8 = vmul.f32 %v1634_v57, %v1632_v12 }
 0x17c   : > { %4099 = vmatpush1.bf16.msra.mxu1 %v4098_v7  ;;  %4179 = vmatpush1.bf16.msra.mxu0 %v4178_v9  ;;  %v2821_v25 = vmul.f32 %v2819_v14, %v1631_v52 }
 0x17d   : > { %v1731_v37 = vpop.permute.xlu1 %1730  ;;  %v1729_v43 = vpop.permute.xlu0 %1728  ;;  %1655 = vmatprep.subr.mxu1 %v1637_v23  ;;  %2840 = vmatprep.subr.mxu0 %v2822_v55  ;;  %v1760_v23 = vld [vmem:[#allocation2 + $0x2f0] sm:$0xff]  ;;  %v1761_v55 = vld [vmem:[#allocation2 + $0x2f8] sm:$0xff] }
 0x17e   : > { %v1733_v47 = vsel %vm1732_vm15, %v1729_v43, %v1731_v37  ;;  %v1734_v38 = vsel %vm1732_vm15, %v1731_v37, %v1729_v43  ;;  %v2925_v43 = vld [vmem:[#allocation2 + $0x618] sm:$0xff] }
 0x17f   : > { %v1738_v21 = vmul.f32 %v1736_v33, %v1734_v38  ;;  %v1739_v24 = vmul.f32 %v1737_v48, %v1733_v47  ;;  %v2916_v13 = vmul.f32 %v2914_v49, %v1733_v47  ;;  %v2917_v11 = vmul.f32 %v2915_v18, %v1734_v38  ;;  %v2924_v33 = vld [vmem:[#allocation2 + $0x610] sm:$0xff]  ;;  %v1773_v48 = vld [vmem:[#allocation2 + $0x308] sm:$0xff]  ;;  %v2929_v49 = vld [vmem:[#allocation2 + $0x620] sm:$0xff] }
 0x180   : > { %1656 = vmatpush1.msra.mxu1 %v1636_v8  ;;  %2841 = vmatpush1.msra.mxu0 %v2821_v25  ;;  %v1772_v8 = vld [vmem:[#allocation2 + $0x300] sm:$0xff]  ;;  %v2930_v47 = vld [vmem:[#allocation2 + $0x628] sm:$0xff] }
 0x181   : > { %v1743_v20 = vpop.permute.xlu1 %1742  ;;  %v1741_v50 = vpop.permute.xlu0 %1740  ;;  %3984 = vmatmul.mubr.msk.f32.vlgmr.msra.gmra.mrb[0].mxu1 %vm518_vm7, %v1639_v26  ;;  %4004 = vmatmul.mubr.msk.f32.vlgmr.msra.gmra.mrb[0].mxu0 %vm518_vm7, %v2824_v3 }
 0x182   : > { %v1745_v0 = vsel %vm1744_vm0, %v1741_v50, %v1743_v20  ;;  %v1746_v53 = vsel %vm1744_vm0, %v1743_v20, %v1741_v50  ;;  %1717 = vmatprep.mubr.f32.mxu1 %v5889_v58  ;;  %2902 = vmatprep.mubr.f32.mxu0 %v5889_v58  ;;  %v1785_v20 = vld [vmem:[#allocation2 + $0x318] sm:$0xff] }
 0x183   : > { %v1750_v1 = vmul.f32 %v1748_v36, %v1746_v53  ;;  %v1751_v19 = vmul.f32 %v1749_v6, %v1745_v0  ;;  %v2921_v7 = vmul.f32 %v2919_v44, %v1745_v0  ;;  %v2922_v9 = vmul.f32 %v2920_v28, %v1746_v53  ;;  %v2935_v50 = vld [vmem:[#allocation2 + $0x638] sm:$0xff] }
 0x185   : > { %v4102_v27 = vpack.c.bf16 %v1750_v1, %v1738_v21  ;;  %v4182_v61 = vpack.c.bf16 %v2921_v7, %v2916_v13  ;;  %v1755_v2 = vpop.permute.xlu1 %1754  ;;  %v1753_v52 = vpop.permute.xlu0 %1752  ;;  %v4100_v12 = vpack.c.bf16 %v1751_v19, %v1739_v24  ;;  %v4180_v57 = vpack.c.bf16 %v2922_v9, %v2917_v11  ;;  %3985 = vmatmul.mubr.msk.f32.gmra.mrb[2].mxu1 %vm518_vm7, %v1640_v22  ;;  %v1784_v22 = vld [vmem:[#allocation2 + $0x310] sm:$0xff] }
 0x186   : > { %v1757_v14 = vsel %vm1756_vm1, %v1753_v52, %v1755_v2  ;;  %v1758_v37 = vsel %vm1756_vm1, %v1755_v2, %v1753_v52  ;;  %4005 = vmatmul.mubr.msk.f32.gmra.mrb[2].mxu0 %vm518_vm7, %v2825_v35  ;;  %1861 = vmatprep.mubr.f32.mxu1 %v5889_v58  ;;  %v2934_v9 = vld [vmem:[#allocation2 + $0x630] sm:$0xff] }
 0x187   : > { %4101 = vmatprep.subr.bf16.mxu1 %v4100_v12  ;;  %4181 = vmatprep.subr.bf16.mxu0 %v4180_v57  ;;  %v1762_v38 = vmul.f32 %v1760_v23, %v1758_v37  ;;  %v1763_v26 = vmul.f32 %v1761_v55, %v1757_v14  ;;  %v2926_v36 = vmul.f32 %v2924_v33, %v1757_v14  ;;  %v1789_v57 = vld [vmem:[#allocation5 + $0x90] sm:$0xff]  ;;  %v1790_v33 = vld [vmem:[#allocation5 + $0x98] sm:$0xff] }
 0x188   : > { %4103 = vmatpush1.bf16.msra.mxu1 %v4102_v27  ;;  %4183 = vmatpush1.bf16.msra.mxu0 %v4182_v61  ;;  %v2927_v3 = vmul.f32 %v2925_v43, %v1758_v37  ;;  %v2939_v23 = vld [vmem:[#allocation5 + $0x130] sm:$0xff]  ;;  %v5905_v55 = vpack.c.bf16 %v5127_v30, %v5123_v17  ;;  %v5907_v14 = vpack.c.bf16 %v5125_v31, %v5121_v39  ;;  %v1900_v37 = vld [vmem:[#allocation2 + $0x368] sm:$0xff] }
 0x189   : > { %v1767_v25 = vpop.permute.xlu1 %1766  ;;  %v1765_v18 = vpop.permute.xlu0 %1764  ;;  %3011 = vmatprep.mubr.f32.mxu0 %v5889_v58  ;;  %v5908_v43 = vpack.c.bf16 %v5131_v54, %v5129_v56  ;;  %v5909_v30 = vpack.c.bf16 %v5238_v32, %v5228_v60  ;;  %v2940_v17 = vld [vmem:[#allocation5 + $0x138] sm:$0xff]  ;;  %v1899_v39 = vld [vmem:[#allocation2 + $0x360] sm:$0xff]  ;;  %v1902_v31 = vmul.f32 %v1900_v37, %v5290_v51  ;;  %v3052_v32 = vmul.f32 %v3050_v63, %v5294_v59 }
 0x18a   : > { %v1769_v6 = vsel %vm1768_vm2, %v1765_v18, %v1767_v25  ;;  %v1770_v44 = vsel %vm1768_vm2, %v1767_v25, %v1765_v18  ;;  %v3049_v54 = vld [vmem:[#allocation2 + $0x680] sm:$0xff]  ;;  %v5917_v25 = vld [vmem:[#allocation24_spill] sm:$0xff] }
 0x18b   : > { %v1774_v28 = vmul.f32 %v1772_v8, %v1770_v44  ;;  %v1775_v21 = vmul.f32 %v1773_v48, %v1769_v6  ;;  %v2931_v24 = vmul.f32 %v2929_v49, %v1769_v6  ;;  %v2932_v13 = vmul.f32 %v2930_v47, %v1770_v44  ;;  %v5911_v56 = vld [vmem:[#allocation51_spill] sm:$0xff]  ;;  %v5912_v8 = vld [vmem:[#allocation49_spill] sm:$0xff]  ;;  %v5918_v18 = vld [vmem:[#allocation20_spill] sm:$0xff] }
 0x18c   : > { %v5913_v60 = vpack.c.bf16 %v5911_v56, %v5912_v8  ;;  %v5916_v48 = vpack.c.bf16 %v5914_v10, %v5915_v42  ;;  %v1901_v49 = vmul.f32 %v1899_v39, %v5294_v59  ;;  %v3051_v47 = vmul.f32 %v3049_v54, %v5290_v51  ;;  %v5921_v6 = vld [vmem:[#allocation22_spill] sm:$0xff]  ;;  %v5923_v59 = vld [vmem:[#allocation23_spill] sm:$0xff]  ;;  %v5940_v37 = vld [vmem:[#allocation36_spill] sm:$0xff] }
 0x18d   : > { %v4106_v11 = vpack.c.bf16 %v1774_v28, %v1762_v38  ;;  %v4186_v0 = vpack.c.bf16 %v2931_v24, %v2926_v36  ;;  %v1779_v53 = vpop.permute.xlu1 %1778  ;;  %v1777_v1 = vpop.permute.xlu0 %1776  ;;  %v4104_v19 = vpack.c.bf16 %v1775_v21, %v1763_v26  ;;  %v4184_v7 = vpack.c.bf16 %v2932_v13, %v2927_v3  ;;  %v1904_v38 = vld [vmem:[#allocation5 + $0xa0] sm:$0xff]  ;;  %v5920_v3 = vld [vmem:[#allocation26_spill] sm:$0xff]  ;;  %v5924_v28 = vld [vmem:[#allocation19_spill] sm:$0xff] }
 0x18e   : > { %v1781_v35 = vsel %vm1780_vm3, %v1777_v1, %v1779_v53  ;;  %v1782_v27 = vsel %vm1780_vm3, %v1779_v53, %v1777_v1  ;;  %v3054_v26 = vld [vmem:[#allocation5 + $0x140] sm:$0xff]  ;;  %v5919_v36 = vpack.c.bf16 %v5917_v25, %v5918_v18  ;;  %v5922_v44 = vpack.c.bf16 %v5920_v3, %v5921_v6  ;;  %v1905_v51 = vld [vmem:[#allocation5 + $0xa8] sm:$0xff]  ;;  %v2019_v63 = vld [vmem:[#allocation5 + $0xb0] sm:$0xff] }
 0x18f   : > { %v1787_v61 = vmul.f32 %v1785_v20, %v1781_v35  ;;  %v2937_v2 = vmul.f32 %v2935_v50, %v1782_v27  ;;  %4105 = vmatprep.subr.bf16.mxu1 %v4104_v19  ;;  %v1786_v52 = vmul.f32 %v1784_v22, %v1782_v27  ;;  %4185 = vmatprep.subr.bf16.mxu0 %v4184_v7  ;;  %v2015_v24 = vld [vmem:[#allocation2 + $0x3b8] sm:$0xff]  ;;  %v5926_v13 = vld [vmem:[#allocation25_spill] sm:$0xff]  ;;  %v5935_v27 = vld [vmem:[#allocation43_spill] sm:$0xff] }
 0x190   : > { %4107 = vmatpush1.bf16.msra.mxu1 %v4106_v11  ;;  %v2936_v12 = vmul.f32 %v2934_v9, %v1781_v35  ;;  %4187 = vmatpush1.bf16.msra.mxu0 %v4186_v0  ;;  %v5925_v21 = vpack.c.bf16 %v5923_v59, %v5924_v28  ;;  %v5927_v20 = vld [vmem:[#allocation21_spill] sm:$0xff]  ;;  %v5929_v11 = vld [vmem:[#allocation34_spill] sm:$0xff]  ;;  %v5930_v0 = vld [vmem:[#allocation32_spill] sm:$0xff] }
 0x191   : > { %1805 = vmatprep.subr.mxu1 %v1787_v61  ;;  %2955 = vmatprep.subr.mxu0 %v2937_v2  ;;  %v5928_v50 = vpack.c.bf16 %v5926_v13, %v5927_v20  ;;  %v5931_v53 = vpack.c.bf16 %v5929_v11, %v5930_v0  ;;  %v3165_v22 = vld [vmem:[#allocation2 + $0x6d8] sm:$0xff]  ;;  %v5932_v19 = vld [vmem:[#allocation37_spill] sm:$0xff]  ;;  %v2017_v61 = vmul.f32 %v2015_v24, %v5935_v27  ;;  %v4458_v54 = vld [vmem:[%s4826_s22] sm:$0xff] }
 0x192   : > { %v3055_v1 = vld [vmem:[#allocation5 + $0x148] sm:$0xff]  ;;  %v2014_v35 = vld [vmem:[#allocation2 + $0x3b0] sm:$0xff]  ;;  %v3169_v8 = vld [vmem:[#allocation5 + $0x150] sm:$0xff] }
 0x193   : > { %v5933_v7 = vld [vmem:[#allocation38_spill] sm:$0xff]  ;;  %v5943_v42 = vld [vmem:[#allocation16_spill] sm:$0xff]  ;;  %v3619_v3 = vld [vmem:[%s5788_s5] sm:$0xff] }
 0x194   : > { %1806 = vmatpush1.msra.mxu1 %v1786_v52  ;;  %2956 = vmatpush1.msra.mxu0 %v2936_v12  ;;  %v5934_v9 = vpack.c.bf16 %v5932_v19, %v5933_v7  ;;  %v3275_v2 = vld [vmem:[#allocation2 + $0x718] sm:$0xff]  ;;  %v3164_v52 = vld [vmem:[#allocation2 + $0x6d0] sm:$0xff]  ;;  %v3280_v18 = vld [vmem:[#allocation2 + $0x728] sm:$0xff] }
 0x195   : > { %4109 = vmatprep.subr.bf16.mxu1 %v5905_v55  ;;  %4189 = vmatprep.subr.bf16.mxu0 %v5906_v4  ;;  %v5936_v12 = vld [vmem:[#allocation33_spill] sm:$0xff]  ;;  %v5939_v55 = vld [vmem:[#allocation44_spill] sm:$0xff]  ;;  %v3277_v39 = vmul.f32 %v3275_v2, %v4916_v40  ;;  %v3279_v6 = vld [vmem:[#allocation2 + $0x720] sm:$0xff] }
 0x196   : > { %3986 = vmatmul.mubr.msk.f32.vlgmr.msra.gmra.mrb[0].mxu1 %vm518_vm7, %v1789_v57  ;;  %4006 = vmatmul.mubr.msk.f32.vlgmr.msra.gmra.mrb[0].mxu0 %vm518_vm7, %v2939_v23  ;;  %v5937_v57 = vld [vmem:[#allocation31_spill] sm:$0xff]  ;;  %v3167_v4 = vmul.f32 %v3165_v22, %v5939_v55  ;;  %v2020_v40 = vld [vmem:[#allocation5 + $0xb8] sm:$0xff]  ;;  %v3281_v59 = vmul.f32 %v3279_v6, %v4988_v46  ;;  %v3284_v28 = vld [vmem:[#allocation5 + $0x160] sm:$0xff] }
 0x197   : > { %4111 = vmatpush1.bf16.msra.mxu1 %v5907_v14  ;;  %4191 = vmatpush1.bf16.msra.mxu0 %v5908_v43  ;;  %v5938_v23 = vpack.c.bf16 %v5936_v12, %v5937_v57  ;;  %v3270_v14 = vld [vmem:[#allocation2 + $0x708] sm:$0xff]  ;;  %v5953_v20 = vld [vmem:[#allocation27_spill] sm:$0xff]  ;;  %v3395_v46 = vld [vmem:[#allocation2 + $0x778] sm:$0xff] }
 0x198   : > { %4113 = vmatprep.subr.bf16.mxu1 %v5909_v30  ;;  %4193 = vmatprep.subr.bf16.mxu0 %v5910_v16  ;;  %v2016_v30 = vmul.f32 %v2014_v35, %v5939_v55  ;;  %v3274_v16 = vld [vmem:[#allocation2 + $0x710] sm:$0xff]  ;;  %v3272_v56 = vmul.f32 %v4458_v54, %v3270_v14  ;;  %v5952_v13 = vld [vmem:[#allocation28_spill] sm:$0xff]  ;;  %v3285_v11 = vld [vmem:[#allocation5 + $0x168] sm:$0xff]  ;;  %v3397_v19 = vmul.f32 %v3395_v46, %v5162_v62 }
 0x199   : > { %1867 = vmatprep.mubr.f32.mxu1 %v5889_v58  ;;  %3017 = vmatprep.mubr.f32.mxu0 %v5889_v58  ;;  %v3276_v10 = vmul.f32 %v3274_v16, %v4920_v41  ;;  %v5955_v0 = vld [vmem:[#allocation41_spill] sm:$0xff]  ;;  %v5958_v7 = vld [vmem:[#allocation40_spill] sm:$0xff]  ;;  %v5964_v62 = vld [vmem:[#allocation47_spill] sm:$0xff] }
 0x19a   : > { %3987 = vmatmul.mubr.msk.f32.gmra.mrb[2].mxu1 %vm518_vm7, %v1790_v33  ;;  %4007 = vmatmul.mubr.msk.f32.gmra.mrb[2].mxu0 %vm518_vm7, %v2940_v17  ;;  %v5941_v33 = vld [vmem:[#allocation35_spill] sm:$0xff]  ;;  %v5961_v2 = vld [vmem:[#allocation48_spill] sm:$0xff]  ;;  %v5965_v57 = vld [vmem:[#allocation45_spill] sm:$0xff] }
 0x19b   : > { %4115 = vmatpush1.bf16.msra.mxu1 %v5913_v60  ;;  %4195 = vmatpush1.bf16.msra.mxu0 %v5916_v48  ;;  %v5942_v43 = vpack.c.bf16 %v5940_v37, %v5941_v33  ;;  %v3269_v17 = vld [vmem:[#allocation2 + $0x700] sm:$0xff]  ;;  %v4459_v60 = vld [vmem:[%s4826_s22 + $0x8] sm:$0xff]  ;;  %v5944_v48 = vld [vmem:[#allocation18_spill] sm:$0xff] }
 0x19c   : > { %1920 = vmatprep.subr.mxu1 %v1902_v31  ;;  %3070 = vmatprep.subr.mxu0 %v3052_v32  ;;  %v3166_v31 = vmul.f32 %v3164_v52, %v5935_v27  ;;  %v3271_v32 = vmul.f32 %v4459_v60, %v3269_v17  ;;  %v5962_v52 = vld [vmem:[#allocation46_spill] sm:$0xff]  ;;  %v3400_v55 = vld [vmem:[#allocation5 + $0x178] sm:$0xff]  ;;  %v3514_v16 = vld [vmem:[#allocation5 + $0x180] sm:$0xff] }
 0x19d   : > { %1976 = vmatprep.mubr.f32.mxu1 %v5889_v58  ;;  %3126 = vmatprep.mubr.f32.mxu0 %v5889_v58  ;;  %v5963_v12 = vpack.c.bf16 %v5961_v2, %v5962_v52  ;;  %v5967_v14 = vld [vmem:[#allocation54_spill] sm:$0xff] }
 0x19e   : > { %v4210_v41 = vpack.c.bf16 %v3276_v10, %v3271_v32  ;;  %v5968_v37 = vpack.c.bf16 %v5284_v15, %v5967_v14  ;;  %v3515_v15 = vld [vmem:[#allocation5 + $0x188] sm:$0xff] }
 0x19f   : > { %1921 = vmatpush1.msra.mxu1 %v1901_v49  ;;  %3071 = vmatpush1.msra.mxu0 %v3051_v47  ;;  %v5945_v49 = vpack.c.bf16 %v5943_v42, %v5944_v48  ;;  %v4208_v47 = vpack.c.bf16 %v3277_v39, %v3272_v56  ;;  %v4644_v39 = vmov 0   ;;  %v3603_v48 = vld [vmem:[%s5786_s3] sm:$0xff] }
 0x1a0   : > { %4117 = vmatprep.subr.bf16.mxu1 %v5919_v36  ;;  %4197 = vmatprep.subr.bf16.mxu0 %v5922_v44  ;;  %v3170_v36 = vld [vmem:[#allocation5 + $0x158] sm:$0xff]  ;;  %v3282_v44 = vmul.f32 %v3280_v18, %v4984_v45  ;;  %v5950_v45 = vld [vmem:[#allocation30_spill] sm:$0xff] }
 0x1a1   : > { %3988 = vmatmul.mubr.msk.f32.vlgmr.msra.gmra.mrb[0].mxu1 %vm518_vm7, %v1904_v38  ;;  %4008 = vmatmul.mubr.msk.f32.vlgmr.msra.gmra.mrb[0].mxu0 %vm518_vm7, %v3054_v26  ;;  %v5946_v38 = vld [vmem:[#allocation15_spill] sm:$0xff]  ;;  %v5947_v26 = vld [vmem:[#allocation17_spill] sm:$0xff] }
 0x1a2   : > { %4119 = vmatpush1.bf16.msra.mxu1 %v5925_v21  ;;  %4199 = vmatpush1.bf16.msra.mxu0 %v5928_v50  ;;  %v5948_v25 = vpack.c.bf16 %v5946_v38, %v5947_v26  ;;  %v3620_v21 = vld [vmem:[%s5788_s5 + $0x8] sm:$0xff]  ;;  %v5954_v50 = vpack.c.bf16 %v5952_v13, %v5953_v20  ;;  %v3611_v26 = vld [vmem:[%s5787_s4] sm:$0xff] }
 0x1a3   : > { %4121 = vmatprep.subr.bf16.mxu1 %v5931_v53  ;;  %4201 = vmatprep.subr.bf16.mxu0 %v5934_v9  ;;  %v5956_v53 = vld [vmem:[#allocation42_spill] sm:$0xff]  ;;  %v5959_v9 = vld [vmem:[#allocation39_spill] sm:$0xff] }
 0x1a4   : > { %1982 = vmatprep.mubr.f32.mxu1 %v5889_v58  ;;  %3132 = vmatprep.mubr.f32.mxu0 %v5889_v58  ;;  %v5957_v22 = vpack.c.bf16 %v5955_v0, %v5956_v53  ;;  %v5960_v35 = vpack.c.bf16 %v5958_v7, %v5959_v9 }
 0x1a5   : > { %3989 = vmatmul.mubr.msk.f32.gmra.mrb[2].mxu1 %vm518_vm7, %v1905_v51  ;;  %4009 = vmatmul.mubr.msk.f32.gmra.mrb[2].mxu0 %vm518_vm7, %v3055_v1  ;;  %v5949_v51 = vld [vmem:[#allocation29_spill] sm:$0xff] }
 0x1a6   : > { %4123 = vmatpush1.bf16.msra.mxu1 %v5938_v23  ;;  %4203 = vmatpush1.bf16.msra.mxu0 %v5942_v43  ;;  %v5951_v24 = vpack.c.bf16 %v5949_v51, %v5950_v45  ;;  %v3394_v1 = vld [vmem:[#allocation2 + $0x770] sm:$0xff]  ;;  %v5966_v23 = vpack.c.bf16 %v5964_v62, %v5965_v57  ;;  %v5969_v43 = vld [vmem:[#allocation55_spill] sm:$0xff] }
 0x1a7   : > { %2035 = vmatprep.subr.mxu1 %v2017_v61  ;;  %3185 = vmatprep.subr.mxu0 %v3167_v4  ;;  %v3396_v27 = vmul.f32 %v3394_v1, %v5166_v34  ;;  %v3399_v61 = vld [vmem:[#allocation5 + $0x170] sm:$0xff]  ;;  %v3510_v4 = vld [vmem:[#allocation2 + $0x7c8] sm:$0xff] }
 0x1a8   : > { %2091 = vmatprep.mubr.f32.mxu1 %v5889_v58  ;;  %3241 = vmatprep.mubr.f32.mxu0 %v5889_v58  ;;  %v3509_v34 = vld [vmem:[#allocation2 + $0x7c0] sm:$0xff]  ;;  %v3512_v33 = vmul.f32 %v3510_v4, %v5304_v5 }
 0x1a9   : > { %v3511_v17 = vmul.f32 %v3509_v34, %v5306_v29  ;;  %4447 = vset.pattern.permute.xlu1 %v4644_v39  ;;  %4446 = vset.pattern.permute.xlu0 %v4644_v39  ;;  %v3721_v45 = vld [vmem:[%s5790_s7] sm:$0xff] }
 0x1aa   : > { %2036 = vmatpush1.msra.mxu1 %v2016_v30  ;;  %3186 = vmatpush1.msra.mxu0 %v3166_v31  ;;  %v5970_v30 = vld [vmem:[#allocation53_spill] sm:$0xff] }
 0x1ab   : > { %3990 = vmatmul.mubr.msk.f32.vlgmr.msra.gmra.mrb[0].mxu1 %vm518_vm7, %v2019_v63  ;;  %4205 = vmatprep.subr.bf16.mxu0 %v5945_v49  ;;  %v5971_v63 = vpack.c.bf16 %v5969_v43, %v5970_v30 }
 0x1ac   : > { %3628 = vmatprep.subr.mxu1 %v4459_v60  ;;  %4010 = vmatmul.mubr.msk.f32.vlgmr.msra.gmra.mrb[0].mxu0 %vm518_vm7, %v3169_v8 }
 0x1ad   : > { %3629 = vmatpush1.msra.mxu1 %v4458_v54  ;;  %4207 = vmatpush1.bf16.msra.mxu0 %v5948_v25 }
 0x1ae   : > { %2097 = vmatprep.mubr.f32.mxu1 %v5889_v58  ;;  %4209 = vmatprep.subr.bf16.mxu0 %v4208_v47 }
 0x1af   : > { %3991 = vmatmul.mubr.msk.f32.gmra.mrb[2].mxu1 %vm518_vm7, %v2020_v40  ;;  %3247 = vmatprep.mubr.f32.mxu0 %v5889_v58 }
 0x1b0   : > { %3692 = vmatprep.mubr.f32.mxu1 %v5889_v58  ;;  %4011 = vmatmul.mubr.msk.f32.gmra.mrb[2].mxu0 %vm518_vm7, %v3170_v36 }
 0x1b1   : > { %4211 = vmatpush1.bf16.msra.mxu0 %v4210_v41  ;;  %3356 = vmatprep.mubr.f32.mxu0 %v5889_v58 }
 0x1b2   : > { %3300 = vmatprep.subr.mxu0 %v3282_v44  ;;  %v3728_v44 = vld [vmem:[%s5791_s8] sm:$0xff] }
 0x1b3   : > { %4018 = vmatmul.mubr.msk.f32.vlgmr.msra.gmra.mrb[4].mxu1 %vm3621_vm4, %v3619_v3 }
 0x1b4   : > { %3698 = vmatprep.mubr.f32.mxu1 %v5889_v58 }
 0x1b5   : > { %3301 = vmatpush1.msra.mxu0 %v3281_v59  ;;  %v3714_v59 = vld [vmem:[%s5789_s6] sm:$0xff] }
 0x1b6   : > { %4213 = vmatprep.subr.bf16.mxu0 %v5951_v24  ;;  %4012 = vmatmul.mubr.msk.f32.vlgmr.msra.gmra.mrb[0].mxu0 %vm518_vm7, %v3284_v28 }
 0x1b7   : > { %4215 = vmatpush1.bf16.msra.mxu0 %v5954_v50  ;;  %4019 = vmatmul.mubr.msk.f32.gmra.mrb[6].mxu1 %vm3621_vm4, %v3620_v21 }
 0x1b8   : > { %4217 = vmatprep.subr.bf16.mxu0 %v5957_v22  ;;  %3362 = vmatprep.mubr.f32.mxu0 %v5889_v58 }
 0x1b9   : > { %3797 = vmatprep.mubr.f32.mxu1 %v5889_v58 }
 0x1ba   : > { %4013 = vmatmul.mubr.msk.f32.gmra.mrb[2].mxu0 %vm518_vm7, %v3285_v11 }
 0x1bb   : > { %4219 = vmatpush1.bf16.msra.mxu0 %v5960_v35  ;;  %3471 = vmatprep.mubr.f32.mxu0 %v5889_v58 }
 0x1bc   : > { %3415 = vmatprep.subr.mxu0 %v3397_v19 }
 0x1bf   : > { %3416 = vmatpush1.msra.mxu0 %v3396_v27 }
 0x1c0   : > { %4221 = vmatprep.subr.bf16.mxu0 %v5963_v12  ;;  %4014 = vmatmul.mubr.msk.f32.vlgmr.msra.gmra.mrb[0].mxu0 %vm518_vm7, %v3399_v61 }
 0x1c1   : > { %4223 = vmatpush1.bf16.msra.mxu0 %v5966_v23  ;;  %3477 = vmatprep.mubr.f32.mxu0 %v5889_v58 }
 0x1c2   : > { %4225 = vmatprep.subr.bf16.mxu0 %v5968_v37 }
 0x1c4   : > { %4015 = vmatmul.mubr.msk.f32.gmra.mrb[2].mxu0 %vm518_vm7, %v3400_v55 }
 0x1c5   : > { %4227 = vmatpush1.bf16.msra.mxu0 %v5971_v63  ;;  %3586 = vmatprep.mubr.f32.mxu0 %v5889_v58 }
 0x1c6   : > { %3530 = vmatprep.subr.mxu0 %v3512_v33 }
 0x1c9   : > { %3531 = vmatpush1.msra.mxu0 %v3511_v17 }
 0x1ca   : > { %4016 = vmatmul.mubr.msk.f32.vlgmr.msra.gmra.mrb[0].mxu0 %vm518_vm7, %v3514_v16 }
 0x1cb   : > { %3592 = vmatprep.mubr.f32.mxu0 %v5889_v58  ;;  %v3804_v58 = vld [vmem:[%s5792_s9] sm:$0xff] }
 0x1ce   : > { %4017 = vmatmul.mubr.msk.f32.gmra.mrb[2].mxu0 %vm518_vm7, %v3515_v15  ;;  %vm3729_vm7 = vcmask 130048  }
 0x27e   : > { %v2093_v5 = vpop.f32.mrb[0].mxu1 }
 0x27f   : > { %v2095_v31 = vpop.f32.mrb[1].mxu1 }
 0x282   : > { %v2099_v54 = vpop.f32.mrb[2].mxu1 }
 0x283   : > { %v2101_v56 = vpop.f32.mrb[3].mxu1 }
 0x286   : > { %v3694_v8 = vpop.f32.mrb[4].mxu1 }
 0x287   : > { %v3696_v60 = vpop.f32.mrb[5].mxu1 }
 0x288   : > { %v3705_v32 = vadd.f32 %v3696_v60, %v3694_v8 }
 0x28a   : > { %3706 = vadd.xlane.f32.xlu1 %v3705_v32  ;;  %v3700_v29 = vpop.f32.mrb[6].mxu1 }
 0x28b   : > { %v3702_v10 = vpop.f32.mrb[7].mxu1 }
 0x28c   : > { %v3708_v42 = vadd.f32 %v3702_v10, %v3700_v29 }
 0x28e   : > { %3709 = vadd.xlane.f32.xlu0 %v3708_v42 }
 0x29b   : > { %3807 = vperm.xlu1 %4447, %v3804_v58  }
 0x29d   : > { %v3588_v49 = vpop.f32.mrb[0].mxu0 }
 0x29e   : > { %v5700_v40 = vadd.f32 %v3588_v49, %v2093_v5  ;;  %v3590_v47 = vpop.f32.mrb[1].mxu0 }
 0x29f   : > { %3606 = vperm.xlu1 %4447, %v3603_v48   ;;  %v5702_v38 = vadd.f32 %v3590_v47, %v2095_v31 }
 0x2a1   : > { %v3594_v25 = vpop.f32.mrb[2].mxu0 }
 0x2a2   : > { %v5707_v18 = vadd.f32 %v3594_v25, %v2099_v54  ;;  %v3596_v36 = vpop.f32.mrb[3].mxu0 }
 0x2a3   : > { %3614 = vperm.xlu1 %4447, %v3611_v26   ;;  %v5709_v41 = vadd.f32 %v3596_v36, %v2101_v56 }
 0x2a4   : > { %v4230_v6 = vpack.c.bf16 %v5707_v18, %v5700_v40 }
 0x2a5   : > { %v4228_v3 = vpack.c.bf16 %v5709_v41, %v5702_v38 }
 0x2a7   : > { %4229 = vmatprep.subr.bf16.mxu1 %v4228_v3 }
 0x2a8   : > { %4231 = vmatpush1.bf16.msra.mxu1 %v4230_v6 }
 0x2ab   : > { %4020 = vmatmul.mubr.msk.f32.vlgmr.msra.gmra.mrb[8].mxu1 %vm3729_vm7, %v3728_v44 }
 0x317   : > { %v3707_v28 = vpop.xlane.xlu1 %3706 }
 0x318   : > { %v3712_v21 = vmul.f32 0.00390625, %v3707_v28 }
 0x31a   : > { %v3715_v51 = vadd.f32 %v3714_v59, %v3712_v21 }
 0x31b   : > { %v3710_v24 = vpop.xlane.xlu0 %3709  ;;  %v3808_v22 = vpop.permute.xlu1 %3807 }
 0x31c   : > { %3718 = vperm.xlu1 %4447, %v3715_v51   ;;  %v3713_v13 = vmul.f32 0.00390625, %v3710_v24 }
 0x31e   : > { %v3722_v20 = vadd.f32 %v3721_v45, %v3713_v13 }
 0x31f   : > { %v3607_v32 = vpop.permute.xlu1 %3606 }
 0x320   : > { %3725 = vperm.xlu0 %4446, %v3722_v20   ;;  %v3609_v58 = vadd.f32 %v5700_v40, %v3607_v32  ;;  %v3610_v47 = vadd.f32 %v5702_v38, %v3607_v32 }
 0x323   : > { %v3615_v29 = vpop.permute.xlu1 %3614 }
 0x324   : > { %v3617_v48 = vadd.f32 %v5707_v18, %v3615_v29  ;;  %v3618_v26 = vadd.f32 %v5709_v41, %v3615_v29 }
 0x37e   : > { %v3799_v50 = vpop.f32.mrb[8].mxu1 }
 0x37f   : > { %v3801_v46 = vpop.f32.mrb[9].mxu1 }
 0x39b   : > { %v3719_v25 = vpop.permute.xlu1 %3718 }
 0x39f   : > { %v3726_v11 = vpop.permute.xlu0 %3725 }
 0x3a0   : > { %v3800_v0 = vadd.f32 %v3799_v50, %v3726_v11  ;;  %v3802_v53 = vadd.f32 %v3801_v46, %v3726_v11 }
 0x3a2   : > { %v3810_v1 = vadd.f32 %v3808_v22, %v3800_v0  ;;  %v3811_v19 = vadd.f32 %v3808_v22, %v3802_v53 }
 0x3a4   : > { %v3812_v7 = vrot.slane %v3810_v1, 4  ;;  %v3818_v9 = vrot.slane %v3811_v19, 4 }
 0x3a6   : > { %v3813_v35 = vmax.f32 %v3810_v1, %v3812_v7  ;;  %v3819_v27 = vmax.f32 %v3811_v19, %v3818_v9 }
 0x3a8   : > { %v3814_v61 = vrot.slane %v3813_v35, 2  ;;  %v3820_v2 = vrot.slane %v3819_v27, 2 }
 0x3aa   : > { %v3815_v52 = vmax.f32 %v3813_v35, %v3814_v61  ;;  %v3821_v12 = vmax.f32 %v3819_v27, %v3820_v2 }
 0x3ac   : > { %v3816_v62 = vrot.slane %v3815_v52, 1  ;;  %v3822_v57 = vrot.slane %v3821_v12, 1 }
 0x3ae   : > { %v3817_v23 = vmax.f32 %v3815_v52, %v3816_v62  ;;  %v3823_v55 = vmax.f32 %v3821_v12, %v3822_v57 }
 0x3b0   : > { %v3824_v4 = vsub.f32 %v3810_v1, %v3817_v23  ;;  %v3825_v14 = vsub.f32 %v3811_v19, %v3823_v55 }
 0x3b2   : > { %v3826_v37 = vmul.f32 1.442695, %v3824_v4  ;;  %v3828_v34 = vmul.f32 1.442695, %v3825_v14 }
 0x3b4   : > { %4448 = vpow2.f32 %v3826_v37 }
 0x3b5   : > { %4450 = vpow2.f32 %v3828_v34 }
 0x3be   : > { %v4449_v33 = vpop.eup %4448 }
 0x3bf   : > { %v4451_v43 = vpop.eup %4450  ;;  %v3830_v30 = vrot.slane %v4449_v33, 4 }
 0x3c0   : > { %v3836_v63 = vrot.slane %v4451_v43, 4 }
 0x3c1   : > { %v3831_v17 = vadd.f32 %v4449_v33, %v3830_v30 }
 0x3c2   : > { %v3837_v16 = vadd.f32 %v4451_v43, %v3836_v63 }
 0x3c3   : > { %v3832_v15 = vrot.slane %v3831_v17, 2 }
 0x3c4   : > { %v3838_v39 = vrot.slane %v3837_v16, 2 }
 0x3c5   : > { %v3833_v5 = vadd.f32 %v3832_v15, %v3831_v17 }
 0x3c6   : > { %v3839_v31 = vadd.f32 %v3838_v39, %v3837_v16 }
 0x3c7   : > { %v3834_v54 = vrot.slane %v3833_v5, 1 }
 0x3c8   : > { %v3840_v56 = vrot.slane %v3839_v31, 1 }
 0x3c9   : > { %v3835_v8 = vadd.f32 %v3834_v54, %v3833_v5 }
 0x3ca   : > { %v3841_v60 = vadd.f32 %v3840_v56, %v3839_v31 }
 0x3cb   : > { %4452 = vrcp.f32 %v3835_v8 }
 0x3cc   : > { %4454 = vrcp.f32 %v3841_v60 }
 0x3d5   : > { %v4453_v10 = vpop.eup %4452 }
 0x3d6   : > { %v4455_v42 = vpop.eup %4454  ;;  %v3844_v49 = vmul.f32 %v4453_v10, %v4449_v33 }
 0x3d7   : > { %v3845_v36 = vmul.f32 %v4455_v42, %v4451_v43 }
 0x3d8   : > { %v3846_v3 = vmul.f32 %v3844_v49, %v3609_v58  ;;  %v3850_v6 = vmul.f32 %v3844_v49, %v3617_v48  ;;  %v3855_v44 = vmul.f32 %v3844_v49, %v3719_v25 }
 0x3d9   : > { %v3847_v59 = vmul.f32 %v3845_v36, %v3610_v47  ;;  %v3851_v28 = vmul.f32 %v3845_v36, %v3618_v26  ;;  %v3856_v21 = vmul.f32 %v3845_v36, %v3719_v25 }
 0x3da   : > { %3848 = vst [vmem:[%s383_s25] sm:$0xff] %v3846_v3  ;;  %4021 = vst [vmem:[%s383_s25 + $0x10] sm:$0xff] %v3850_v6 }
 0x3db   : > { %4023 = vst [vmem:[%s383_s25 + $0x20] sm:$0xff] %v3855_v44  ;;  %3849 = vst [vmem:[%s383_s25 + $0x8] sm:$0xff] %v3847_v59 }
 0x3dc   : > { %4022 = vst [vmem:[%s383_s25 + $0x18] sm:$0xff] %v3851_v28  ;;  %4024 = vst [vmem:[%s383_s25 + $0x28] sm:$0xff] %v3856_v21 }
 0x3dd   : > { %4529 = shalt.err (!%p4526_p11)
}
 0x3de   : > { %s4530_s22 = scalar_lea.hbm %s5735_s21, 768  ;;  %s4534_s30 = scalar_lea.hbm %s5793_s10, 1536 }
 0x3df   : > { %p4531_p13 = scmp.ne.s32.totalorder %s5735_s21, %s4530_s22  ;;  %p4535_p6 = scmp.lt.u32.totalorder %s5735_s21, %s5793_s10 }
 0x3e0   : > { %p4536_p9 = scmp.lt.u32.totalorder %s4534_s30, %s4530_s22  ;;  %p4538_p12 = scmp.lt.u32.totalorder %s4530_s22, %s5735_s21 }
 0x3e1   : > { %p4532_p0 = pnand %p4531_p13, %p5972_p1 }
 0x3e2   : > { %p4537_p10 = por %p4536_p9, %p4535_p6 }
 0x3e3   : > { %p4533_p5 = pneg %p4532_p0 }
 0x3e4   : > { %p4539_p2 = por %p4538_p12, %p4537_p10 }
 0x3e6   : > { %p4540_p3 = pnand %p4539_p2, %p4533_p5 }
 0x3e8   : > { %4543 = shalt.err (!%p4540_p3)
}
 0x3e9   : > { %s4646_s17 = smov 256  }
 0x3ea   : > { %4338 = dma.vmem_to_hbm [thread:$0]  (%p5972_p1), %s5737_s18, 768, %s5735_s21, %s5741_s26, %s4646_s17, %s4646_s17, %s4613_s29  }
 0x3eb PF: > { %s5973_s20 = sld [smem:[#allocation14_spill]]  ;;  %p4355_p4 = scmp.ge.s32.totalorder %s4586_s16, 2 }
 0x3ec   : > { %s3889_s27 = sand.u32 1, %s4574_s13  }
 0x3ed   : > { %s3890_s15 = scalar_lea.sflag [#allocation4], %s3889_s27 }
 0x3f1   : > { %p5974_p7 = scmp.ne.s32.totalorder %s5973_s20, 0 }
 0x3f3   : > { %p4348_p8 = pnand %p4355_p4, %p5974_p7 }
 0x3f5   : > { %4569 = dma.done.wait (!%p4348_p8), %s3890_s15, 768  }
 0x3f6   : > { %4571 = vsyncadd (!%p4348_p8), %s3890_s15, 4294966528  ;;  %s5975_s16 = sld [smem:[#allocation12_spill]]  ;;  %s5976_s19 = sld [smem:[#allocation11_spill]] }
 0x3f7   : > { %s5977_s15 = sld [smem:[#allocation13_spill]]  ;;  %s5978_s13 = smov %s4578_s14 }
 0x3fc   : > { %p22_p11 = scmp.ge.s32.totalorder %s5975_s16, 4   ;;  %s5979_s14 = smov %s5976_s19 }
 0x3fe   :  { %24 = sbr.rel (!%p22_p11) target bundleno = 5 (0x5), region = 254 }
 0x405   :  { %3895 = vsyncpa [#allocation3], 1 }
 0x406   :  { %3897 = vsyncpa [#allocation3 + $0x1], 1 }
 0x407   :  { %3898 = vsyncpa [#allocation6], 1 }
 0x408   :  { %3899 = vsyncpa [#allocation4], 1 }
 0x409   :  { %3901 = vsyncpa [#allocation4 + $0x1], 1 }

</bundles_post_ra>
